<compile_context>
chip_gen: v7x
topology: tpu7x:2x2x1
jax: 0.10.0
libtpu: 0.0.40
codegen_flags: <defaults>
</compile_context>

<pallas_src>
import jax
import jax.numpy as jnp
from jax.experimental import pallas as pl
from jax.experimental.pallas import tpu as pltpu


def _ceil_to(n, m):
    return -(-n // m) * m


def _silu_dtype():
    """bf16 SiLU epilogue on chips with a bf16 VPU/EUP (v6e/v7x); f32 otherwise."""
    try:
        kind = jax.devices()[0].device_kind.lower()
    except Exception:
        return jnp.float32
    for old in ("v2", "v3", "v4", "v5"):
        if old in kind:
            return jnp.float32
    return jnp.bfloat16


def _pick_tile(B, tb):
    """Batch-tile size: big (amortize ~0.35us/step), 256-aligned, >=2 steps when large."""
    if B <= 256:
        # Small batch: one block, rounded up to the 8-sublane granule.
        return _ceil_to(min(B, tb), 8)
    # Large batch: keep TB a multiple of 256 and cap it so the grid has at
    # least 2 steps (both v7x TensorCores get a share of the parallel axis).
    two_step_cap = _ceil_to(pl.cdiv(B, 2), 256)
    return max(256, min(_ceil_to(tb, 256), two_step_cap))


def _make_kernel(act_dtype):
    def silu(h):
        # SiLU(x) = x * sigmoid(x); logistic rides the EUP path.  On v6e/v7x
        # act_dtype is bf16 (half the EUP pushes / VALU ops / VMEM traffic);
        # on v5e it stays f32 (no bf16 VPU/EUP there).
        h = h.astype(act_dtype)
        return (h * jax.nn.sigmoid(h)).astype(jnp.bfloat16)

    def kernel(x_ref,
               w1_ref, b1_ref,
               w2_ref, b2_ref,
               w3_ref, b3_ref,
               w4_ref, b4_ref,
               o_ref):
        # f32 -> bf16 cast happens in-register (no separate HBM cast pass).
        x = x_ref[...].astype(jnp.bfloat16)

        # Folded Linear+BN layers: bf16 MXU inputs, f32 accumulation.
        h = silu(jnp.dot(x, w1_ref[...],
                         preferred_element_type=jnp.float32) + b1_ref[...])
        h = silu(jnp.dot(h, w2_ref[...],
                         preferred_element_type=jnp.float32) + b2_ref[...])
        h = silu(jnp.dot(h, w3_ref[...],
                         preferred_element_type=jnp.float32) + b3_ref[...])

        # Final Linear(512 -> 1) as w4 @ h^T (contract both last dims): the
        # (1, TB) result lands directly in the lane-dense output layout.
        y = jax.lax.dot_general(w4_ref[...], h, (((1,), (1,)), ((), ())),
                                preferred_element_type=jnp.float32)
        o_ref[...] = y + b4_ref[...]

    return kernel


def mlp_forward(x, params, *, tb=512, act_dtype=None):
    """x: (B, 512) f32. params: folded (w1,b1,w2,b2,w3,b3,w4,b4)."""
    w1, b1, w2, b2, w3, b3, w4, b4 = params
    B, d_in = x.shape
    if act_dtype is None:
        act_dtype = _silu_dtype()

    TB = _pick_tile(B, tb)
    G = pl.cdiv(B, TB)

    def batch_map(i):
        return (i, 0)

    def out_map(i):
        return (0, i)

    def const_map(i):
        return (0, 0)

    out = pl.pallas_call(
        _make_kernel(act_dtype),
        out_shape=jax.ShapeDtypeStruct((1, G * TB), jnp.float32),
        grid_spec=pltpu.PrefetchScalarGridSpec(
            num_scalar_prefetch=0,
            grid=(G,),
            in_specs=[
                pl.BlockSpec((TB, d_in), batch_map),   # x tile (f32, cast in-kernel)
                pl.BlockSpec(w1.shape, const_map),     # weights stay VMEM-resident
                pl.BlockSpec(b1.shape, const_map),
                pl.BlockSpec(w2.shape, const_map),
                pl.BlockSpec(b2.shape, const_map),
                pl.BlockSpec(w3.shape, const_map),
                pl.BlockSpec(b3.shape, const_map),
                pl.BlockSpec(w4.shape, const_map),
                pl.BlockSpec(b4.shape, const_map),
            ],
            out_specs=pl.BlockSpec((1, TB), out_map),  # lane-dense output row
        ),
        compiler_params=pltpu.CompilerParams(
            dimension_semantics=("parallel",),
            vmem_limit_bytes=32 << 20,   # valid on v5e/v6e/v7x; working set ~10-20 MiB
        ),
    )(x, w1, b1, w2, b2, w3, b3, w4, b4)

    # Trailing G*TB - B columns (ragged last tile) are garbage; slice them off.
    return out[0, :B].reshape(B, 1)


def make_params(key, input_size=512, eps=1e-5):
    """Deterministic init + BN/bias folding.

    Returns (w1,b1,w2,b2,w3,b3,w4,b4):
      w1..w3: bf16 (in, out) with eval-BN scale folded in
      b1..b3: f32  (1, out)  = bias*scale + shift
      w4:     bf16 (1, 512)  final-layer weight row
      b4:     f32  (1, 1)    final-layer bias
    """
    dims = [(input_size, 1024), (1024, 1024), (1024, 512), (512, 1)]
    keys = jax.random.split(key, 4 * len(dims) + 4 * 3)
    ki = 0
    params = []
    for li, (din, dout) in enumerate(dims):
        bound = 1.0 / jnp.sqrt(din)
        w = jax.random.uniform(keys[ki], (din, dout), jnp.float32, -bound, bound); ki += 1
        b = jax.random.uniform(keys[ki], (1, dout), jnp.float32, -bound, bound); ki += 1
        if li < 3:
            gamma = 1.0 + 0.1 * jax.random.normal(keys[ki], (1, dout), jnp.float32); ki += 1
            beta = 0.1 * jax.random.normal(keys[ki], (1, dout), jnp.float32); ki += 1
            rmean = 0.1 * jax.random.normal(keys[ki], (1, dout), jnp.float32); ki += 1
            rvar = jnp.abs(1.0 + 0.1 * jax.random.normal(keys[ki], (1, dout), jnp.float32)); ki += 1
            # Fold eval-mode BN into the linear layer:
            #   y = (xW + b) * scale + shift  ==  x (W*scale) + (b*scale + shift)
            scale = gamma / jnp.sqrt(rvar + eps)
            shift = beta - rmean * scale
            params += [(w * scale).astype(jnp.bfloat16),
                       (b * scale + shift).astype(jnp.float32)]
        else:
            params += [w.reshape(1, din).astype(jnp.bfloat16),
                       b.reshape(1, 1).astype(jnp.float32)]
    return tuple(params)


def reference_forward(x, params, act_dtype):
    """Pure-JAX reference of the identical folded / bf16 math."""
    w1, b1, w2, b2, w3, b3, w4, b4 = params
    h = x.astype(jnp.bfloat16)
    for w, b in ((w1, b1), (w2, b2), (w3, b3)):
        h = jnp.dot(h, w, preferred_element_type=jnp.float32) + b
        h = h.astype(act_dtype)
        h = (h * jax.nn.sigmoid(h)).astype(jnp.bfloat16)
    y = jax.lax.dot_general(w4, h, (((1,), (1,)), ((), ())),
                            preferred_element_type=jnp.float32)   # (1, B)
    return y.T + b4                                               # (B, 1)


if __name__ == "__main__":
    key = jax.random.PRNGKey(0)
    k_x, k_p = jax.random.split(key)

    batch = 8
    input_size = 512
    x = jax.random.normal(k_x, (batch, input_size), dtype=jnp.float32)
    params = make_params(k_p, input_size=input_size)

    act_dtype = _silu_dtype()
    out = jax.block_until_ready(mlp_forward(x, params, act_dtype=act_dtype))
    assert out.shape == (batch, 1), out.shape

    ref = reference_forward(x, params, act_dtype)
    err = float(jnp.max(jnp.abs(out - ref)))
    # Tolerance covers bf16 SiLU / transcendental-approximation differences
    # between the Mosaic kernel and the XLA reference.
    assert jnp.allclose(out, ref, atol=2e-2, rtol=2e-2), err

    print("KERNEL_OK")
</pallas_src>

<mosaic_0001>
module attributes {stable_mosaic.version = 11 : i64} {
  func.func @kernel(%arg0: i32, %arg1: memref<8x512xf32, #tpu.memory_space<vmem>>, %arg2: memref<512x1024xbf16, #tpu.memory_space<vmem>>, %arg3: memref<1x1024xf32, #tpu.memory_space<vmem>>, %arg4: memref<1024x1024xbf16, #tpu.memory_space<vmem>>, %arg5: memref<1x1024xf32, #tpu.memory_space<vmem>>, %arg6: memref<1024x512xbf16, #tpu.memory_space<vmem>>, %arg7: memref<1x512xf32, #tpu.memory_space<vmem>>, %arg8: memref<1x512xbf16, #tpu.memory_space<vmem>>, %arg9: memref<1x1xf32, #tpu.memory_space<vmem>>, %arg10: memref<1x8xf32, #tpu.memory_space<vmem>>) attributes {dimension_semantics = [#tpu.dimension_semantics<parallel>], iteration_bounds = array<i64: 1>, scalar_prefetch = 0 : i64, scratch_operands = 0 : i64, tpu.core_type = #tpu.core_type<tc>, window_params = [{transform_indices = @transform_0, window_bounds = array<i64: 8, 512>}, {pipeline_mode = #tpu.pipeline_mode<synchronous>, transform_indices = @transform_1, window_bounds = array<i64: 512, 1024>}, {pipeline_mode = #tpu.pipeline_mode<synchronous>, transform_indices = @transform_2, window_bounds = array<i64: 1, 1024>}, {pipeline_mode = #tpu.pipeline_mode<synchronous>, transform_indices = @transform_3, window_bounds = array<i64: 1024, 1024>}, {pipeline_mode = #tpu.pipeline_mode<synchronous>, transform_indices = @transform_4, window_bounds = array<i64: 1, 1024>}, {pipeline_mode = #tpu.pipeline_mode<synchronous>, transform_indices = @transform_5, window_bounds = array<i64: 1024, 512>}, {pipeline_mode = #tpu.pipeline_mode<synchronous>, transform_indices = @transform_6, window_bounds = array<i64: 1, 512>}, {pipeline_mode = #tpu.pipeline_mode<synchronous>, transform_indices = @transform_7, window_bounds = array<i64: 1, 512>}, {pipeline_mode = #tpu.pipeline_mode<synchronous>, transform_indices = @transform_8, window_bounds = array<i64: 1, 1>}, {transform_indices = @transform_9, window_bounds = array<i64: 1, 8>}]} {
    %c0 = arith.constant 0 : index
    %c0_0 = arith.constant 0 : index
    %0 = vector.load %arg1[%c0, %c0_0] : memref<8x512xf32, #tpu.memory_space<vmem>>, vector<8x512xf32>
    %1 = arith.truncf %0 : vector<8x512xf32> to vector<8x512xbf16>
    %c0_1 = arith.constant 0 : index
    %c0_2 = arith.constant 0 : index
    %2 = vector.load %arg2[%c0_1, %c0_2] : memref<512x1024xbf16, #tpu.memory_space<vmem>>, vector<512x1024xbf16>
    %cst = arith.constant dense<0.000000e+00> : vector<8x1024xf32>
    %3 = tpu.matmul %1, %2, %cst {dimension_numbers = #tpu.dot_dimension_numbers<[1], [0], [0], [1], [0, 0, 1, 1], [], []>} : vector<8x512xbf16>, vector<512x1024xbf16>, vector<8x1024xf32> -> vector<8x1024xf32>
    %c0_3 = arith.constant 0 : index
    %c0_4 = arith.constant 0 : index
    %4 = vector.load %arg3[%c0_3, %c0_4] : memref<1x1024xf32, #tpu.memory_space<vmem>>, vector<1x1024xf32>
    %5 = vector.broadcast %4 : vector<1x1024xf32> to vector<8x1024xf32>
    %6 = arith.addf %3, %5 : vector<8x1024xf32>
    %7 = arith.truncf %6 : vector<8x1024xf32> to vector<8x1024xbf16>
    %8 = arith.negf %7 : vector<8x1024xbf16>
    %9 = math.exp %8 : vector<8x1024xbf16>
    %cst_5 = arith.constant 1.000000e+00 : bf16
    %10 = vector.broadcast %cst_5 : bf16 to vector<8x1024xbf16>
    %11 = arith.addf %10, %9 : vector<8x1024xbf16>
    %12 = arith.divf %10, %11 : vector<8x1024xbf16>
    %13 = arith.mulf %7, %12 : vector<8x1024xbf16>
    %c0_6 = arith.constant 0 : index
    %c0_7 = arith.constant 0 : index
    %14 = vector.load %arg4[%c0_6, %c0_7] : memref<1024x1024xbf16, #tpu.memory_space<vmem>>, vector<1024x1024xbf16>
    %cst_8 = arith.constant dense<0.000000e+00> : vector<8x1024xf32>
    %15 = tpu.matmul %13, %14, %cst_8 {dimension_numbers = #tpu.dot_dimension_numbers<[1], [0], [0], [1], [0, 0, 1, 1], [], []>} : vector<8x1024xbf16>, vector<1024x1024xbf16>, vector<8x1024xf32> -> vector<8x1024xf32>
    %c0_9 = arith.constant 0 : index
    %c0_10 = arith.constant 0 : index
    %16 = vector.load %arg5[%c0_9, %c0_10] : memref<1x1024xf32, #tpu.memory_space<vmem>>, vector<1x1024xf32>
    %17 = vector.broadcast %16 : vector<1x1024xf32> to vector<8x1024xf32>
    %18 = arith.addf %15, %17 : vector<8x1024xf32>
    %19 = arith.truncf %18 : vector<8x1024xf32> to vector<8x1024xbf16>
    %20 = arith.negf %19 : vector<8x1024xbf16>
    %21 = math.exp %20 : vector<8x1024xbf16>
    %cst_11 = arith.constant 1.000000e+00 : bf16
    %22 = vector.broadcast %cst_11 : bf16 to vector<8x1024xbf16>
    %23 = arith.addf %22, %21 : vector<8x1024xbf16>
    %24 = arith.divf %22, %23 : vector<8x1024xbf16>
    %25 = arith.mulf %19, %24 : vector<8x1024xbf16>
    %c0_12 = arith.constant 0 : index
    %c0_13 = arith.constant 0 : index
    %26 = vector.load %arg6[%c0_12, %c0_13] : memref<1024x512xbf16, #tpu.memory_space<vmem>>, vector<1024x512xbf16>
    %cst_14 = arith.constant dense<0.000000e+00> : vector<8x512xf32>
    %27 = tpu.matmul %25, %26, %cst_14 {dimension_numbers = #tpu.dot_dimension_numbers<[1], [0], [0], [1], [0, 0, 1, 1], [], []>} : vector<8x1024xbf16>, vector<1024x512xbf16>, vector<8x512xf32> -> vector<8x512xf32>
    %c0_15 = arith.constant 0 : index
    %c0_16 = arith.constant 0 : index
    %28 = vector.load %arg7[%c0_15, %c0_16] : memref<1x512xf32, #tpu.memory_space<vmem>>, vector<1x512xf32>
    %29 = vector.broadcast %28 : vector<1x512xf32> to vector<8x512xf32>
    %30 = arith.addf %27, %29 : vector<8x512xf32>
    %31 = arith.truncf %30 : vector<8x512xf32> to vector<8x512xbf16>
    %32 = arith.negf %31 : vector<8x512xbf16>
    %33 = math.exp %32 : vector<8x512xbf16>
    %cst_17 = arith.constant 1.000000e+00 : bf16
    %34 = vector.broadcast %cst_17 : bf16 to vector<8x512xbf16>
    %35 = arith.addf %34, %33 : vector<8x512xbf16>
    %36 = arith.divf %34, %35 : vector<8x512xbf16>
    %37 = arith.mulf %31, %36 : vector<8x512xbf16>
    %c0_18 = arith.constant 0 : index
    %c0_19 = arith.constant 0 : index
    %38 = vector.load %arg8[%c0_18, %c0_19] : memref<1x512xbf16, #tpu.memory_space<vmem>>, vector<1x512xbf16>
    %cst_20 = arith.constant dense<0.000000e+00> : vector<1x8xf32>
    %39 = tpu.matmul %38, %37, %cst_20 {dimension_numbers = #tpu.dot_dimension_numbers<[1], [1], [0], [0], [0, 0, 1, 0], [], []>} : vector<1x512xbf16>, vector<8x512xbf16>, vector<1x8xf32> -> vector<1x8xf32>
    %c0_21 = arith.constant 0 : index
    %c0_22 = arith.constant 0 : index
    %40 = vector.load %arg9[%c0_21, %c0_22] : memref<1x1xf32, #tpu.memory_space<vmem>>, vector<1x1xf32>
    %41 = vector.broadcast %40 : vector<1x1xf32> to vector<1x8xf32>
    %42 = arith.addf %39, %41 : vector<1x8xf32>
    %c0_23 = arith.constant 0 : index
    %c0_24 = arith.constant 0 : index
    %43 = vector.load %arg10[%c0_23, %c0_24] : memref<1x8xf32, #tpu.memory_space<vmem>>, vector<1x8xf32>
    tpu.vector_store %arg10[%c0_23, %c0_24], %42 {strides = array<i32>} : memref<1x8xf32, #tpu.memory_space<vmem>>, vector<1x8xf32>,
    return
  }
  func.func @transform_0(%arg0: i32) -> (i32, i32) {
    %c0_i32 = arith.constant 0 : i32
    %c0_i32_0 = arith.constant 0 : i32
    return %arg0, %c0_i32 : i32, i32
  }
  func.func @transform_1(%arg0: i32) -> (i32, i32) {
    %c0_i32 = arith.constant 0 : i32
    %c0_i32_0 = arith.constant 0 : i32
    %c0_i32_1 = arith.constant 0 : i32
    return %c0_i32, %c0_i32_0 : i32, i32
  }
  func.func @transform_2(%arg0: i32) -> (i32, i32) {
    %c0_i32 = arith.constant 0 : i32
    %c0_i32_0 = arith.constant 0 : i32
    %c0_i32_1 = arith.constant 0 : i32
    return %c0_i32, %c0_i32_0 : i32, i32
  }
  func.func @transform_3(%arg0: i32) -> (i32, i32) {
    %c0_i32 = arith.constant 0 : i32
    %c0_i32_0 = arith.constant 0 : i32
    %c0_i32_1 = arith.constant 0 : i32
    return %c0_i32, %c0_i32_0 : i32, i32
  }
  func.func @transform_4(%arg0: i32) -> (i32, i32) {
    %c0_i32 = arith.constant 0 : i32
    %c0_i32_0 = arith.constant 0 : i32
    %c0_i32_1 = arith.constant 0 : i32
    return %c0_i32, %c0_i32_0 : i32, i32
  }
  func.func @transform_5(%arg0: i32) -> (i32, i32) {
    %c0_i32 = arith.constant 0 : i32
    %c0_i32_0 = arith.constant 0 : i32
    %c0_i32_1 = arith.constant 0 : i32
    return %c0_i32, %c0_i32_0 : i32, i32
  }
  func.func @transform_6(%arg0: i32) -> (i32, i32) {
    %c0_i32 = arith.constant 0 : i32
    %c0_i32_0 = arith.constant 0 : i32
    %c0_i32_1 = arith.constant 0 : i32
    return %c0_i32, %c0_i32_0 : i32, i32
  }
  func.func @transform_7(%arg0: i32) -> (i32, i32) {
    %c0_i32 = arith.constant 0 : i32
    %c0_i32_0 = arith.constant 0 : i32
    %c0_i32_1 = arith.constant 0 : i32
    return %c0_i32, %c0_i32_0 : i32, i32
  }
  func.func @transform_8(%arg0: i32) -> (i32, i32) {
    %c0_i32 = arith.constant 0 : i32
    %c0_i32_0 = arith.constant 0 : i32
    %c0_i32_1 = arith.constant 0 : i32
    return %c0_i32, %c0_i32_0 : i32, i32
  }
  func.func @transform_9(%arg0: i32) -> (i32, i32) {
    %c0_i32 = arith.constant 0 : i32
    %c0_i32_0 = arith.constant 0 : i32
    return %c0_i32, %arg0 : i32, i32
  }
}

</mosaic_0001>

<bundles_post_ra>
// kernel: tpu_custom_call.1
= control target key start
LH: loop header
LB: loop body
LE: loop exit
PB: predicated region body
PF: predicated region fallthrough
CT: control target
= control target key end

     0   :  { %s10270_s0 = inlined_call_operand.hbm [shape: f32[8,512], index: 0, kind: input, shape index: {}]   ;;  %s10271_s1 = inlined_call_operand.hbm [shape: bf16[512,1024], index: 1, kind: input, shape index: {}]   ;;  %s10272_s2 = inlined_call_operand.hbm [shape: f32[1,1024], index: 2, kind: input, shape index: {}]   ;;  %s10273_s3 = inlined_call_operand.hbm [shape: bf16[1024,1024], index: 3, kind: input, shape index: {}]   ;;  %s10274_s4 = inlined_call_operand.hbm [shape: f32[1,1024], index: 4, kind: input, shape index: {}]   ;;  %s10275_s5 = inlined_call_operand.hbm [shape: bf16[1024,512], index: 5, kind: input, shape index: {}]   ;;  %s10276_s6 = inlined_call_operand.hbm [shape: f32[1,512], index: 6, kind: input, shape index: {}]   ;;  %s10277_s7 = inlined_call_operand.hbm [shape: bf16[1,512], index: 7, kind: input, shape index: {}]   ;;  %s10278_s8 = inlined_call_operand.<no memory space> [shape: f32[1,1], index: 8, kind: input, shape index: {}]   ;;  %s10279_s9 = inlined_call_operand.hbm [shape: f32[1,8], index: 9, kind: output, shape index: {}]  }
   0x1   :  { %v14_v0 = vstv %s10278_s8 }
   0x2   :  { %15 = vst [vmem:[#allocation2] sm:$0x1] %v14_v0 }
   0x3   :  { %16 = vsyncpa [#allocation4], 0 }
   0x4   :  { %17 = vsyncpa [#allocation7], 0 }
   0x5   :  { %18 = vsyncpa [#allocation10], 0 }
   0x6   :  { %19 = vsyncpa [#allocation13], 0 }
   0x7   :  { %20 = vsyncpa [#allocation16], 0 }
   0x8   :  { %21 = vsyncpa [#allocation5], 0  ;;  %s9874_s11 = smov [#allocation6]   ;;  %s9664_s15 = scalar_lea.hbm %s10271_s1, 32768 }
   0x9   :  { %s37_s12 = sshll.u32 %s9874_s11, 4  ;;  %p9665_p0 = scmp.ne.s32.totalorder %s10271_s1, %s9664_s15  ;;  %s38_s12 = int_to_ptr.vmem [resolvable:$true] %s37_s12 }
   0xa   :  { %p9668_p1 = scmp.lt.u32.totalorder %s9664_s15, %s10271_s1 }
   0xc   :  { %p9670_p2 = pnand %p9668_p1, %p9665_p0 }
   0xe   :  { %9673 = shalt.err (!%p9670_p2)
}
   0xf   :  { %s9674_s19 = scalar_lea.vmem %s38_s12, 32768  ;;  %p9679_p4 = scmp.lt.s32.totalorder %s38_s12, %s38_s12 }
  0x10   :  { %p9675_p3 = scmp.ne.s32.totalorder %s38_s12, %s9674_s19  ;;  %p9680_p5 = scmp.lt.s32.totalorder %s9674_s19, %s9674_s19 }
  0x12   :  { %p9681_p6 = por %p9680_p5, %p9679_p4 }
  0x14   :  { %p9682_p7 = pnand %p9681_p6, %p9675_p3 }
  0x16   :  { %9685 = shalt.err (!%p9682_p7)
}
  0x17   :  { %s9875_s20 = smov 512   ;;  %s9876_s21 = smov 32  }
  0x18   :  { %43 = dma.hbm_to_vmem [thread:$0]  %s10271_s1, 32768, %s38_s12, [#allocation7], %s9875_s20, %s9875_s20, %s9876_s21  }
  0x19   :  { %s9877_s24 = smov [#allocation9]   ;;  %s9878_s26 = smov [#allocation12]  }
  0x1a   :  { %s59_s25 = sshll.u32 %s9877_s24, 4  ;;  %s81_s27 = sshll.u32 %s9878_s26, 4  ;;  %s60_s25 = int_to_ptr.vmem [resolvable:$true] %s59_s25  ;;  %s82_s27 = int_to_ptr.vmem [resolvable:$true] %s81_s27 }
  0x1b   :  { %s9686_s30 = scalar_lea.hbm %s10273_s3, 65536 }
  0x1c   :  { %p9687_p8 = scmp.ne.s32.totalorder %s10273_s3, %s9686_s30  ;;  %p9690_p9 = scmp.lt.u32.totalorder %s9686_s30, %s10273_s3 }
  0x1e   :  { %p9692_p10 = pnand %p9690_p9, %p9687_p8 }
  0x20   :  { %9695 = shalt.err (!%p9692_p10)
}
  0x21   :  { %s9696_s1 = scalar_lea.vmem %s60_s25, 65536  ;;  %p9701_p12 = scmp.lt.s32.totalorder %s60_s25, %s60_s25 }
  0x22   :  { %p9697_p11 = scmp.ne.s32.totalorder %s60_s25, %s9696_s1  ;;  %p9702_p13 = scmp.lt.s32.totalorder %s9696_s1, %s9696_s1 }
  0x24   :  { %p9703_p0 = por %p9702_p13, %p9701_p12 }
  0x26   :  { %p9704_p1 = pnand %p9703_p0, %p9697_p11 }
  0x28   :  { %9707 = shalt.err (!%p9704_p1)
}
  0x29   :  { %65 = dma.hbm_to_vmem [thread:$0]  %s10273_s3, 65536, %s60_s25, [#allocation10], %s9875_s20, %s9875_s20, %s9876_s21  }
  0x2a   :  { %s9708_s18 = scalar_lea.hbm %s10275_s5, 32768 }
  0x2b   :  { %p9709_p2 = scmp.ne.s32.totalorder %s10275_s5, %s9708_s18  ;;  %p9712_p3 = scmp.lt.u32.totalorder %s9708_s18, %s10275_s5 }
  0x2d   :  { %p9714_p4 = pnand %p9712_p3, %p9709_p2 }
  0x2f   :  { %9717 = shalt.err (!%p9714_p4)
}
  0x30   :  { %s9718_s24 = scalar_lea.vmem %s82_s27, 32768  ;;  %p9723_p6 = scmp.lt.s32.totalorder %s82_s27, %s82_s27 }
  0x31   :  { %p9719_p5 = scmp.ne.s32.totalorder %s82_s27, %s9718_s24  ;;  %p9724_p7 = scmp.lt.s32.totalorder %s9718_s24, %s9718_s24 }
  0x33   :  { %p9725_p8 = por %p9724_p7, %p9723_p6 }
  0x35   :  { %p9726_p9 = pnand %p9725_p8, %p9719_p5 }
  0x37   :  { %9729 = shalt.err (!%p9726_p9)
}
  0x38   :  { %s9879_s3 = smov 256   ;;  %s9880_s20 = smov 16  }
  0x39   :  { %87 = dma.hbm_to_vmem [thread:$0]  %s10275_s5, 32768, %s82_s27, [#allocation13], %s9879_s3, %s9879_s3, %s9880_s20  }
  0x3a   :  { %s9881_s26 = smov [#allocation3]   ;;  %s9882_s29 = smov [#allocation8]  }
  0x3b   :  { %s28_s28 = sshll.u32 %s9881_s26, 4  ;;  %s50_s30 = sshll.u32 %s9882_s29, 4  ;;  %s29_s28 = int_to_ptr.vmem [resolvable:$true] %s28_s28  ;;  %s51_s30 = int_to_ptr.vmem [resolvable:$true] %s50_s30 }
  0x3c   :  { %s9730_s13 = scalar_lea.hbm %s10270_s0, 512 }
  0x3d   :  { %p9731_p10 = scmp.ne.s32.totalorder %s10270_s0, %s9730_s13  ;;  %p9734_p11 = scmp.lt.u32.totalorder %s9730_s13, %s10270_s0 }
  0x3f   :  { %p9736_p12 = pnand %p9734_p11, %p9731_p10 }
  0x41   :  { %9739 = shalt.err (!%p9736_p12)
}
  0x42   :  { %s9740_s5 = scalar_lea.vmem %s29_s28, 512  ;;  %p9745_p0 = scmp.lt.s32.totalorder %s29_s28, %s29_s28 }
  0x43   :  { %p9741_p13 = scmp.ne.s32.totalorder %s29_s28, %s9740_s5  ;;  %p9746_p1 = scmp.lt.s32.totalorder %s9740_s5, %s9740_s5 }
  0x45   :  { %p9747_p2 = por %p9746_p1, %p9745_p0 }
  0x47   :  { %p9748_p3 = pnand %p9747_p2, %p9741_p13 }
  0x49   :  { %9751 = shalt.err (!%p9748_p3)
}
  0x4a   :  { %31 = dma.hbm_to_vmem [thread:$0]  %s10270_s0, 512, %s29_s28, [#allocation4]  }
  0x4b   :  { %s9752_s8 = scalar_lea.hbm %s10272_s2, 128 }
  0x4c   :  { %p9753_p4 = scmp.ne.s32.totalorder %s10272_s2, %s9752_s8  ;;  %p9756_p5 = scmp.lt.u32.totalorder %s9752_s8, %s10272_s2 }
  0x4e   :  { %p9758_p6 = pnand %p9756_p5, %p9753_p4 }
  0x50   :  { %9761 = shalt.err (!%p9758_p6)
}
  0x51   :  { %s9762_s3 = scalar_lea.vmem %s51_s30, 128  ;;  %p9767_p8 = scmp.lt.s32.totalorder %s51_s30, %s51_s30 }
  0x52   :  { %p9763_p7 = scmp.ne.s32.totalorder %s51_s30, %s9762_s3  ;;  %p9768_p9 = scmp.lt.s32.totalorder %s9762_s3, %s9762_s3 }
  0x54   :  { %p9769_p10 = por %p9768_p9, %p9767_p8 }
  0x56   :  { %p9770_p11 = pnand %p9769_p10, %p9763_p7 }
  0x58   :  { %9773 = shalt.err (!%p9770_p11)
}
  0x59   :  { %53 = dma.hbm_to_vmem [thread:$0]  %s10272_s2, 128, %s51_s30, [#allocation7]  }
  0x5a   :  { %s9883_s21 = smov [#allocation11]   ;;  %s9884_s26 = smov [#allocation14]  }
  0x5b   :  { %s72_s25 = sshll.u32 %s9883_s21, 4  ;;  %s94_s28 = sshll.u32 %s9884_s26, 4  ;;  %s73_s25 = int_to_ptr.vmem [resolvable:$true] %s72_s25  ;;  %s95_s28 = int_to_ptr.vmem [resolvable:$true] %s94_s28 }
  0x5c   :  { %s9774_s11 = scalar_lea.hbm %s10274_s4, 128 }
  0x5d   :  { %p9775_p12 = scmp.ne.s32.totalorder %s10274_s4, %s9774_s11  ;;  %p9778_p13 = scmp.lt.u32.totalorder %s9774_s11, %s10274_s4 }
  0x5f   :  { %p9780_p0 = pnand %p9778_p13, %p9775_p12 }
  0x61   :  { %9783 = shalt.err (!%p9780_p0)
}
  0x62   :  { %s9784_s2 = scalar_lea.vmem %s73_s25, 128  ;;  %p9789_p2 = scmp.lt.s32.totalorder %s73_s25, %s73_s25 }
  0x63   :  { %p9785_p1 = scmp.ne.s32.totalorder %s73_s25, %s9784_s2  ;;  %p9790_p3 = scmp.lt.s32.totalorder %s9784_s2, %s9784_s2 }
  0x65   :  { %p9791_p4 = por %p9790_p3, %p9789_p2 }
  0x67   :  { %p9792_p5 = pnand %p9791_p4, %p9785_p1 }
  0x69   :  { %9795 = shalt.err (!%p9792_p5)
}
  0x6a   :  { %75 = dma.hbm_to_vmem [thread:$0]  %s10274_s4, 128, %s73_s25, [#allocation10]  }
  0x6b   :  { %s9796_s16 = scalar_lea.hbm %s10276_s6, 64 }
  0x6c   :  { %p9797_p6 = scmp.ne.s32.totalorder %s10276_s6, %s9796_s16  ;;  %p9800_p7 = scmp.lt.u32.totalorder %s9796_s16, %s10276_s6 }
  0x6e   :  { %p9802_p8 = pnand %p9800_p7, %p9797_p6 }
  0x70   :  { %9805 = shalt.err (!%p9802_p8)
}
  0x71   :  { %s9806_s22 = scalar_lea.vmem %s95_s28, 64  ;;  %p9811_p10 = scmp.lt.s32.totalorder %s95_s28, %s95_s28 }
  0x72   :  { %p9807_p9 = scmp.ne.s32.totalorder %s95_s28, %s9806_s22  ;;  %p9812_p11 = scmp.lt.s32.totalorder %s9806_s22, %s9806_s22 }
  0x74   :  { %p9813_p12 = por %p9812_p11, %p9811_p10 }
  0x76   :  { %p9814_p13 = pnand %p9813_p12, %p9807_p9 }
  0x78   :  { %9817 = shalt.err (!%p9814_p13)
}
  0x79   :  { %97 = dma.hbm_to_vmem [thread:$0]  %s10276_s6, 64, %s95_s28, [#allocation13]  }
  0x7a   :  { %s9885_s24 = smov [#allocation15]   ;;  %s9818_s21 = scalar_lea.hbm %s10277_s7, 64 }
  0x7b   :  { %s104_s3 = sshll.u32 %s9885_s24, 4  ;;  %p9819_p0 = scmp.ne.s32.totalorder %s10277_s7, %s9818_s21  ;;  %s105_s3 = int_to_ptr.vmem [resolvable:$true] %s104_s3 }
  0x7c   :  { %p9822_p1 = scmp.lt.u32.totalorder %s9818_s21, %s10277_s7 }
  0x7e   :  { %p9824_p2 = pnand %p9822_p1, %p9819_p0 }
  0x80   :  { %9827 = shalt.err (!%p9824_p2)
}
  0x81   :  { %s9828_s11 = scalar_lea.vmem %s105_s3, 64  ;;  %p9833_p4 = scmp.lt.s32.totalorder %s105_s3, %s105_s3 }
  0x82   :  { %p9829_p3 = scmp.ne.s32.totalorder %s105_s3, %s9828_s11  ;;  %p9834_p5 = scmp.lt.s32.totalorder %s9828_s11, %s9828_s11 }
  0x84   :  { %p9835_p6 = por %p9834_p5, %p9833_p4 }
  0x86   :  { %p9836_p7 = pnand %p9835_p6, %p9829_p3 }
  0x88   :  { %9839 = shalt.err (!%p9836_p7)
}
  0x89   :  { %107 = dma.hbm_to_vmem [thread:$0]  %s10277_s7, 64, %s105_s3, [#allocation16]  }
  0x8a   :  { %9862 = dma.done.wait [#allocation4], 512  }
  0x8b   :  { %9863 = vsyncadd [#allocation4], 4294966784 }
  0x8c   :  { %9864 = dma.done.wait [#allocation7], 32896  }
  0x8d   :  { %9865 = vsyncadd [#allocation7], 4294934400 }
  0x8e   :  { %9866 = dma.done.wait [#allocation10], 65664  }
  0x8f   :  { %9867 = vsyncadd [#allocation10], 4294901632 }
  0x90   :  { %9868 = dma.done.wait [#allocation13], 32832  }
  0x91   :  { %9869 = vsyncadd [#allocation13], 4294934464 }
  0x92   :  { %9870 = dma.done.wait [#allocation16], 64  }
  0x93   :  { %9871 = vsyncadd [#allocation16], 4294967232  ;;  %v144_v1 = vld [vmem:[#allocation6] sm:$0xff]  ;;  %v145_v3 = vld [vmem:[#allocation6 + $0x8] sm:$0xff]  ;;  %s9888_s7 = smov [#allocation17]   ;;  %vm8006_vm0 = vcmask 57344  }
  0x94   :  { %v148_v2 = vld [vmem:[#allocation6 + $0x20] sm:$0xff]  ;;  %v149_v5 = vld [vmem:[#allocation6 + $0x28] sm:$0xff]  ;;  %s8014_s13 = sshll.u32 %s9888_s7, 4  ;;  %s8015_s13 = int_to_ptr.vmem [resolvable:$true] %s8014_s13 }
  0x95   :  { %v8028_v4 = vcombine.high %v144_v1, %v148_v2  ;;  %v8027_v6 = vcombine.low %v144_v1, %v148_v2  ;;  %v152_v7 = vld [vmem:[#allocation6 + $0x40] sm:$0xff]  ;;  %v8030_v9 = vcombine.high %v145_v3, %v149_v5  ;;  %v8029_v10 = vcombine.low %v145_v3, %v149_v5  ;;  %v153_v12 = vld [vmem:[#allocation6 + $0x48] sm:$0xff]  ;;  %s9840_s14 = scalar_lea.vmem %s8015_s13, 16  ;;  %s9844_s1 = scalar_lea.vmem %s8015_s13, 32 }
  0x96   :  { %v156_v8 = vld [vmem:[#allocation6 + $0x60] sm:$0xff]  ;;  %v157_v13 = vld [vmem:[#allocation6 + $0x68] sm:$0xff]  ;;  %p9841_p8 = scmp.ne.s32.totalorder %s8015_s13, %s9840_s14  ;;  %p9845_p9 = scmp.lt.s32.totalorder %s8015_s13, %s8015_s13 }
  0x97   :  { %v8036_v11 = vcombine.high %v152_v7, %v156_v8  ;;  %v160_v14 = vld [vmem:[#allocation6 + $0x80] sm:$0xff]  ;;  %1722 = vmatprep.subr.bf16.mxu0 %v8028_v4  ;;  %v8038_v15 = vcombine.high %v153_v12, %v157_v13  ;;  %v161_v17 = vld [vmem:[#allocation6 + $0x88] sm:$0xff]  ;;  %1804 = vmatprep.subr.bf16.mxu1 %v8030_v9  ;;  %v8035_v19 = vcombine.low %v152_v7, %v156_v8  ;;  %p9846_p10 = scmp.lt.s32.totalorder %s9844_s1, %s9840_s14 }
  0x98   :  { %v164_v16 = vld [vmem:[#allocation6 + $0xa0] sm:$0xff]  ;;  %v165_v18 = vld [vmem:[#allocation6 + $0xa8] sm:$0xff]  ;;  %1723 = vmatpush1.bf16.msra.mxu0 %v8027_v6  ;;  %1805 = vmatpush1.bf16.msra.mxu1 %v8029_v10  ;;  %v8037_v20 = vcombine.low %v153_v12, %v157_v13 }
  0x99   :  { %1724 = vmatprep.subr.bf16.mxu0 %v8036_v11  ;;  %v8044_v21 = vcombine.high %v160_v14, %v164_v16  ;;  %1806 = vmatprep.subr.bf16.mxu1 %v8038_v15  ;;  %v8046_v22 = vcombine.high %v161_v17, %v165_v18  ;;  %v168_v23 = vld [vmem:[#allocation6 + $0xc0] sm:$0xff]  ;;  %v169_v25 = vld [vmem:[#allocation6 + $0xc8] sm:$0xff]  ;;  %v8043_v27 = vcombine.low %v160_v14, %v164_v16  ;;  %p9847_p11 = por %p9846_p10, %p9845_p9 }
  0x9a   :  { %v172_v24 = vld [vmem:[#allocation6 + $0xe0] sm:$0xff]  ;;  %v173_v26 = vld [vmem:[#allocation6 + $0xe8] sm:$0xff]  ;;  %v8045_v28 = vcombine.low %v161_v17, %v165_v18 }
  0x9b   :  { %v8052_v29 = vcombine.high %v168_v23, %v172_v24  ;;  %v8054_v30 = vcombine.high %v169_v25, %v173_v26  ;;  %v176_v31 = vld [vmem:[#allocation6 + $0x100] sm:$0xff]  ;;  %v177_v33 = vld [vmem:[#allocation6 + $0x108] sm:$0xff]  ;;  %v8051_v35 = vcombine.low %v168_v23, %v172_v24  ;;  %v8053_v36 = vcombine.low %v169_v25, %v173_v26  ;;  %p9848_p12 = pnand %p9847_p11, %p9841_p8 }
  0x9c   :  { %1725 = vmatpush1.bf16.msra.mxu0 %v8035_v19  ;;  %1807 = vmatpush1.bf16.msra.mxu1 %v8037_v20  ;;  %v180_v32 = vld [vmem:[#allocation6 + $0x120] sm:$0xff]  ;;  %v181_v34 = vld [vmem:[#allocation6 + $0x128] sm:$0xff] }
  0x9d   :  { %1726 = vmatprep.subr.bf16.mxu0 %v8044_v21  ;;  %1808 = vmatprep.subr.bf16.mxu1 %v8046_v22  ;;  %v8060_v37 = vcombine.high %v176_v31, %v180_v32  ;;  %v8062_v38 = vcombine.high %v177_v33, %v181_v34  ;;  %v184_v39 = vld [vmem:[#allocation6 + $0x140] sm:$0xff]  ;;  %v185_v41 = vld [vmem:[#allocation6 + $0x148] sm:$0xff]  ;;  %v8059_v43 = vcombine.low %v176_v31, %v180_v32 }
  0x9e   :  { %v188_v40 = vld [vmem:[#allocation6 + $0x160] sm:$0xff]  ;;  %v189_v42 = vld [vmem:[#allocation6 + $0x168] sm:$0xff]  ;;  %v8061_v44 = vcombine.low %v177_v33, %v181_v34 }
  0x9f   :  { %v8068_v45 = vcombine.high %v184_v39, %v188_v40  ;;  %v8070_v46 = vcombine.high %v185_v41, %v189_v42  ;;  %v192_v47 = vld [vmem:[#allocation6 + $0x180] sm:$0xff]  ;;  %v193_v49 = vld [vmem:[#allocation6 + $0x188] sm:$0xff]  ;;  %v8067_v51 = vcombine.low %v184_v39, %v188_v40  ;;  %v8069_v52 = vcombine.low %v185_v41, %v189_v42 }
  0xa0   :  { %1727 = vmatpush1.bf16.msra.mxu0 %v8043_v27  ;;  %1809 = vmatpush1.bf16.msra.mxu1 %v8045_v28  ;;  %v196_v48 = vld [vmem:[#allocation6 + $0x1a0] sm:$0xff]  ;;  %v197_v50 = vld [vmem:[#allocation6 + $0x1a8] sm:$0xff] }
  0xa1   :  { %1728 = vmatprep.subr.bf16.mxu0 %v8052_v29  ;;  %1810 = vmatprep.subr.bf16.mxu1 %v8054_v30  ;;  %v8076_v53 = vcombine.high %v192_v47, %v196_v48  ;;  %v137_v54 = vld [vmem:[#allocation3 + $0x8] sm:$0xff]  ;;  %v8078_v55 = vcombine.high %v193_v49, %v197_v50  ;;  %v200_v56 = vld [vmem:[#allocation6 + $0x1c0] sm:$0xff]  ;;  %v8075_v61 = vcombine.low %v192_v47, %v196_v48 }
  0xa2   :  { %v204_v57 = vld [vmem:[#allocation6 + $0x1e0] sm:$0xff]  ;;  %v10038_v58 = vpack.c.bf16 %v137_v54, %v137_v54  ;;  %v201_v59 = vld [vmem:[#allocation6 + $0x1c8] sm:$0xff]  ;;  %v8077_v62 = vcombine.low %v193_v49, %v197_v50 }
  0xa3   :  { %v205_v60 = vld [vmem:[#allocation6 + $0x1e8] sm:$0xff]  ;;  %v8084_v63 = vcombine.high %v200_v56, %v204_v57  ;;  %v208_v1 = vld [vmem:[#allocation6 + $0x200] sm:$0xff]  ;;  %v8083_v5 = vcombine.low %v200_v56, %v204_v57 }
  0xa4   :  { %1729 = vmatpush1.bf16.msra.mxu0 %v8051_v35  ;;  %1811 = vmatpush1.bf16.msra.mxu1 %v8053_v36  ;;  %v8086_v0 = vcombine.high %v201_v59, %v205_v60  ;;  %v212_v2 = vld [vmem:[#allocation6 + $0x220] sm:$0xff]  ;;  %v209_v3 = vld [vmem:[#allocation6 + $0x208] sm:$0xff]  ;;  %v8085_v6 = vcombine.low %v201_v59, %v205_v60 }
  0xa5   :  { %1730 = vmatprep.subr.bf16.mxu0 %v8060_v37  ;;  %1812 = vmatprep.subr.bf16.mxu1 %v8062_v38  ;;  %v213_v4 = vld [vmem:[#allocation6 + $0x228] sm:$0xff]  ;;  %v8092_v7 = vcombine.high %v208_v1, %v212_v2  ;;  %v216_v9 = vld [vmem:[#allocation6 + $0x240] sm:$0xff]  ;;  %v8091_v13 = vcombine.low %v208_v1, %v212_v2 }
  0xa6   :  { %1754 = vmatprep.mubr.bf16.mxu0 %v10038_v58  ;;  %1836 = vmatprep.mubr.bf16.mxu1 %v10038_v58  ;;  %v8094_v8 = vcombine.high %v209_v3, %v213_v4  ;;  %v220_v10 = vld [vmem:[#allocation6 + $0x260] sm:$0xff]  ;;  %v217_v11 = vld [vmem:[#allocation6 + $0x248] sm:$0xff]  ;;  %v8093_v14 = vcombine.low %v209_v3, %v213_v4 }
  0xa7   :  { %v221_v12 = vld [vmem:[#allocation6 + $0x268] sm:$0xff]  ;;  %v8100_v15 = vcombine.high %v216_v9, %v220_v10  ;;  %v224_v17 = vld [vmem:[#allocation6 + $0x280] sm:$0xff]  ;;  %v8099_v21 = vcombine.low %v216_v9, %v220_v10 }
  0xa8   :  { %1731 = vmatpush1.bf16.msra.mxu0 %v8059_v43  ;;  %1813 = vmatpush1.bf16.msra.mxu1 %v8061_v44  ;;  %v8102_v16 = vcombine.high %v217_v11, %v221_v12  ;;  %v228_v18 = vld [vmem:[#allocation6 + $0x2a0] sm:$0xff]  ;;  %v225_v19 = vld [vmem:[#allocation6 + $0x288] sm:$0xff]  ;;  %v8101_v22 = vcombine.low %v217_v11, %v221_v12 }
  0xa9   :  { %1732 = vmatprep.subr.bf16.mxu0 %v8068_v45  ;;  %1814 = vmatprep.subr.bf16.mxu1 %v8070_v46  ;;  %v229_v20 = vld [vmem:[#allocation6 + $0x2a8] sm:$0xff]  ;;  %v8108_v23 = vcombine.high %v224_v17, %v228_v18  ;;  %v232_v25 = vld [vmem:[#allocation6 + $0x2c0] sm:$0xff]  ;;  %v8107_v29 = vcombine.low %v224_v17, %v228_v18 }
  0xaa   :  { %v8110_v24 = vcombine.high %v225_v19, %v229_v20  ;;  %v236_v26 = vld [vmem:[#allocation6 + $0x2e0] sm:$0xff]  ;;  %v233_v27 = vld [vmem:[#allocation6 + $0x2c8] sm:$0xff]  ;;  %v8109_v30 = vcombine.low %v225_v19, %v229_v20 }
  0xab   :  { %v237_v28 = vld [vmem:[#allocation6 + $0x2e8] sm:$0xff]  ;;  %v8116_v31 = vcombine.high %v232_v25, %v236_v26  ;;  %v240_v33 = vld [vmem:[#allocation6 + $0x300] sm:$0xff]  ;;  %v8115_v37 = vcombine.low %v232_v25, %v236_v26 }
  0xac   :  { %1733 = vmatpush1.bf16.msra.mxu0 %v8067_v51  ;;  %1815 = vmatpush1.bf16.msra.mxu1 %v8069_v52  ;;  %v8118_v32 = vcombine.high %v233_v27, %v237_v28  ;;  %v244_v34 = vld [vmem:[#allocation6 + $0x320] sm:$0xff]  ;;  %v241_v35 = vld [vmem:[#allocation6 + $0x308] sm:$0xff]  ;;  %v8117_v38 = vcombine.low %v233_v27, %v237_v28 }
  0xad   :  { %1734 = vmatprep.subr.bf16.mxu0 %v8076_v53  ;;  %1816 = vmatprep.subr.bf16.mxu1 %v8078_v55  ;;  %v245_v36 = vld [vmem:[#allocation6 + $0x328] sm:$0xff]  ;;  %v8124_v39 = vcombine.high %v240_v33, %v244_v34  ;;  %v248_v41 = vld [vmem:[#allocation6 + $0x340] sm:$0xff]  ;;  %v8123_v45 = vcombine.low %v240_v33, %v244_v34 }
  0xae   :  { %v8126_v40 = vcombine.high %v241_v35, %v245_v36  ;;  %v252_v42 = vld [vmem:[#allocation6 + $0x360] sm:$0xff]  ;;  %v249_v43 = vld [vmem:[#allocation6 + $0x348] sm:$0xff]  ;;  %v8125_v46 = vcombine.low %v241_v35, %v245_v36 }
  0xaf   :  { %v253_v44 = vld [vmem:[#allocation6 + $0x368] sm:$0xff]  ;;  %v8132_v47 = vcombine.high %v248_v41, %v252_v42  ;;  %v256_v49 = vld [vmem:[#allocation6 + $0x380] sm:$0xff]  ;;  %v8131_v53 = vcombine.low %v248_v41, %v252_v42 }
  0xb0   :  { %1735 = vmatpush1.bf16.msra.mxu0 %v8075_v61  ;;  %1817 = vmatpush1.bf16.msra.mxu1 %v8077_v62  ;;  %v8134_v48 = vcombine.high %v249_v43, %v253_v44  ;;  %v260_v50 = vld [vmem:[#allocation6 + $0x3a0] sm:$0xff]  ;;  %v257_v51 = vld [vmem:[#allocation6 + $0x388] sm:$0xff]  ;;  %v8133_v54 = vcombine.low %v249_v43, %v253_v44 }
  0xb1   :  { %1736 = vmatprep.subr.bf16.mxu0 %v8084_v63  ;;  %1818 = vmatprep.subr.bf16.mxu1 %v8086_v0  ;;  %v261_v52 = vld [vmem:[#allocation6 + $0x3a8] sm:$0xff]  ;;  %v8140_v55 = vcombine.high %v256_v49, %v260_v50  ;;  %v264_v57 = vld [vmem:[#allocation6 + $0x3c0] sm:$0xff]  ;;  %v8139_v62 = vcombine.low %v256_v49, %v260_v50 }
  0xb2   :  { %v8142_v56 = vcombine.high %v257_v51, %v261_v52  ;;  %v268_v59 = vld [vmem:[#allocation6 + $0x3e0] sm:$0xff]  ;;  %v265_v60 = vld [vmem:[#allocation6 + $0x3c8] sm:$0xff]  ;;  %v8141_v63 = vcombine.low %v257_v51, %v261_v52 }
  0xb3   :  { %v269_v61 = vld [vmem:[#allocation6 + $0x3e8] sm:$0xff]  ;;  %v8148_v0 = vcombine.high %v264_v57, %v268_v59  ;;  %v272_v2 = vld [vmem:[#allocation6 + $0x400] sm:$0xff] }
  0xb4   :  { %1737 = vmatpush1.bf16.msra.mxu0 %v8083_v5  ;;  %1819 = vmatpush1.bf16.msra.mxu1 %v8085_v6  ;;  %v8150_v1 = vcombine.high %v265_v60, %v269_v61  ;;  %v276_v3 = vld [vmem:[#allocation6 + $0x420] sm:$0xff]  ;;  %v273_v4 = vld [vmem:[#allocation6 + $0x408] sm:$0xff]  ;;  %v8147_v6 = vcombine.low %v264_v57, %v268_v59 }
  0xb5   :  { %1738 = vmatprep.subr.bf16.mxu0 %v8092_v7  ;;  %1820 = vmatprep.subr.bf16.mxu1 %v8094_v8  ;;  %v277_v5 = vld [vmem:[#allocation6 + $0x428] sm:$0xff]  ;;  %v136_v7 = vld [vmem:[#allocation3] sm:$0xff]  ;;  %v8149_v8 = vcombine.low %v265_v60, %v269_v61  ;;  %v8156_v9 = vcombine.high %v272_v2, %v276_v3  ;;  %v8155_v17 = vcombine.low %v272_v2, %v276_v3 }
  0xb6   :  { %v8158_v10 = vcombine.high %v273_v4, %v277_v5  ;;  %v280_v11 = vld [vmem:[#allocation6 + $0x440] sm:$0xff]  ;;  %v8157_v18 = vcombine.low %v273_v4, %v277_v5  ;;  %v301_v33 = vld [vmem:[#allocation6 + $0x4e8] sm:$0xff] }
  0xb7   :  { %v284_v12 = vld [vmem:[#allocation6 + $0x460] sm:$0xff]  ;;  %v309_v41 = vld [vmem:[#allocation6 + $0x528] sm:$0xff] }
  0xb8   :  { %1739 = vmatpush1.bf16.msra.mxu0 %v8091_v13  ;;  %1821 = vmatpush1.bf16.msra.mxu1 %v8093_v14  ;;  %v10042_v13 = vpack.c.bf16 %v136_v7, %v136_v7  ;;  %v281_v14 = vld [vmem:[#allocation6 + $0x448] sm:$0xff]  ;;  %v8164_v19 = vcombine.high %v280_v11, %v284_v12  ;;  %v288_v20 = vld [vmem:[#allocation6 + $0x480] sm:$0xff]  ;;  %v8163_v26 = vcombine.low %v280_v11, %v284_v12 }
  0xb9   :  { %1740 = vmatprep.subr.bf16.mxu0 %v8100_v15  ;;  %1822 = vmatprep.subr.bf16.mxu1 %v8102_v16  ;;  %v285_v15 = vld [vmem:[#allocation6 + $0x468] sm:$0xff]  ;;  %v139_v16 = vld [vmem:[#allocation3 + $0x18] sm:$0xff]  ;;  %v340_v7 = vld [vmem:[#allocation6 + $0x620] sm:$0xff] }
  0xba   :  { %v10044_v25 = vpack.c.bf16 %v139_v16, %v139_v16  ;;  %v8165_v27 = vcombine.low %v281_v14, %v285_v15  ;;  %v317_v49 = vld [vmem:[#allocation6 + $0x568] sm:$0xff]  ;;  %v348_v16 = vld [vmem:[#allocation6 + $0x660] sm:$0xff] }
  0xbb   :  { %v325_v57 = vld [vmem:[#allocation6 + $0x5a8] sm:$0xff] }
  0xbc   :  { %1741 = vmatpush1.bf16.msra.mxu0 %v8099_v21  ;;  %1823 = vmatpush1.bf16.msra.mxu1 %v8101_v22  ;;  %v292_v21 = vld [vmem:[#allocation6 + $0x4a0] sm:$0xff]  ;;  %v8166_v22 = vcombine.high %v281_v14, %v285_v15  ;;  %v333_v2 = vld [vmem:[#allocation6 + $0x5e8] sm:$0xff] }
  0xbd   :  { %1742 = vmatprep.subr.bf16.mxu0 %v8108_v23  ;;  %1824 = vmatprep.subr.bf16.mxu1 %v8110_v24  ;;  %v289_v23 = vld [vmem:[#allocation6 + $0x488] sm:$0xff]  ;;  %v8172_v28 = vcombine.high %v288_v20, %v292_v21  ;;  %v8171_v34 = vcombine.low %v288_v20, %v292_v21  ;;  %v344_v15 = vld [vmem:[#allocation6 + $0x640] sm:$0xff] }
  0xbe   :  { %v293_v24 = vld [vmem:[#allocation6 + $0x4a8] sm:$0xff] }
  0xbf   :  { %v8173_v35 = vcombine.low %v289_v23, %v293_v24 }
  0xc0   :  { %1743 = vmatpush1.bf16.msra.mxu0 %v8107_v29  ;;  %1825 = vmatpush1.bf16.msra.mxu1 %v8109_v30  ;;  %v296_v29 = vld [vmem:[#allocation6 + $0x4c0] sm:$0xff] }
  0xc1   :  { %1744 = vmatprep.subr.bf16.mxu0 %v8116_v31  ;;  %1826 = vmatprep.subr.bf16.mxu1 %v8118_v32  ;;  %v300_v30 = vld [vmem:[#allocation6 + $0x4e0] sm:$0xff]  ;;  %v297_v31 = vld [vmem:[#allocation6 + $0x4c8] sm:$0xff]  ;;  %v8174_v32 = vcombine.high %v289_v23, %v293_v24 }
  0xc2   :  { %v8180_v36 = vcombine.high %v296_v29, %v300_v30  ;;  %v8179_v42 = vcombine.low %v296_v29, %v300_v30  ;;  %v8181_v43 = vcombine.low %v297_v31, %v301_v33  ;;  %v352_v23 = vld [vmem:[#allocation6 + $0x680] sm:$0xff]  ;;  %v8227_v29 = vcombine.low %v344_v15, %v348_v16 }
  0xc3   :  { %v356_v24 = vld [vmem:[#allocation6 + $0x6a0] sm:$0xff] }
  0xc4   :  { %1745 = vmatpush1.bf16.msra.mxu0 %v8115_v37  ;;  %1827 = vmatpush1.bf16.msra.mxu1 %v8117_v38  ;;  %v304_v37 = vld [vmem:[#allocation6 + $0x500] sm:$0xff] }
  0xc5   :  { %1746 = vmatprep.subr.bf16.mxu0 %v8124_v39  ;;  %1828 = vmatprep.subr.bf16.mxu1 %v8126_v40  ;;  %v308_v38 = vld [vmem:[#allocation6 + $0x520] sm:$0xff]  ;;  %v305_v39 = vld [vmem:[#allocation6 + $0x508] sm:$0xff]  ;;  %v8182_v40 = vcombine.high %v297_v31, %v301_v33  ;;  %v8236_v31 = vcombine.high %v352_v23, %v356_v24 }
  0xc6   :  { %v8188_v44 = vcombine.high %v304_v37, %v308_v38  ;;  %v8187_v50 = vcombine.low %v304_v37, %v308_v38  ;;  %v8189_v51 = vcombine.low %v305_v39, %v309_v41  ;;  %v364_v33 = vld [vmem:[#allocation6 + $0x6e0] sm:$0xff]  ;;  %v8235_v37 = vcombine.low %v352_v23, %v356_v24  ;;  %v159_v23 = vld [vmem:[#allocation6 + $0x78] sm:$0xff] }
  0xc8   :  { %1747 = vmatpush1.bf16.msra.mxu0 %v8123_v45  ;;  %1829 = vmatpush1.bf16.msra.mxu1 %v8125_v46  ;;  %v312_v45 = vld [vmem:[#allocation6 + $0x540] sm:$0xff] }
  0xc9   :  { %1748 = vmatprep.subr.bf16.mxu0 %v8132_v47  ;;  %1830 = vmatprep.subr.bf16.mxu1 %v8134_v48  ;;  %v316_v46 = vld [vmem:[#allocation6 + $0x560] sm:$0xff]  ;;  %v313_v47 = vld [vmem:[#allocation6 + $0x548] sm:$0xff]  ;;  %v8190_v48 = vcombine.high %v305_v39, %v309_v41 }
  0xca   :  { %v8196_v52 = vcombine.high %v312_v45, %v316_v46  ;;  %v8195_v59 = vcombine.low %v312_v45, %v316_v46  ;;  %v8197_v60 = vcombine.low %v313_v47, %v317_v49  ;;  %v372_v41 = vld [vmem:[#allocation6 + $0x720] sm:$0xff] }
  0xcc   :  { %1749 = vmatpush1.bf16.msra.mxu0 %v8131_v53  ;;  %1831 = vmatpush1.bf16.msra.mxu1 %v8133_v54  ;;  %v320_v53 = vld [vmem:[#allocation6 + $0x580] sm:$0xff] }
  0xcd   :  { %1750 = vmatprep.subr.bf16.mxu0 %v8140_v55  ;;  %1832 = vmatprep.subr.bf16.mxu1 %v8142_v56  ;;  %v324_v54 = vld [vmem:[#allocation6 + $0x5a0] sm:$0xff]  ;;  %v321_v55 = vld [vmem:[#allocation6 + $0x588] sm:$0xff]  ;;  %v8198_v56 = vcombine.high %v313_v47, %v317_v49 }
  0xce   :  { %v8204_v61 = vcombine.high %v320_v53, %v324_v54  ;;  %v8203_v3 = vcombine.low %v320_v53, %v324_v54  ;;  %v8205_v4 = vcombine.low %v321_v55, %v325_v57  ;;  %v380_v49 = vld [vmem:[#allocation6 + $0x760] sm:$0xff] }
  0xd0   :  { %1751 = vmatpush1.bf16.msra.mxu0 %v8139_v62  ;;  %1833 = vmatpush1.bf16.msra.mxu1 %v8141_v63  ;;  %v328_v62 = vld [vmem:[#allocation6 + $0x5c0] sm:$0xff] }
  0xd1   :  { %1752 = vmatprep.subr.bf16.mxu0 %v8148_v0  ;;  %1834 = vmatprep.subr.bf16.mxu1 %v8150_v1  ;;  %v332_v63 = vld [vmem:[#allocation6 + $0x5e0] sm:$0xff]  ;;  %v329_v0 = vld [vmem:[#allocation6 + $0x5c8] sm:$0xff]  ;;  %v8206_v1 = vcombine.high %v321_v55, %v325_v57 }
  0xd2   :  { %v8212_v5 = vcombine.high %v328_v62, %v332_v63  ;;  %v8211_v11 = vcombine.low %v328_v62, %v332_v63  ;;  %v8213_v12 = vcombine.low %v329_v0, %v333_v2  ;;  %v388_v57 = vld [vmem:[#allocation6 + $0x7a0] sm:$0xff] }
  0xd4   :  { %1753 = vmatpush1.bf16.msra.mxu0 %v8147_v6  ;;  %1835 = vmatpush1.bf16.msra.mxu1 %v8149_v8  ;;  %v336_v6 = vld [vmem:[#allocation6 + $0x600] sm:$0xff]  ;;  %v337_v8 = vld [vmem:[#allocation6 + $0x608] sm:$0xff] }
  0xd5   :  { %1763 = vmatprep.subr.bf16.mxu0 %v8156_v9  ;;  %1845 = vmatprep.subr.bf16.mxu1 %v8158_v10  ;;  %v8214_v9 = vcombine.high %v329_v0, %v333_v2  ;;  %v341_v10 = vld [vmem:[#allocation6 + $0x628] sm:$0xff]  ;;  %v8220_v14 = vcombine.high %v336_v6, %v340_v7  ;;  %v8219_v20 = vcombine.low %v336_v6, %v340_v7  ;;  %v396_v2 = vld [vmem:[#allocation6 + $0x7e0] sm:$0xff] }
  0xd6   :  { %v8221_v21 = vcombine.low %v337_v8, %v341_v10 }
  0xd7   :  { %1755 = vmatmul.mubr.bf16.vlgmr.msra.gmra.mrb[0].mxu0 %v10042_v13  ;;  %1837 = vmatmul.mubr.bf16.vlgmr.msra.gmra.mrb[0].mxu1 %v10042_v13 }
  0xd8   :  { %1764 = vmatpush1.bf16.msra.mxu0 %v8155_v17  ;;  %1846 = vmatpush1.bf16.msra.mxu1 %v8157_v18  ;;  %v345_v17 = vld [vmem:[#allocation6 + $0x648] sm:$0xff]  ;;  %v8222_v18 = vcombine.high %v337_v8, %v341_v10  ;;  %v150_v10 = vld [vmem:[#allocation6 + $0x30] sm:$0xff] }
  0xd9   :  { %1765 = vmatprep.subr.bf16.mxu0 %v8164_v19  ;;  %1847 = vmatprep.subr.bf16.mxu1 %v8166_v22  ;;  %v349_v19 = vld [vmem:[#allocation6 + $0x668] sm:$0xff]  ;;  %v8228_v22 = vcombine.high %v344_v15, %v348_v16  ;;  %v151_v15 = vld [vmem:[#allocation6 + $0x38] sm:$0xff] }
  0xda   :  { %1795 = vmatprep.mubr.bf16.mxu0 %v10044_v25  ;;  %1877 = vmatprep.mubr.bf16.mxu1 %v10044_v25  ;;  %v8229_v30 = vcombine.low %v345_v17, %v349_v19 }
  0xdc   :  { %1766 = vmatpush1.bf16.msra.mxu0 %v8163_v26  ;;  %1848 = vmatpush1.bf16.msra.mxu1 %v8165_v27  ;;  %v353_v26 = vld [vmem:[#allocation6 + $0x688] sm:$0xff]  ;;  %v8230_v27 = vcombine.high %v345_v17, %v349_v19  ;;  %v154_v19 = vld [vmem:[#allocation6 + $0x50] sm:$0xff] }
  0xdd   :  { %1767 = vmatprep.subr.bf16.mxu0 %v8172_v28  ;;  %1849 = vmatprep.subr.bf16.mxu1 %v8174_v32  ;;  %v357_v28 = vld [vmem:[#allocation6 + $0x6a8] sm:$0xff]  ;;  %v360_v32 = vld [vmem:[#allocation6 + $0x6c0] sm:$0xff] }
  0xde   :  { %v8237_v38 = vcombine.low %v353_v26, %v357_v28  ;;  %v8244_v39 = vcombine.high %v360_v32, %v364_v33  ;;  %v8243_v45 = vcombine.low %v360_v32, %v364_v33  ;;  %v167_v32 = vld [vmem:[#allocation6 + $0xb8] sm:$0xff] }
  0xe0   :  { %1768 = vmatpush1.bf16.msra.mxu0 %v8171_v34  ;;  %1850 = vmatpush1.bf16.msra.mxu1 %v8173_v35  ;;  %v361_v34 = vld [vmem:[#allocation6 + $0x6c8] sm:$0xff]  ;;  %v8238_v35 = vcombine.high %v353_v26, %v357_v28  ;;  %v166_v28 = vld [vmem:[#allocation6 + $0xb0] sm:$0xff] }
  0xe1   :  { %1769 = vmatprep.subr.bf16.mxu0 %v8180_v36  ;;  %1851 = vmatprep.subr.bf16.mxu1 %v8182_v40  ;;  %v365_v36 = vld [vmem:[#allocation6 + $0x6e8] sm:$0xff]  ;;  %v368_v40 = vld [vmem:[#allocation6 + $0x700] sm:$0xff] }
  0xe2   :  { %v8245_v46 = vcombine.low %v361_v34, %v365_v36  ;;  %v8252_v47 = vcombine.high %v368_v40, %v372_v41  ;;  %v8251_v53 = vcombine.low %v368_v40, %v372_v41  ;;  %v171_v40 = vld [vmem:[#allocation6 + $0xd8] sm:$0xff] }
  0xe3   :  { %v175_v41 = vld [vmem:[#allocation6 + $0xf8] sm:$0xff] }
  0xe4   :  { %1770 = vmatpush1.bf16.msra.mxu0 %v8179_v42  ;;  %1852 = vmatpush1.bf16.msra.mxu1 %v8181_v43  ;;  %v369_v42 = vld [vmem:[#allocation6 + $0x708] sm:$0xff]  ;;  %v8246_v43 = vcombine.high %v361_v34, %v365_v36 }
  0xe5   :  { %1771 = vmatprep.subr.bf16.mxu0 %v8188_v44  ;;  %1853 = vmatprep.subr.bf16.mxu1 %v8190_v48  ;;  %v373_v44 = vld [vmem:[#allocation6 + $0x728] sm:$0xff]  ;;  %v376_v48 = vld [vmem:[#allocation6 + $0x740] sm:$0xff] }
  0xe6   :  { %v8253_v54 = vcombine.low %v369_v42, %v373_v44  ;;  %v8260_v55 = vcombine.high %v376_v48, %v380_v49  ;;  %v8259_v62 = vcombine.low %v376_v48, %v380_v49  ;;  %v8058_v48 = vcombine.high %v171_v40, %v175_v41  ;;  %v183_v49 = vld [vmem:[#allocation6 + $0x138] sm:$0xff] }
  0xe8   :  { %1772 = vmatpush1.bf16.msra.mxu0 %v8187_v50  ;;  %1854 = vmatpush1.bf16.msra.mxu1 %v8189_v51  ;;  %v377_v50 = vld [vmem:[#allocation6 + $0x748] sm:$0xff]  ;;  %v8254_v51 = vcombine.high %v369_v42, %v373_v44 }
  0xe9   :  { %1773 = vmatprep.subr.bf16.mxu0 %v8196_v52  ;;  %1855 = vmatprep.subr.bf16.mxu1 %v8198_v56  ;;  %v381_v52 = vld [vmem:[#allocation6 + $0x768] sm:$0xff]  ;;  %v384_v56 = vld [vmem:[#allocation6 + $0x780] sm:$0xff] }
  0xea   :  { %v8261_v63 = vcombine.low %v377_v50, %v381_v52  ;;  %v8268_v0 = vcombine.high %v384_v56, %v388_v57  ;;  %v8267_v6 = vcombine.low %v384_v56, %v388_v57  ;;  %v191_v56 = vld [vmem:[#allocation6 + $0x178] sm:$0xff] }
  0xec   :  { %1774 = vmatpush1.bf16.msra.mxu0 %v8195_v59  ;;  %1856 = vmatpush1.bf16.msra.mxu1 %v8197_v60  ;;  %v385_v59 = vld [vmem:[#allocation6 + $0x788] sm:$0xff]  ;;  %v8262_v60 = vcombine.high %v377_v50, %v381_v52 }
  0xed   :  { %1775 = vmatprep.subr.bf16.mxu0 %v8204_v61  ;;  %1857 = vmatprep.subr.bf16.mxu1 %v8206_v1  ;;  %v389_v61 = vld [vmem:[#allocation6 + $0x7a8] sm:$0xff]  ;;  %v392_v1 = vld [vmem:[#allocation6 + $0x7c0] sm:$0xff] }
  0xee   :  { %v8269_v7 = vcombine.low %v385_v59, %v389_v61  ;;  %v8276_v8 = vcombine.high %v392_v1, %v396_v2  ;;  %v8275_v16 = vcombine.low %v392_v1, %v396_v2  ;;  %v199_v1 = vld [vmem:[#allocation6 + $0x1b8] sm:$0xff] }
  0xf0   :  { %1776 = vmatpush1.bf16.msra.mxu0 %v8203_v3  ;;  %1858 = vmatpush1.bf16.msra.mxu1 %v8205_v4  ;;  %v393_v3 = vld [vmem:[#allocation6 + $0x7c8] sm:$0xff]  ;;  %v8270_v4 = vcombine.high %v385_v59, %v389_v61  ;;  %v194_v61 = vld [vmem:[#allocation6 + $0x190] sm:$0xff] }
  0xf1   :  { %1777 = vmatprep.subr.bf16.mxu0 %v8212_v5  ;;  %1859 = vmatprep.subr.bf16.mxu1 %v8214_v9  ;;  %v397_v5 = vld [vmem:[#allocation6 + $0x7e8] sm:$0xff]  ;;  %v146_v9 = vld [vmem:[#allocation6 + $0x10] sm:$0xff] }
  0xf2   :  { %v8277_v17 = vcombine.low %v393_v3, %v397_v5  ;;  %v8031_v26 = vcombine.low %v146_v9, %v150_v10 }
  0xf4   :  { %1778 = vmatpush1.bf16.msra.mxu0 %v8211_v11  ;;  %1860 = vmatpush1.bf16.msra.mxu1 %v8213_v12  ;;  %v147_v11 = vld [vmem:[#allocation6 + $0x18] sm:$0xff]  ;;  %v8278_v12 = vcombine.high %v393_v3, %v397_v5  ;;  %v202_v5 = vld [vmem:[#allocation6 + $0x1d0] sm:$0xff] }
  0xf5   :  { %1779 = vmatprep.subr.bf16.mxu0 %v8220_v14  ;;  %1861 = vmatprep.subr.bf16.mxu1 %v8222_v18  ;;  %v138_v14 = vld [vmem:[#allocation3 + $0x10] sm:$0xff]  ;;  %v8032_v18 = vcombine.high %v146_v9, %v150_v10  ;;  %v207_v9 = vld [vmem:[#allocation6 + $0x1f8] sm:$0xff] }
  0xf6   :  { %v10050_v24 = vpack.c.bf16 %v138_v14, %v138_v14  ;;  %v210_v14 = vld [vmem:[#allocation6 + $0x210] sm:$0xff] }
  0xf8   :  { %1780 = vmatpush1.bf16.msra.mxu0 %v8219_v20  ;;  %1862 = vmatpush1.bf16.msra.mxu1 %v8221_v21  ;;  %v158_v20 = vld [vmem:[#allocation6 + $0x70] sm:$0xff]  ;;  %v155_v21 = vld [vmem:[#allocation6 + $0x58] sm:$0xff] }
  0xf9   :  { %1781 = vmatprep.subr.bf16.mxu0 %v8228_v22  ;;  %1863 = vmatprep.subr.bf16.mxu1 %v8230_v27  ;;  %v8034_v22 = vcombine.high %v147_v11, %v151_v15  ;;  %v162_v27 = vld [vmem:[#allocation6 + $0x90] sm:$0xff]  ;;  %v8042_v33 = vcombine.high %v155_v21, %v159_v23  ;;  %v8039_v34 = vcombine.low %v154_v19, %v158_v20 }
  0xfa   :  { %v8048_v36 = vcombine.high %v162_v27, %v166_v28  ;;  %v8047_v42 = vcombine.low %v162_v27, %v166_v28  ;;  %v223_v27 = vld [vmem:[#allocation6 + $0x278] sm:$0xff] }
  0xfc   :  { %1782 = vmatpush1.bf16.msra.mxu0 %v8227_v29  ;;  %1864 = vmatpush1.bf16.msra.mxu1 %v8229_v30  ;;  %v8033_v29 = vcombine.low %v147_v11, %v151_v15  ;;  %v8040_v30 = vcombine.high %v154_v19, %v158_v20  ;;  %v214_v15 = vld [vmem:[#allocation6 + $0x230] sm:$0xff] }
  0xfd   :  { %1783 = vmatprep.subr.bf16.mxu0 %v8236_v31  ;;  %1865 = vmatprep.subr.bf16.mxu1 %v8238_v35  ;;  %v163_v31 = vld [vmem:[#allocation6 + $0x98] sm:$0xff]  ;;  %v8041_v35 = vcombine.low %v155_v21, %v159_v23  ;;  %v218_v20 = vld [vmem:[#allocation6 + $0x250] sm:$0xff]  ;;  %v8096_v23 = vcombine.high %v210_v14, %v214_v15 }
  0xfe   :  { %v222_v21 = vld [vmem:[#allocation6 + $0x270] sm:$0xff] }
 0x100   :  { %1784 = vmatpush1.bf16.msra.mxu0 %v8235_v37  ;;  %1866 = vmatpush1.bf16.msra.mxu1 %v8237_v38  ;;  %v170_v37 = vld [vmem:[#allocation6 + $0xd0] sm:$0xff] }
 0x101   :  { %1785 = vmatprep.subr.bf16.mxu0 %v8244_v39  ;;  %1867 = vmatprep.subr.bf16.mxu1 %v8246_v43  ;;  %v174_v38 = vld [vmem:[#allocation6 + $0xf0] sm:$0xff]  ;;  %v8050_v39 = vcombine.high %v163_v31, %v167_v32  ;;  %v8049_v43 = vcombine.low %v163_v31, %v167_v32 }
 0x102   :  { %v8056_v44 = vcombine.high %v170_v37, %v174_v38  ;;  %v8055_v50 = vcombine.low %v170_v37, %v174_v38  ;;  %v230_v31 = vld [vmem:[#allocation6 + $0x2b0] sm:$0xff]  ;;  %v8103_v37 = vcombine.low %v218_v20, %v222_v21 }
 0x103   :  { %v234_v38 = vld [vmem:[#allocation6 + $0x2d0] sm:$0xff] }
 0x104   :  { %1786 = vmatpush1.bf16.msra.mxu0 %v8243_v45  ;;  %1868 = vmatpush1.bf16.msra.mxu1 %v8245_v46  ;;  %v178_v45 = vld [vmem:[#allocation6 + $0x110] sm:$0xff] }
 0x105   :  { %1787 = vmatprep.subr.bf16.mxu0 %v8252_v47  ;;  %1869 = vmatprep.subr.bf16.mxu1 %v8254_v51  ;;  %v182_v46 = vld [vmem:[#allocation6 + $0x130] sm:$0xff]  ;;  %v179_v47 = vld [vmem:[#allocation6 + $0x118] sm:$0xff]  ;;  %v8057_v51 = vcombine.low %v171_v40, %v175_v41 }
 0x106   :  { %v8064_v52 = vcombine.high %v178_v45, %v182_v46  ;;  %v8063_v57 = vcombine.low %v178_v45, %v182_v46  ;;  %v8065_v59 = vcombine.low %v179_v47, %v183_v49  ;;  %v242_v46 = vld [vmem:[#allocation6 + $0x310] sm:$0xff] }
 0x108   :  { %1788 = vmatpush1.bf16.msra.mxu0 %v8251_v53  ;;  %1870 = vmatpush1.bf16.msra.mxu1 %v8253_v54  ;;  %v186_v53 = vld [vmem:[#allocation6 + $0x150] sm:$0xff]  ;;  %v187_v54 = vld [vmem:[#allocation6 + $0x158] sm:$0xff] }
 0x109   :  { %1789 = vmatprep.subr.bf16.mxu0 %v8260_v55  ;;  %1871 = vmatprep.subr.bf16.mxu1 %v8262_v60  ;;  %v8066_v55 = vcombine.high %v179_v47, %v183_v49  ;;  %v8073_v3 = vcombine.low %v187_v54, %v191_v56  ;;  %v246_v47 = vld [vmem:[#allocation6 + $0x330] sm:$0xff] }
 0x10c   :  { %1790 = vmatpush1.bf16.msra.mxu0 %v8259_v62  ;;  %1872 = vmatpush1.bf16.msra.mxu1 %v8261_v63  ;;  %v198_v62 = vld [vmem:[#allocation6 + $0x1b0] sm:$0xff]  ;;  %v195_v63 = vld [vmem:[#allocation6 + $0x198] sm:$0xff] }
 0x10d   :  { %1791 = vmatprep.subr.bf16.mxu0 %v8268_v0  ;;  %1873 = vmatprep.subr.bf16.mxu1 %v8270_v4  ;;  %v8074_v0 = vcombine.high %v187_v54, %v191_v56  ;;  %v8080_v4 = vcombine.high %v194_v61, %v198_v62  ;;  %v8079_v10 = vcombine.low %v194_v61, %v198_v62  ;;  %v254_v54 = vld [vmem:[#allocation6 + $0x370] sm:$0xff] }
 0x10e   :  { %v8081_v11 = vcombine.low %v195_v63, %v199_v1  ;;  %v8128_v56 = vcombine.high %v242_v46, %v246_v47  ;;  %v8127_v61 = vcombine.low %v242_v46, %v246_v47  ;;  %v258_v62 = vld [vmem:[#allocation6 + $0x390] sm:$0xff]  ;;  %v299_v46 = vld [vmem:[#allocation6 + $0x4d8] sm:$0xff] }
 0x10f   :  { %v303_v47 = vld [vmem:[#allocation6 + $0x4f8] sm:$0xff] }
 0x110   :  { %1792 = vmatpush1.bf16.msra.mxu0 %v8267_v6  ;;  %1874 = vmatpush1.bf16.msra.mxu1 %v8269_v7  ;;  %v206_v6 = vld [vmem:[#allocation6 + $0x1f0] sm:$0xff]  ;;  %v203_v7 = vld [vmem:[#allocation6 + $0x1d8] sm:$0xff] }
 0x111   :  { %1793 = vmatprep.subr.bf16.mxu0 %v8276_v8  ;;  %1875 = vmatprep.subr.bf16.mxu1 %v8278_v12  ;;  %v8082_v8 = vcombine.high %v195_v63, %v199_v1  ;;  %v8088_v12 = vcombine.high %v202_v5, %v206_v6  ;;  %v8087_v19 = vcombine.low %v202_v5, %v206_v6  ;;  %v262_v63 = vld [vmem:[#allocation6 + $0x3b0] sm:$0xff] }
 0x114   :  { %1794 = vmatpush1.bf16.msra.mxu0 %v8275_v16  ;;  %1876 = vmatpush1.bf16.msra.mxu1 %v8277_v17  ;;  %v211_v16 = vld [vmem:[#allocation6 + $0x218] sm:$0xff]  ;;  %v8090_v17 = vcombine.high %v203_v7, %v207_v9 }
 0x115   :  { %1886 = vmatprep.subr.bf16.mxu0 %v8032_v18  ;;  %1968 = vmatprep.subr.bf16.mxu1 %v8034_v22  ;;  %v215_v18 = vld [vmem:[#allocation6 + $0x238] sm:$0xff]  ;;  %v8089_v22 = vcombine.low %v203_v7, %v207_v9  ;;  %v8144_v7 = vcombine.high %v258_v62, %v262_v63  ;;  %v266_v9 = vld [vmem:[#allocation6 + $0x3d0] sm:$0xff] }
 0x116   :  { %v8098_v28 = vcombine.high %v211_v16, %v215_v18  ;;  %v8097_v32 = vcombine.low %v211_v16, %v215_v18  ;;  %v274_v18 = vld [vmem:[#allocation6 + $0x410] sm:$0xff] }
 0x117   :  { %1796 = vmatmul.mubr.bf16.vlgmr.msra.gmra.mrb[0].mxu0 %v10050_v24  ;;  %1878 = vmatmul.mubr.bf16.vlgmr.msra.gmra.mrb[0].mxu1 %v10050_v24 }
 0x118   :  { %1887 = vmatpush1.bf16.msra.mxu0 %v8031_v26  ;;  %1969 = vmatpush1.bf16.msra.mxu1 %v8033_v29  ;;  %v219_v26 = vld [vmem:[#allocation6 + $0x258] sm:$0xff]  ;;  %v8095_v29 = vcombine.low %v210_v14, %v214_v15  ;;  %v8143_v14 = vcombine.low %v258_v62, %v262_v63 }
 0x119   :  { %1888 = vmatprep.subr.bf16.mxu0 %v8040_v30  ;;  %1970 = vmatprep.subr.bf16.mxu1 %v8042_v33  ;;  %v226_v30 = vld [vmem:[#allocation6 + $0x290] sm:$0xff]  ;;  %v8104_v33 = vcombine.high %v218_v20, %v222_v21  ;;  %v8105_v40 = vcombine.low %v219_v26, %v223_v27  ;;  %v275_v20 = vld [vmem:[#allocation6 + $0x418] sm:$0xff] }
 0x11a   :  { %1918 = vmatprep.mubr.bf16.mxu0 %v10038_v58  ;;  %2000 = vmatprep.mubr.bf16.mxu1 %v10038_v58  ;;  %v190_v58 = vld [vmem:[#allocation6 + $0x170] sm:$0xff]  ;;  %v8112_v41 = vcombine.high %v226_v30, %v230_v31  ;;  %v8111_v45 = vcombine.low %v226_v30, %v230_v31  ;;  %v279_v21 = vld [vmem:[#allocation6 + $0x438] sm:$0xff] }
 0x11b   :  { %v8072_v60 = vcombine.high %v186_v53, %v190_v58  ;;  %v8071_v2 = vcombine.low %v186_v53, %v190_v58  ;;  %v250_v58 = vld [vmem:[#allocation6 + $0x350] sm:$0xff]  ;;  %v283_v30 = vld [vmem:[#allocation6 + $0x458] sm:$0xff] }
 0x11c   :  { %1889 = vmatpush1.bf16.msra.mxu0 %v8039_v34  ;;  %1971 = vmatpush1.bf16.msra.mxu1 %v8041_v35  ;;  %v227_v34 = vld [vmem:[#allocation6 + $0x298] sm:$0xff]  ;;  %v8136_v1 = vcombine.high %v250_v58, %v254_v54  ;;  %v8135_v5 = vcombine.low %v250_v58, %v254_v54 }
 0x11d   :  { %1890 = vmatprep.subr.bf16.mxu0 %v8048_v36  ;;  %1972 = vmatprep.subr.bf16.mxu1 %v8050_v39  ;;  %v231_v35 = vld [vmem:[#allocation6 + $0x2b8] sm:$0xff]  ;;  %v8106_v36 = vcombine.high %v219_v26, %v223_v27  ;;  %v238_v39 = vld [vmem:[#allocation6 + $0x2f0] sm:$0xff]  ;;  %v8162_v27 = vcombine.high %v275_v20, %v279_v21 }
 0x11e   :  { %v8120_v49 = vcombine.high %v234_v38, %v238_v39  ;;  %v8119_v53 = vcombine.low %v234_v38, %v238_v39  ;;  %v287_v31 = vld [vmem:[#allocation6 + $0x478] sm:$0xff] }
 0x11f   :  { %v291_v38 = vld [vmem:[#allocation6 + $0x498] sm:$0xff] }
 0x120   :  { %1891 = vmatpush1.bf16.msra.mxu0 %v8047_v42  ;;  %1973 = vmatpush1.bf16.msra.mxu1 %v8049_v43  ;;  %v235_v42 = vld [vmem:[#allocation6 + $0x2d8] sm:$0xff] }
 0x121   :  { %1892 = vmatprep.subr.bf16.mxu0 %v8056_v44  ;;  %1974 = vmatprep.subr.bf16.mxu1 %v8058_v48  ;;  %v239_v43 = vld [vmem:[#allocation6 + $0x2f8] sm:$0xff]  ;;  %v8114_v44 = vcombine.high %v227_v34, %v231_v35  ;;  %v8113_v48 = vcombine.low %v227_v34, %v231_v35  ;;  %v8170_v35 = vcombine.high %v283_v30, %v287_v31 }
 0x122   :  { %v295_v39 = vld [vmem:[#allocation6 + $0x4b8] sm:$0xff] }
 0x123   :  { %v311_v58 = vld [vmem:[#allocation6 + $0x538] sm:$0xff] }
 0x124   :  { %1893 = vmatpush1.bf16.msra.mxu0 %v8055_v50  ;;  %1975 = vmatpush1.bf16.msra.mxu1 %v8057_v51  ;;  %v243_v50 = vld [vmem:[#allocation6 + $0x318] sm:$0xff] }
 0x125   :  { %1894 = vmatprep.subr.bf16.mxu0 %v8064_v52  ;;  %1976 = vmatprep.subr.bf16.mxu1 %v8066_v55  ;;  %v247_v51 = vld [vmem:[#allocation6 + $0x338] sm:$0xff]  ;;  %v8122_v52 = vcombine.high %v235_v42, %v239_v43  ;;  %v8121_v55 = vcombine.low %v235_v42, %v239_v43  ;;  %v8178_v43 = vcombine.high %v291_v38, %v295_v39 }
 0x128   :  { %1895 = vmatpush1.bf16.msra.mxu0 %v8063_v57  ;;  %1977 = vmatpush1.bf16.msra.mxu1 %v8065_v59  ;;  %v251_v57 = vld [vmem:[#allocation6 + $0x358] sm:$0xff] }
 0x129   :  { %1896 = vmatprep.subr.bf16.mxu0 %v8072_v60  ;;  %1978 = vmatprep.subr.bf16.mxu1 %v8074_v0  ;;  %v255_v59 = vld [vmem:[#allocation6 + $0x378] sm:$0xff]  ;;  %v8130_v60 = vcombine.high %v243_v50, %v247_v51  ;;  %v8129_v0 = vcombine.low %v243_v50, %v247_v51  ;;  %v8186_v50 = vcombine.high %v299_v46, %v303_v47  ;;  %v306_v51 = vld [vmem:[#allocation6 + $0x510] sm:$0xff] }
 0x12a   :  { %v8137_v6 = vcombine.low %v251_v57, %v255_v59 }
 0x12c   :  { %1897 = vmatpush1.bf16.msra.mxu0 %v8071_v2  ;;  %1979 = vmatpush1.bf16.msra.mxu1 %v8073_v3  ;;  %v259_v2 = vld [vmem:[#allocation6 + $0x398] sm:$0xff] }
 0x12d   :  { %1898 = vmatprep.subr.bf16.mxu0 %v8080_v4  ;;  %1980 = vmatprep.subr.bf16.mxu1 %v8082_v8  ;;  %v263_v3 = vld [vmem:[#allocation6 + $0x3b8] sm:$0xff]  ;;  %v8138_v4 = vcombine.high %v251_v57, %v255_v59  ;;  %v314_v57 = vld [vmem:[#allocation6 + $0x550] sm:$0xff] }
 0x12e   :  { %v8146_v8 = vcombine.high %v259_v2, %v263_v3  ;;  %v8145_v15 = vcombine.low %v259_v2, %v263_v3  ;;  %v318_v59 = vld [vmem:[#allocation6 + $0x570] sm:$0xff] }
 0x12f   :  { %v322_v2 = vld [vmem:[#allocation6 + $0x590] sm:$0xff] }
 0x130   :  { %1899 = vmatpush1.bf16.msra.mxu0 %v8079_v10  ;;  %1981 = vmatpush1.bf16.msra.mxu1 %v8081_v11  ;;  %v270_v10 = vld [vmem:[#allocation6 + $0x3f0] sm:$0xff]  ;;  %v267_v11 = vld [vmem:[#allocation6 + $0x3d8] sm:$0xff] }
 0x131   :  { %1900 = vmatprep.subr.bf16.mxu0 %v8088_v12  ;;  %1982 = vmatprep.subr.bf16.mxu1 %v8090_v17  ;;  %v271_v12 = vld [vmem:[#allocation6 + $0x3f8] sm:$0xff]  ;;  %v8152_v16 = vcombine.high %v266_v9, %v270_v10  ;;  %v326_v3 = vld [vmem:[#allocation6 + $0x5b0] sm:$0xff] }
 0x132   :  { %v8154_v17 = vcombine.high %v267_v11, %v271_v12 }
 0x134   :  { %1901 = vmatpush1.bf16.msra.mxu0 %v8087_v19  ;;  %1983 = vmatpush1.bf16.msra.mxu1 %v8089_v22  ;;  %v278_v19 = vld [vmem:[#allocation6 + $0x430] sm:$0xff]  ;;  %v8151_v22 = vcombine.low %v266_v9, %v270_v10 }
 0x135   :  { %1902 = vmatprep.subr.bf16.mxu0 %v8096_v23  ;;  %1984 = vmatprep.subr.bf16.mxu1 %v8098_v28  ;;  %v8153_v23 = vcombine.low %v267_v11, %v271_v12  ;;  %v8160_v26 = vcombine.high %v274_v18, %v278_v19  ;;  %v282_v28 = vld [vmem:[#allocation6 + $0x450] sm:$0xff]  ;;  %v331_v12 = vld [vmem:[#allocation6 + $0x5d8] sm:$0xff] }
 0x136   :  { %v330_v10 = vld [vmem:[#allocation6 + $0x5d0] sm:$0xff] }
 0x137   :  { %v334_v11 = vld [vmem:[#allocation6 + $0x5f0] sm:$0xff] }
 0x138   :  { %1903 = vmatpush1.bf16.msra.mxu0 %v8095_v29  ;;  %1985 = vmatpush1.bf16.msra.mxu1 %v8097_v32  ;;  %v286_v29 = vld [vmem:[#allocation6 + $0x470] sm:$0xff]  ;;  %v8159_v32 = vcombine.low %v274_v18, %v278_v19 }
 0x139   :  { %1904 = vmatprep.subr.bf16.mxu0 %v8104_v33  ;;  %1986 = vmatprep.subr.bf16.mxu1 %v8106_v36  ;;  %v8161_v33 = vcombine.low %v275_v20, %v279_v21  ;;  %v8168_v34 = vcombine.high %v282_v28, %v286_v29  ;;  %v290_v36 = vld [vmem:[#allocation6 + $0x490] sm:$0xff]  ;;  %v339_v21 = vld [vmem:[#allocation6 + $0x618] sm:$0xff] }
 0x13a   :  { %v338_v19 = vld [vmem:[#allocation6 + $0x610] sm:$0xff] }
 0x13b   :  { %v342_v20 = vld [vmem:[#allocation6 + $0x630] sm:$0xff] }
 0x13c   :  { %1905 = vmatpush1.bf16.msra.mxu0 %v8103_v37  ;;  %1987 = vmatpush1.bf16.msra.mxu1 %v8105_v40  ;;  %v294_v37 = vld [vmem:[#allocation6 + $0x4b0] sm:$0xff]  ;;  %v8167_v40 = vcombine.low %v282_v28, %v286_v29 }
 0x13d   :  { %1906 = vmatprep.subr.bf16.mxu0 %v8112_v41  ;;  %1988 = vmatprep.subr.bf16.mxu1 %v8114_v44  ;;  %v8169_v41 = vcombine.low %v283_v30, %v287_v31  ;;  %v8176_v42 = vcombine.high %v290_v36, %v294_v37  ;;  %v298_v44 = vld [vmem:[#allocation6 + $0x4d0] sm:$0xff]  ;;  %v347_v31 = vld [vmem:[#allocation6 + $0x658] sm:$0xff] }
 0x13e   :  { %v346_v29 = vld [vmem:[#allocation6 + $0x650] sm:$0xff] }
 0x13f   :  { %v350_v30 = vld [vmem:[#allocation6 + $0x670] sm:$0xff] }
 0x140   :  { %1907 = vmatpush1.bf16.msra.mxu0 %v8111_v45  ;;  %1989 = vmatpush1.bf16.msra.mxu1 %v8113_v48  ;;  %v302_v45 = vld [vmem:[#allocation6 + $0x4f0] sm:$0xff]  ;;  %v8175_v48 = vcombine.low %v290_v36, %v294_v37 }
 0x141   :  { %1908 = vmatprep.subr.bf16.mxu0 %v8120_v49  ;;  %1990 = vmatprep.subr.bf16.mxu1 %v8122_v52  ;;  %v8184_v49 = vcombine.high %v298_v44, %v302_v45  ;;  %v310_v52 = vld [vmem:[#allocation6 + $0x530] sm:$0xff]  ;;  %v8183_v54 = vcombine.low %v298_v44, %v302_v45 }
 0x142   :  { %v8191_v62 = vcombine.low %v306_v51, %v310_v52  ;;  %v354_v37 = vld [vmem:[#allocation6 + $0x690] sm:$0xff] }
 0x143   :  { %v362_v45 = vld [vmem:[#allocation6 + $0x6d0] sm:$0xff] }
 0x144   :  { %1909 = vmatpush1.bf16.msra.mxu0 %v8119_v53  ;;  %1991 = vmatpush1.bf16.msra.mxu1 %v8121_v55  ;;  %v307_v53 = vld [vmem:[#allocation6 + $0x518] sm:$0xff]  ;;  %v8185_v55 = vcombine.low %v299_v46, %v303_v47  ;;  %v366_v46 = vld [vmem:[#allocation6 + $0x6f0] sm:$0xff] }
 0x145   :  { %1910 = vmatprep.subr.bf16.mxu0 %v8128_v56  ;;  %1992 = vmatprep.subr.bf16.mxu1 %v8130_v60  ;;  %v8192_v56 = vcombine.high %v306_v51, %v310_v52  ;;  %v315_v60 = vld [vmem:[#allocation6 + $0x558] sm:$0xff]  ;;  %v8193_v63 = vcombine.low %v307_v53, %v311_v58  ;;  %v370_v52 = vld [vmem:[#allocation6 + $0x710] sm:$0xff] }
 0x146   :  { %v363_v47 = vld [vmem:[#allocation6 + $0x6d8] sm:$0xff] }
 0x148   :  { %1911 = vmatpush1.bf16.msra.mxu0 %v8127_v61  ;;  %1993 = vmatpush1.bf16.msra.mxu1 %v8129_v0  ;;  %v319_v61 = vld [vmem:[#allocation6 + $0x578] sm:$0xff]  ;;  %v8200_v0 = vcombine.high %v314_v57, %v318_v59 }
 0x149   :  { %1912 = vmatprep.subr.bf16.mxu0 %v8136_v1  ;;  %1994 = vmatprep.subr.bf16.mxu1 %v8138_v4  ;;  %v8202_v1 = vcombine.high %v315_v60, %v319_v61  ;;  %v323_v4 = vld [vmem:[#allocation6 + $0x598] sm:$0xff] }
 0x14c   :  { %1913 = vmatpush1.bf16.msra.mxu0 %v8135_v5  ;;  %1995 = vmatpush1.bf16.msra.mxu1 %v8137_v6  ;;  %v327_v5 = vld [vmem:[#allocation6 + $0x5b8] sm:$0xff]  ;;  %v8199_v6 = vcombine.low %v314_v57, %v318_v59  ;;  %v378_v59 = vld [vmem:[#allocation6 + $0x750] sm:$0xff] }
 0x14d   :  { %1914 = vmatprep.subr.bf16.mxu0 %v8144_v7  ;;  %1996 = vmatprep.subr.bf16.mxu1 %v8146_v8  ;;  %v8201_v7 = vcombine.low %v315_v60, %v319_v61  ;;  %v8208_v8 = vcombine.high %v322_v2, %v326_v3  ;;  %v8210_v9 = vcombine.high %v323_v4, %v327_v5  ;;  %v382_v60 = vld [vmem:[#allocation6 + $0x770] sm:$0xff]  ;;  %v379_v61 = vld [vmem:[#allocation6 + $0x758] sm:$0xff] }
 0x150   :  { %1915 = vmatpush1.bf16.msra.mxu0 %v8143_v14  ;;  %1997 = vmatpush1.bf16.msra.mxu1 %v8145_v15  ;;  %v335_v14 = vld [vmem:[#allocation6 + $0x5f8] sm:$0xff]  ;;  %v8207_v15 = vcombine.low %v322_v2, %v326_v3  ;;  %v386_v3 = vld [vmem:[#allocation6 + $0x790] sm:$0xff] }
 0x151   :  { %1916 = vmatprep.subr.bf16.mxu0 %v8152_v16  ;;  %1998 = vmatprep.subr.bf16.mxu1 %v8154_v17  ;;  %v8209_v16 = vcombine.low %v323_v4, %v327_v5  ;;  %v8216_v17 = vcombine.high %v330_v10, %v334_v11  ;;  %v8218_v18 = vcombine.high %v331_v12, %v335_v14  ;;  %v390_v4 = vld [vmem:[#allocation6 + $0x7b0] sm:$0xff]  ;;  %v387_v5 = vld [vmem:[#allocation6 + $0x798] sm:$0xff] }
 0x154   :  { %1917 = vmatpush1.bf16.msra.mxu0 %v8151_v22  ;;  %1999 = vmatpush1.bf16.msra.mxu1 %v8153_v23  ;;  %v343_v22 = vld [vmem:[#allocation6 + $0x638] sm:$0xff]  ;;  %v8215_v23 = vcombine.low %v330_v10, %v334_v11  ;;  %v394_v11 = vld [vmem:[#allocation6 + $0x7d0] sm:$0xff] }
 0x155   :  { %1927 = vmatprep.subr.bf16.mxu0 %v8160_v26  ;;  %2009 = vmatprep.subr.bf16.mxu1 %v8162_v27  ;;  %v8217_v26 = vcombine.low %v331_v12, %v335_v14  ;;  %v8224_v27 = vcombine.high %v338_v19, %v342_v20  ;;  %v8226_v28 = vcombine.high %v339_v21, %v343_v22  ;;  %v398_v12 = vld [vmem:[#allocation6 + $0x7f0] sm:$0xff]  ;;  %v395_v14 = vld [vmem:[#allocation6 + $0x7d8] sm:$0xff] }
 0x157   :  { %1919 = vmatmul.mubr.bf16.vlgmr.msra.gmra.mrb[4].mxu0 %v10042_v13  ;;  %2001 = vmatmul.mubr.bf16.vlgmr.msra.gmra.mrb[4].mxu1 %v10042_v13  ;;  %v8177_v13 = vcombine.low %v291_v38, %v295_v39  ;;  %v358_v38 = vld [vmem:[#allocation6 + $0x6b0] sm:$0xff]  ;;  %v355_v39 = vld [vmem:[#allocation6 + $0x698] sm:$0xff] }
 0x158   :  { %1928 = vmatpush1.bf16.msra.mxu0 %v8159_v32  ;;  %2010 = vmatpush1.bf16.msra.mxu1 %v8161_v33  ;;  %v351_v32 = vld [vmem:[#allocation6 + $0x678] sm:$0xff]  ;;  %v8223_v33 = vcombine.low %v338_v19, %v342_v20  ;;  %v2122_v20 = vld [vmem:[#allocation9] sm:$0xff] }
 0x159   :  { %1929 = vmatprep.subr.bf16.mxu0 %v8168_v34  ;;  %2011 = vmatprep.subr.bf16.mxu1 %v8170_v35  ;;  %v8225_v34 = vcombine.low %v339_v21, %v343_v22  ;;  %v8232_v35 = vcombine.high %v346_v29, %v350_v30  ;;  %v8234_v36 = vcombine.high %v347_v31, %v351_v32  ;;  %v2126_v21 = vld [vmem:[#allocation9 + $0x20] sm:$0xff]  ;;  %v2123_v22 = vld [vmem:[#allocation9 + $0x8] sm:$0xff] }
 0x15a   :  { %1959 = vmatprep.mubr.bf16.mxu0 %v10044_v25  ;;  %2041 = vmatprep.mubr.bf16.mxu1 %v10044_v25  ;;  %v8194_v25 = vcombine.high %v307_v53, %v311_v58  ;;  %v374_v53 = vld [vmem:[#allocation6 + $0x730] sm:$0xff]  ;;  %v371_v58 = vld [vmem:[#allocation6 + $0x718] sm:$0xff] }
 0x15c   :  { %1930 = vmatpush1.bf16.msra.mxu0 %v8167_v40  ;;  %2012 = vmatpush1.bf16.msra.mxu1 %v8169_v41  ;;  %v359_v40 = vld [vmem:[#allocation6 + $0x6b8] sm:$0xff]  ;;  %v8231_v41 = vcombine.low %v346_v29, %v350_v30  ;;  %v2130_v30 = vld [vmem:[#allocation9 + $0x40] sm:$0xff] }
 0x15d   :  { %1931 = vmatprep.subr.bf16.mxu0 %v8176_v42  ;;  %2013 = vmatprep.subr.bf16.mxu1 %v8178_v43  ;;  %v8233_v42 = vcombine.low %v347_v31, %v351_v32  ;;  %v8240_v43 = vcombine.high %v354_v37, %v358_v38  ;;  %v8242_v44 = vcombine.high %v355_v39, %v359_v40  ;;  %v2134_v31 = vld [vmem:[#allocation9 + $0x60] sm:$0xff]  ;;  %v2131_v32 = vld [vmem:[#allocation9 + $0x48] sm:$0xff] }
 0x160   :  { %1932 = vmatpush1.bf16.msra.mxu0 %v8175_v48  ;;  %2014 = vmatpush1.bf16.msra.mxu1 %v8177_v13  ;;  %v367_v48 = vld [vmem:[#allocation6 + $0x6f8] sm:$0xff]  ;;  %v8239_v13 = vcombine.low %v354_v37, %v358_v38  ;;  %v2138_v38 = vld [vmem:[#allocation9 + $0x80] sm:$0xff] }
 0x161   :  { %1933 = vmatprep.subr.bf16.mxu0 %v8184_v49  ;;  %2015 = vmatprep.subr.bf16.mxu1 %v8186_v50  ;;  %v8241_v49 = vcombine.low %v355_v39, %v359_v40  ;;  %v8248_v50 = vcombine.high %v362_v45, %v366_v46  ;;  %v8250_v51 = vcombine.high %v363_v47, %v367_v48  ;;  %v2142_v39 = vld [vmem:[#allocation9 + $0xa0] sm:$0xff]  ;;  %v2139_v40 = vld [vmem:[#allocation9 + $0x88] sm:$0xff] }
 0x164   :  { %1934 = vmatpush1.bf16.msra.mxu0 %v8183_v54  ;;  %2016 = vmatpush1.bf16.msra.mxu1 %v8185_v55  ;;  %v375_v54 = vld [vmem:[#allocation6 + $0x738] sm:$0xff]  ;;  %v8247_v55 = vcombine.low %v362_v45, %v366_v46  ;;  %v2146_v46 = vld [vmem:[#allocation9 + $0xc0] sm:$0xff] }
 0x165   :  { %1935 = vmatprep.subr.bf16.mxu0 %v8192_v56  ;;  %2017 = vmatprep.subr.bf16.mxu1 %v8194_v25  ;;  %v8249_v56 = vcombine.low %v363_v47, %v367_v48  ;;  %v8256_v25 = vcombine.high %v370_v52, %v374_v53  ;;  %v8258_v57 = vcombine.high %v371_v58, %v375_v54  ;;  %v2150_v47 = vld [vmem:[#allocation9 + $0xe0] sm:$0xff]  ;;  %v2147_v48 = vld [vmem:[#allocation9 + $0xc8] sm:$0xff] }
 0x168   :  { %1936 = vmatpush1.bf16.msra.mxu0 %v8191_v62  ;;  %2018 = vmatpush1.bf16.msra.mxu1 %v8193_v63  ;;  %v383_v62 = vld [vmem:[#allocation6 + $0x778] sm:$0xff]  ;;  %v8255_v63 = vcombine.low %v370_v52, %v374_v53  ;;  %v2154_v52 = vld [vmem:[#allocation9 + $0x100] sm:$0xff] }
 0x169   :  { %1937 = vmatprep.subr.bf16.mxu0 %v8200_v0  ;;  %2019 = vmatprep.subr.bf16.mxu1 %v8202_v1  ;;  %v8257_v0 = vcombine.low %v371_v58, %v375_v54  ;;  %v8264_v1 = vcombine.high %v378_v59, %v382_v60  ;;  %v8266_v2 = vcombine.high %v379_v61, %v383_v62  ;;  %v2158_v53 = vld [vmem:[#allocation9 + $0x120] sm:$0xff]  ;;  %v2155_v58 = vld [vmem:[#allocation9 + $0x108] sm:$0xff] }
 0x16a   :  { %v2159_v54 = vld [vmem:[#allocation9 + $0x128] sm:$0xff] }
 0x16c   :  { %1938 = vmatpush1.bf16.msra.mxu0 %v8199_v6  ;;  %2020 = vmatpush1.bf16.msra.mxu1 %v8201_v7  ;;  %v391_v6 = vld [vmem:[#allocation6 + $0x7b8] sm:$0xff]  ;;  %v8263_v7 = vcombine.low %v378_v59, %v382_v60  ;;  %v2162_v59 = vld [vmem:[#allocation9 + $0x140] sm:$0xff] }
 0x16d   :  { %1939 = vmatprep.subr.bf16.mxu0 %v8208_v8  ;;  %2021 = vmatprep.subr.bf16.mxu1 %v8210_v9  ;;  %v8265_v8 = vcombine.low %v379_v61, %v383_v62  ;;  %v8272_v9 = vcombine.high %v386_v3, %v390_v4  ;;  %v8274_v10 = vcombine.high %v387_v5, %v391_v6  ;;  %v2166_v60 = vld [vmem:[#allocation9 + $0x160] sm:$0xff]  ;;  %v2163_v61 = vld [vmem:[#allocation9 + $0x148] sm:$0xff] }
 0x16e   :  { %v2167_v62 = vld [vmem:[#allocation9 + $0x168] sm:$0xff] }
 0x170   :  { %1940 = vmatpush1.bf16.msra.mxu0 %v8207_v15  ;;  %2022 = vmatpush1.bf16.msra.mxu1 %v8209_v16  ;;  %v399_v15 = vld [vmem:[#allocation6 + $0x7f8] sm:$0xff]  ;;  %v8271_v16 = vcombine.low %v386_v3, %v390_v4  ;;  %v2170_v3 = vld [vmem:[#allocation9 + $0x180] sm:$0xff] }
 0x171   :  { %1941 = vmatprep.subr.bf16.mxu0 %v8216_v17  ;;  %2023 = vmatprep.subr.bf16.mxu1 %v8218_v18  ;;  %v8273_v17 = vcombine.low %v387_v5, %v391_v6  ;;  %v8280_v18 = vcombine.high %v394_v11, %v398_v12  ;;  %v8282_v19 = vcombine.high %v395_v14, %v399_v15  ;;  %v2174_v4 = vld [vmem:[#allocation9 + $0x1a0] sm:$0xff]  ;;  %v2171_v5 = vld [vmem:[#allocation9 + $0x188] sm:$0xff] }
 0x172   :  { %v2175_v6 = vld [vmem:[#allocation9 + $0x1a8] sm:$0xff] }
 0x174   :  { %1942 = vmatpush1.bf16.msra.mxu0 %v8215_v23  ;;  %2024 = vmatpush1.bf16.msra.mxu1 %v8217_v26  ;;  %v2127_v23 = vld [vmem:[#allocation9 + $0x28] sm:$0xff]  ;;  %v8279_v26 = vcombine.low %v394_v11, %v398_v12  ;;  %v2178_v11 = vld [vmem:[#allocation9 + $0x1c0] sm:$0xff] }
 0x175   :  { %1943 = vmatprep.subr.bf16.mxu0 %v8224_v27  ;;  %2025 = vmatprep.subr.bf16.mxu1 %v8226_v28  ;;  %v8281_v27 = vcombine.low %v395_v14, %v399_v15  ;;  %v8292_v28 = vcombine.high %v2122_v20, %v2126_v21  ;;  %v8294_v29 = vcombine.high %v2123_v22, %v2127_v23  ;;  %v2182_v12 = vld [vmem:[#allocation9 + $0x1e0] sm:$0xff]  ;;  %v2179_v14 = vld [vmem:[#allocation9 + $0x1c8] sm:$0xff] }
 0x176   :  { %v2183_v15 = vld [vmem:[#allocation9 + $0x1e8] sm:$0xff] }
 0x178   :  { %1944 = vmatpush1.bf16.msra.mxu0 %v8223_v33  ;;  %2026 = vmatpush1.bf16.msra.mxu1 %v8225_v34  ;;  %v2135_v33 = vld [vmem:[#allocation9 + $0x68] sm:$0xff]  ;;  %v8291_v34 = vcombine.low %v2122_v20, %v2126_v21  ;;  %v2186_v20 = vld [vmem:[#allocation9 + $0x200] sm:$0xff] }
 0x179   :  { %1945 = vmatprep.subr.bf16.mxu0 %v8232_v35  ;;  %2027 = vmatprep.subr.bf16.mxu1 %v8234_v36  ;;  %v8293_v35 = vcombine.low %v2123_v22, %v2127_v23  ;;  %v8300_v36 = vcombine.high %v2130_v30, %v2134_v31  ;;  %v8302_v37 = vcombine.high %v2131_v32, %v2135_v33  ;;  %v2190_v21 = vld [vmem:[#allocation9 + $0x220] sm:$0xff]  ;;  %v2187_v22 = vld [vmem:[#allocation9 + $0x208] sm:$0xff] }
 0x17a   :  { %v2191_v23 = vld [vmem:[#allocation9 + $0x228] sm:$0xff] }
 0x17c   :  { %1946 = vmatpush1.bf16.msra.mxu0 %v8231_v41  ;;  %2028 = vmatpush1.bf16.msra.mxu1 %v8233_v42  ;;  %v2143_v41 = vld [vmem:[#allocation9 + $0xa8] sm:$0xff]  ;;  %v8299_v42 = vcombine.low %v2130_v30, %v2134_v31  ;;  %v2194_v30 = vld [vmem:[#allocation9 + $0x240] sm:$0xff] }
 0x17d   :  { %1947 = vmatprep.subr.bf16.mxu0 %v8240_v43  ;;  %2029 = vmatprep.subr.bf16.mxu1 %v8242_v44  ;;  %v8301_v43 = vcombine.low %v2131_v32, %v2135_v33  ;;  %v8308_v44 = vcombine.high %v2138_v38, %v2142_v39  ;;  %v8310_v45 = vcombine.high %v2139_v40, %v2143_v41  ;;  %v2198_v31 = vld [vmem:[#allocation9 + $0x260] sm:$0xff]  ;;  %v2195_v32 = vld [vmem:[#allocation9 + $0x248] sm:$0xff] }
 0x17e   :  { %v2199_v33 = vld [vmem:[#allocation9 + $0x268] sm:$0xff] }
 0x180   :  { %1948 = vmatpush1.bf16.msra.mxu0 %v8239_v13  ;;  %2030 = vmatpush1.bf16.msra.mxu1 %v8241_v49  ;;  %v2151_v13 = vld [vmem:[#allocation9 + $0xe8] sm:$0xff]  ;;  %v8307_v49 = vcombine.low %v2138_v38, %v2142_v39  ;;  %v2202_v38 = vld [vmem:[#allocation9 + $0x280] sm:$0xff] }
 0x181   :  { %1949 = vmatprep.subr.bf16.mxu0 %v8248_v50  ;;  %2031 = vmatprep.subr.bf16.mxu1 %v8250_v51  ;;  %v8309_v50 = vcombine.low %v2139_v40, %v2143_v41  ;;  %v8316_v51 = vcombine.high %v2146_v46, %v2150_v47  ;;  %v2206_v39 = vld [vmem:[#allocation9 + $0x2a0] sm:$0xff]  ;;  %v2203_v40 = vld [vmem:[#allocation9 + $0x288] sm:$0xff] }
 0x182   :  { %v2207_v41 = vld [vmem:[#allocation9 + $0x2a8] sm:$0xff] }
 0x184   :  { %1950 = vmatpush1.bf16.msra.mxu0 %v8247_v55  ;;  %2032 = vmatpush1.bf16.msra.mxu1 %v8249_v56  ;;  %v8315_v55 = vcombine.low %v2146_v46, %v2150_v47  ;;  %v8317_v56 = vcombine.low %v2147_v48, %v2151_v13  ;;  %v2210_v46 = vld [vmem:[#allocation9 + $0x2c0] sm:$0xff] }
 0x185   :  { %1951 = vmatprep.subr.bf16.mxu0 %v8256_v25  ;;  %2033 = vmatprep.subr.bf16.mxu1 %v8258_v57  ;;  %v8324_v25 = vcombine.high %v2154_v52, %v2158_v53  ;;  %v8326_v57 = vcombine.high %v2155_v58, %v2159_v54  ;;  %v2214_v47 = vld [vmem:[#allocation9 + $0x2e0] sm:$0xff] }
 0x188   :  { %1952 = vmatpush1.bf16.msra.mxu0 %v8255_v63  ;;  %2034 = vmatpush1.bf16.msra.mxu1 %v8257_v0  ;;  %v8323_v63 = vcombine.low %v2154_v52, %v2158_v53  ;;  %v8325_v0 = vcombine.low %v2155_v58, %v2159_v54  ;;  %v2218_v52 = vld [vmem:[#allocation9 + $0x300] sm:$0xff]  ;;  %v2219_v58 = vld [vmem:[#allocation9 + $0x308] sm:$0xff] }
 0x189   :  { %1953 = vmatprep.subr.bf16.mxu0 %v8264_v1  ;;  %2035 = vmatprep.subr.bf16.mxu1 %v8266_v2  ;;  %v8332_v1 = vcombine.high %v2162_v59, %v2166_v60  ;;  %v8334_v2 = vcombine.high %v2163_v61, %v2167_v62  ;;  %v2222_v53 = vld [vmem:[#allocation9 + $0x320] sm:$0xff]  ;;  %v2223_v54 = vld [vmem:[#allocation9 + $0x328] sm:$0xff] }
 0x18c   :  { %1954 = vmatpush1.bf16.msra.mxu0 %v8263_v7  ;;  %2036 = vmatpush1.bf16.msra.mxu1 %v8265_v8  ;;  %v8331_v7 = vcombine.low %v2162_v59, %v2166_v60  ;;  %v8333_v8 = vcombine.low %v2163_v61, %v2167_v62  ;;  %v2226_v59 = vld [vmem:[#allocation9 + $0x340] sm:$0xff]  ;;  %v2227_v61 = vld [vmem:[#allocation9 + $0x348] sm:$0xff] }
 0x18d   :  { %1955 = vmatprep.subr.bf16.mxu0 %v8272_v9  ;;  %2037 = vmatprep.subr.bf16.mxu1 %v8274_v10  ;;  %v8340_v9 = vcombine.high %v2170_v3, %v2174_v4  ;;  %v8342_v10 = vcombine.high %v2171_v5, %v2175_v6  ;;  %v2230_v60 = vld [vmem:[#allocation9 + $0x360] sm:$0xff]  ;;  %v2231_v62 = vld [vmem:[#allocation9 + $0x368] sm:$0xff] }
 0x190   :  { %1956 = vmatpush1.bf16.msra.mxu0 %v8271_v16  ;;  %2038 = vmatpush1.bf16.msra.mxu1 %v8273_v17  ;;  %v8339_v16 = vcombine.low %v2170_v3, %v2174_v4  ;;  %v8341_v17 = vcombine.low %v2171_v5, %v2175_v6  ;;  %v2234_v3 = vld [vmem:[#allocation9 + $0x380] sm:$0xff]  ;;  %v2235_v5 = vld [vmem:[#allocation9 + $0x388] sm:$0xff] }
 0x191   :  { %1957 = vmatprep.subr.bf16.mxu0 %v8280_v18  ;;  %2039 = vmatprep.subr.bf16.mxu1 %v8282_v19  ;;  %v8348_v18 = vcombine.high %v2178_v11, %v2182_v12  ;;  %v8350_v19 = vcombine.high %v2179_v14, %v2183_v15  ;;  %v2238_v4 = vld [vmem:[#allocation9 + $0x3a0] sm:$0xff]  ;;  %v2239_v6 = vld [vmem:[#allocation9 + $0x3a8] sm:$0xff] }
 0x194   :  { %1958 = vmatpush1.bf16.msra.mxu0 %v8279_v26  ;;  %2040 = vmatpush1.bf16.msra.mxu1 %v8281_v27  ;;  %v8347_v26 = vcombine.low %v2178_v11, %v2182_v12  ;;  %v8349_v27 = vcombine.low %v2179_v14, %v2183_v15  ;;  %v2242_v11 = vld [vmem:[#allocation9 + $0x3c0] sm:$0xff]  ;;  %v2243_v14 = vld [vmem:[#allocation9 + $0x3c8] sm:$0xff] }
 0x195   :  { %5236 = vmatprep.subr.bf16.mxu0 %v8292_v28  ;;  %5400 = vmatprep.subr.bf16.mxu1 %v8294_v29  ;;  %v8356_v28 = vcombine.high %v2186_v20, %v2190_v21  ;;  %v8358_v29 = vcombine.high %v2187_v22, %v2191_v23  ;;  %v2246_v12 = vld [vmem:[#allocation9 + $0x3e0] sm:$0xff]  ;;  %v2247_v15 = vld [vmem:[#allocation9 + $0x3e8] sm:$0xff] }
 0x197   :  { %1960 = vmatmul.mubr.bf16.vlgmr.msra.gmra.mrb[4].mxu0 %v10050_v24  ;;  %2042 = vmatmul.mubr.bf16.vlgmr.msra.gmra.mrb[4].mxu1 %v10050_v24  ;;  %v8318_v24 = vcombine.high %v2147_v48, %v2151_v13  ;;  %v2211_v48 = vld [vmem:[#allocation9 + $0x2c8] sm:$0xff] }
 0x198   :  { %5237 = vmatpush1.bf16.msra.mxu0 %v8291_v34  ;;  %5401 = vmatpush1.bf16.msra.mxu1 %v8293_v35  ;;  %v8355_v34 = vcombine.low %v2186_v20, %v2190_v21  ;;  %v8357_v35 = vcombine.low %v2187_v22, %v2191_v23  ;;  %v2215_v13 = vld [vmem:[#allocation9 + $0x2e8] sm:$0xff]  ;;  %v10062_v20 = vld [vmem:[#allocation9 + $0x400] sm:$0xff] }
 0x199   :  { %5238 = vmatprep.subr.bf16.mxu0 %v8300_v36  ;;  %5402 = vmatprep.subr.bf16.mxu1 %v8302_v37  ;;  %v8364_v36 = vcombine.high %v2194_v30, %v2198_v31  ;;  %v8366_v37 = vcombine.high %v2195_v32, %v2199_v33  ;;  %v10064_v21 = vld [vmem:[#allocation9 + $0x420] sm:$0xff]  ;;  %v10066_v22 = vld [vmem:[#allocation9 + $0x408] sm:$0xff] }
 0x19a   :  { %v10068_v23 = vld [vmem:[#allocation9 + $0x428] sm:$0xff] }
 0x19c   :  { %5239 = vmatpush1.bf16.msra.mxu0 %v8299_v42  ;;  %5403 = vmatpush1.bf16.msra.mxu1 %v8301_v43  ;;  %v8363_v42 = vcombine.low %v2194_v30, %v2198_v31  ;;  %v8365_v43 = vcombine.low %v2195_v32, %v2199_v33  ;;  %v402_v30 = vlaneseq  ;;  %v10079_v33 = vld [vmem:[#allocation8] sm:$0xff] }
 0x19d   :  { %5240 = vmatprep.subr.bf16.mxu0 %v8308_v44  ;;  %5404 = vmatprep.subr.bf16.mxu1 %v8310_v45  ;;  %v8372_v44 = vcombine.high %v2202_v38, %v2206_v39  ;;  %v8374_v45 = vcombine.high %v2203_v40, %v2207_v41 }
 0x19e   :  { %v10074_v31 = vshrl.u32 %v402_v30, 7 }
 0x1a0   :  { %5241 = vmatpush1.bf16.msra.mxu0 %v8307_v49  ;;  %5405 = vmatpush1.bf16.msra.mxu1 %v8309_v50  ;;  %v8371_v49 = vcombine.low %v2202_v38, %v2206_v39  ;;  %v8373_v50 = vcombine.low %v2203_v40, %v2207_v41  ;;  %v10077_v32 = vsub.s32 0, %v10074_v31 }
 0x1a1   :  { %5242 = vmatprep.subr.bf16.mxu0 %v8316_v51  ;;  %5406 = vmatprep.subr.bf16.mxu1 %v8318_v24  ;;  %v8380_v51 = vcombine.high %v2210_v46, %v2214_v47  ;;  %v8382_v24 = vcombine.high %v2211_v48, %v2215_v13 }
 0x1a4   :  { %5243 = vmatpush1.bf16.msra.mxu0 %v8315_v55  ;;  %5407 = vmatpush1.bf16.msra.mxu1 %v8317_v56  ;;  %v8379_v55 = vcombine.low %v2210_v46, %v2214_v47  ;;  %v8381_v56 = vcombine.low %v2211_v48, %v2215_v13 }
 0x1a5   :  { %5244 = vmatprep.subr.bf16.mxu0 %v8324_v25  ;;  %5408 = vmatprep.subr.bf16.mxu1 %v8326_v57  ;;  %v8388_v25 = vcombine.high %v2218_v52, %v2222_v53  ;;  %v8390_v57 = vcombine.high %v2219_v58, %v2223_v54 }
 0x1a8   :  { %5245 = vmatpush1.bf16.msra.mxu0 %v8323_v63  ;;  %5409 = vmatpush1.bf16.msra.mxu1 %v8325_v0  ;;  %v8387_v63 = vcombine.low %v2218_v52, %v2222_v53  ;;  %v8389_v0 = vcombine.low %v2219_v58, %v2223_v54 }
 0x1a9   :  { %5246 = vmatprep.subr.bf16.mxu0 %v8332_v1  ;;  %5410 = vmatprep.subr.bf16.mxu1 %v8334_v2  ;;  %v8396_v1 = vcombine.high %v2226_v59, %v2230_v60  ;;  %v8398_v2 = vcombine.high %v2227_v61, %v2231_v62 }
 0x1ac   :  { %5247 = vmatpush1.bf16.msra.mxu0 %v8331_v7  ;;  %5411 = vmatpush1.bf16.msra.mxu1 %v8333_v8  ;;  %v8395_v7 = vcombine.low %v2226_v59, %v2230_v60  ;;  %v8397_v8 = vcombine.low %v2227_v61, %v2231_v62 }
 0x1ad   :  { %5248 = vmatprep.subr.bf16.mxu0 %v8340_v9  ;;  %5412 = vmatprep.subr.bf16.mxu1 %v8342_v10  ;;  %v8404_v9 = vcombine.high %v2234_v3, %v2238_v4  ;;  %v8406_v10 = vcombine.high %v2235_v5, %v2239_v6 }
 0x1b0   :  { %5249 = vmatpush1.bf16.msra.mxu0 %v8339_v16  ;;  %5413 = vmatpush1.bf16.msra.mxu1 %v8341_v17  ;;  %v8403_v16 = vcombine.low %v2234_v3, %v2238_v4  ;;  %v8405_v17 = vcombine.low %v2235_v5, %v2239_v6  ;;  %v2259_v3 = vld [vmem:[#allocation9 + $0x448] sm:$0xff]  ;;  %v8419_v6 = vcombine.low %v10062_v20, %v10064_v21 }
 0x1b1   :  { %5250 = vmatprep.subr.bf16.mxu0 %v8348_v18  ;;  %5414 = vmatprep.subr.bf16.mxu1 %v8350_v19  ;;  %v8412_v18 = vcombine.high %v2242_v11, %v2246_v12  ;;  %v8414_v19 = vcombine.high %v2243_v14, %v2247_v15  ;;  %v2263_v4 = vld [vmem:[#allocation9 + $0x468] sm:$0xff] }
 0x1b4   :  { %5251 = vmatpush1.bf16.msra.mxu0 %v8347_v26  ;;  %5415 = vmatpush1.bf16.msra.mxu1 %v8349_v27  ;;  %v8411_v26 = vcombine.low %v2242_v11, %v2246_v12  ;;  %v8413_v27 = vcombine.low %v2243_v14, %v2247_v15  ;;  %v8430_v11 = vcombine.high %v2259_v3, %v2263_v4  ;;  %v2270_v12 = vld [vmem:[#allocation9 + $0x4a0] sm:$0xff]  ;;  %v2267_v14 = vld [vmem:[#allocation9 + $0x488] sm:$0xff] }
 0x1b5   :  { %5252 = vmatprep.subr.bf16.mxu0 %v8356_v28  ;;  %5416 = vmatprep.subr.bf16.mxu1 %v8358_v29  ;;  %v8420_v28 = vcombine.high %v10062_v20, %v10064_v21  ;;  %v8422_v29 = vcombine.high %v10066_v22, %v10068_v23  ;;  %v2271_v15 = vld [vmem:[#allocation9 + $0x4a8] sm:$0xff]  ;;  %v2274_v21 = vld [vmem:[#allocation9 + $0x4c0] sm:$0xff] }
 0x1b6   :  { %v8438_v20 = vcombine.high %v2267_v14, %v2271_v15 }
 0x1b8   :  { %5253 = vmatpush1.bf16.msra.mxu0 %v8355_v34  ;;  %5417 = vmatpush1.bf16.msra.mxu1 %v8357_v35  ;;  %v10082_v34 = vsub.s32 1, %v10074_v31  ;;  %v10085_v35 = vsub.s32 3, %v10074_v31 }
 0x1b9   :  { %5254 = vmatprep.subr.bf16.mxu0 %v8364_v36  ;;  %5418 = vmatprep.subr.bf16.mxu1 %v8366_v37  ;;  %v405_v36 = vrot.slane %v10079_v33, %v10077_v32 }
 0x1ba   :  { %v409_v37 = vrot.slane %v10079_v33, %v10082_v34  ;;  %v417_v38 = vrot.slane %v10079_v33, %v10085_v35 }
 0x1bc   :  { %5255 = vmatpush1.bf16.msra.mxu0 %v8363_v42  ;;  %5419 = vmatpush1.bf16.msra.mxu1 %v8365_v43 }
 0x1bd   :  { %5256 = vmatprep.subr.bf16.mxu0 %v8372_v44  ;;  %5420 = vmatprep.subr.bf16.mxu1 %v8374_v45 }
 0x1c0   :  { %5257 = vmatpush1.bf16.msra.mxu0 %v8371_v49  ;;  %5421 = vmatpush1.bf16.msra.mxu1 %v8373_v50 }
 0x1c1   :  { %5258 = vmatprep.subr.bf16.mxu0 %v8380_v51  ;;  %5422 = vmatprep.subr.bf16.mxu1 %v8382_v24 }
 0x1c4   :  { %5259 = vmatpush1.bf16.msra.mxu0 %v8379_v55  ;;  %5423 = vmatpush1.bf16.msra.mxu1 %v8381_v56 }
 0x1c5   :  { %5260 = vmatprep.subr.bf16.mxu0 %v8388_v25  ;;  %5424 = vmatprep.subr.bf16.mxu1 %v8390_v57 }
 0x1c8   :  { %5261 = vmatpush1.bf16.msra.mxu0 %v8387_v63  ;;  %5425 = vmatpush1.bf16.msra.mxu1 %v8389_v0  ;;  %v2258_v0 = vld [vmem:[#allocation9 + $0x440] sm:$0xff] }
 0x1c9   :  { %5262 = vmatprep.subr.bf16.mxu0 %v8396_v1  ;;  %5426 = vmatprep.subr.bf16.mxu1 %v8398_v2  ;;  %v2262_v2 = vld [vmem:[#allocation9 + $0x460] sm:$0xff] }
 0x1cc   :  { %5263 = vmatpush1.bf16.msra.mxu0 %v8395_v7  ;;  %5427 = vmatpush1.bf16.msra.mxu1 %v8397_v8  ;;  %v8421_v7 = vcombine.low %v10066_v22, %v10068_v23  ;;  %v2278_v22 = vld [vmem:[#allocation9 + $0x4e0] sm:$0xff]  ;;  %v2275_v23 = vld [vmem:[#allocation9 + $0x4c8] sm:$0xff] }
 0x1cd   :  { %5264 = vmatprep.subr.bf16.mxu0 %v8404_v9  ;;  %5428 = vmatprep.subr.bf16.mxu1 %v8406_v10  ;;  %v2266_v9 = vld [vmem:[#allocation9 + $0x480] sm:$0xff]  ;;  %v8428_v10 = vcombine.high %v2258_v0, %v2262_v2  ;;  %v8444_v30 = vcombine.high %v2274_v21, %v2278_v22 }
 0x1d0   :  { %5265 = vmatpush1.bf16.msra.mxu0 %v8403_v16  ;;  %5429 = vmatpush1.bf16.msra.mxu1 %v8405_v17  ;;  %v8427_v17 = vcombine.low %v2258_v0, %v2262_v2  ;;  %v2311_v0 = vld [vmem:[#allocation9 + $0x5e8] sm:$0xff] }
 0x1d1   :  { %5266 = vmatprep.subr.bf16.mxu0 %v8412_v18  ;;  %5430 = vmatprep.subr.bf16.mxu1 %v8414_v19  ;;  %v8429_v18 = vcombine.low %v2259_v3, %v2263_v4  ;;  %v8436_v19 = vcombine.high %v2266_v9, %v2270_v12 }
 0x1d4   :  { %5267 = vmatpush1.bf16.msra.mxu0 %v8411_v26  ;;  %5431 = vmatpush1.bf16.msra.mxu1 %v8413_v27  ;;  %v2279_v26 = vld [vmem:[#allocation9 + $0x4e8] sm:$0xff]  ;;  %v8435_v27 = vcombine.low %v2266_v9, %v2270_v12  ;;  %v2318_v9 = vld [vmem:[#allocation9 + $0x620] sm:$0xff] }
 0x1d5   :  { %5277 = vmatprep.subr.bf16.mxu0 %v8420_v28  ;;  %5441 = vmatprep.subr.bf16.mxu1 %v8422_v29  ;;  %v8437_v28 = vcombine.low %v2267_v14, %v2271_v15  ;;  %v10112_v29 = vsub.s32 2, %v10074_v31 }
 0x1ea   :  { %v1797_v39 = vpop.f32.mrb[0].mxu0  ;;  %v10093_v41 = vpop.f32.mrb[0].mxu1 }
 0x1eb   :  { %v9072_v40 = vadd.f32 %v1797_v39, %v405_v36  ;;  %v1799_v42 = vpop.f32.mrb[1].mxu0  ;;  %v1881_v44 = vpop.f32.mrb[1].mxu1  ;;  %v8446_v36 = vcombine.high %v2275_v23, %v2279_v26  ;;  %v2283_v39 = vld [vmem:[#allocation9 + $0x508] sm:$0xff] }
 0x1ec   :  { %v9073_v43 = vadd.f32 %v1799_v42, %v409_v37  ;;  %v1801_v45 = vpop.f32.mrb[2].mxu0  ;;  %v9075_v47 = vadd.f32 %v1881_v44, %v417_v38  ;;  %v1883_v48 = vpop.f32.mrb[2].mxu1  ;;  %v2282_v37 = vld [vmem:[#allocation9 + $0x500] sm:$0xff]  ;;  %v8443_v42 = vcombine.low %v2274_v21, %v2278_v22  ;;  %v413_v44 = vrot.slane %v10079_v33, %v10112_v29  ;;  %v2327_v21 = vld [vmem:[#allocation9 + $0x668] sm:$0xff] }
 0x1ed   :  { %v2050_v46 = vpack.c.bf16 %v9072_v40, %v9072_v40  ;;  %v1802_v13 = vpop.f32.mrb[3].mxu0  ;;  %v1884_v50 = vpop.f32.mrb[3].mxu1  ;;  %v2286_v38 = vld [vmem:[#allocation9 + $0x520] sm:$0xff]  ;;  %v2287_v40 = vld [vmem:[#allocation9 + $0x528] sm:$0xff] }
 0x1ee   :  { %v2051_v49 = vpack.c.bf16 %v9073_v43, %v9073_v43  ;;  %v2053_v24 = vpack.c.bf16 %v9075_v47, %v9075_v47  ;;  %v8445_v43 = vcombine.low %v2275_v23, %v2279_v26  ;;  %v8452_v45 = vcombine.high %v2282_v37, %v2286_v38  ;;  %v2290_v47 = vld [vmem:[#allocation9 + $0x540] sm:$0xff]  ;;  %v2291_v13 = vld [vmem:[#allocation9 + $0x548] sm:$0xff] }
 0x1ef   :  { %v8283_v51 = vmul.bf16 3216621497, %v2050_v46  ;;  %v2294_v48 = vld [vmem:[#allocation9 + $0x560] sm:$0xff]  ;;  %v8451_v50 = vcombine.low %v2282_v37, %v2286_v38  ;;  %v2335_v37 = vld [vmem:[#allocation9 + $0x6a8] sm:$0xff] }
 0x1f0   :  { %v8284_v52 = vmul.bf16 3216621497, %v2051_v49  ;;  %v8286_v53 = vmul.bf16 3216621497, %v2053_v24 }
 0x1f1   :  { %9582 = vpow.bf16 %v8283_v51  ;;  %v8453_v51 = vcombine.low %v2283_v39, %v2287_v40 }
 0x1f2   :  { %9584 = vpow.bf16 %v8284_v52  ;;  %v8460_v52 = vcombine.high %v2290_v47, %v2294_v48 }
 0x1f3   :  { %9586 = vpow.bf16 %v8286_v53 }
 0x1fc   :  { %v9583_v58 = vpop.eup %9582 }
 0x1fd   :  { %v2090_v54 = vadd.bf16 1065369472, %v9583_v58  ;;  %v9585_v55 = vpop.eup %9584  ;;  %v2298_v58 = vld [vmem:[#allocation9 + $0x580] sm:$0xff] }
 0x1fe   :  { %v9587_v56 = vpop.eup %9586  ;;  %v2091_v25 = vadd.bf16 1065369472, %v9585_v55  ;;  %v2299_v55 = vld [vmem:[#allocation9 + $0x588] sm:$0xff] }
 0x1ff   :  { %9588 = vrcp.bf16 %v2090_v54  ;;  %v2093_v57 = vadd.bf16 1065369472, %v9587_v56  ;;  %v2302_v54 = vld [vmem:[#allocation9 + $0x5a0] sm:$0xff]  ;;  %v2303_v56 = vld [vmem:[#allocation9 + $0x5a8] sm:$0xff] }
 0x200   :  { %9590 = vrcp.bf16 %v2091_v25  ;;  %v8459_v25 = vcombine.low %v2290_v47, %v2294_v48  ;;  %v8469_v2 = vcombine.low %v2299_v55, %v2303_v56 }
 0x201   :  { %9592 = vrcp.bf16 %v2093_v57 }
 0x20a   :  { %v9589_v59 = vpop.eup %9588 }
 0x20b   :  { %v9591_v60 = vpop.eup %9590  ;;  %v2099_v61 = vmul.bf16 1065369472, %v9589_v59 }
 0x20c   :  { %v9593_v62 = vpop.eup %9592  ;;  %v2101_v63 = vmul.bf16 1065369472, %v9591_v60  ;;  %v8468_v60 = vcombine.high %v2298_v58, %v2302_v54 }
 0x20d   :  { %v2105_v1 = vmul.bf16 1065369472, %v9593_v62  ;;  %v10101_v8 = vmul.bf16 %v2099_v61, %v2050_v46  ;;  %v8454_v46 = vcombine.high %v2283_v39, %v2287_v40  ;;  %v8470_v61 = vcombine.high %v2299_v55, %v2303_v56  ;;  %v2306_v62 = vld [vmem:[#allocation9 + $0x5c0] sm:$0xff] }
 0x20e   :  { %v10095_v5 = vmul.bf16 %v2101_v63, %v2051_v49  ;;  %v2295_v49 = vld [vmem:[#allocation9 + $0x568] sm:$0xff] }
 0x20f   :  { %v10105_v16 = vmul.bf16 %v2105_v1, %v2053_v24  ;;  %v9074_v24 = vadd.f32 %v10093_v41, %v413_v44  ;;  %v8462_v53 = vcombine.high %v2291_v13, %v2295_v49  ;;  %v8461_v57 = vcombine.low %v2291_v13, %v2295_v49  ;;  %v2310_v41 = vld [vmem:[#allocation9 + $0x5e0] sm:$0xff]  ;;  %v2307_v63 = vld [vmem:[#allocation9 + $0x5c8] sm:$0xff] }
 0x210   :  { %5268 = vmatprep.mubr.bf16.mxu0 %v10095_v5  ;;  %5432 = vmatprep.mubr.bf16.mxu1 %v10095_v5  ;;  %v8467_v1 = vcombine.low %v2298_v58, %v2302_v54  ;;  %v8476_v4 = vcombine.high %v2306_v62, %v2310_v41  ;;  %v8475_v12 = vcombine.low %v2306_v62, %v2310_v41  ;;  %v2342_v44 = vld [vmem:[#allocation9 + $0x6e0] sm:$0xff]  ;;  %v2359_v62 = vld [vmem:[#allocation9 + $0x768] sm:$0xff] }
 0x211   :  { %5269 = vmatmul.mubr.bf16.vlgmr.msra.gmra.mrb[8].mxu0 %v10101_v8  ;;  %5433 = vmatmul.mubr.bf16.vlgmr.msra.gmra.mrb[8].mxu1 %v10101_v8  ;;  %v10117_v59 = vpack.c.bf16 %v9074_v24, %v9074_v24  ;;  %v8477_v14 = vcombine.low %v2307_v63, %v2311_v0  ;;  %v2350_v24 = vld [vmem:[#allocation9 + $0x720] sm:$0xff] }
 0x212   :  { %5278 = vmatpush1.bf16.msra.mxu0 %v8419_v6  ;;  %5442 = vmatpush1.bf16.msra.mxu1 %v8421_v7  ;;  %v8478_v6 = vcombine.high %v2307_v63, %v2311_v0  ;;  %v2314_v7 = vld [vmem:[#allocation9 + $0x600] sm:$0xff] }
 0x213   :  { %5309 = vmatprep.mubr.bf16.mxu0 %v10105_v16  ;;  %5473 = vmatprep.mubr.bf16.mxu1 %v10105_v16  ;;  %v8285_v3 = vmul.bf16 3216621497, %v10117_v59  ;;  %v8484_v15 = vcombine.high %v2314_v7, %v2318_v9  ;;  %v8483_v22 = vcombine.low %v2314_v7, %v2318_v9 }
 0x214   :  { %5279 = vmatprep.subr.bf16.mxu0 %v8428_v10  ;;  %5443 = vmatprep.subr.bf16.mxu1 %v8430_v11  ;;  %v2315_v10 = vld [vmem:[#allocation9 + $0x608] sm:$0xff] }
 0x215   :  { %v2319_v11 = vld [vmem:[#allocation9 + $0x628] sm:$0xff]  ;;  %9594 = vpow.bf16 %v8285_v3  ;;  %v2366_v3 = vld [vmem:[#allocation9 + $0x7a0] sm:$0xff] }
 0x216   :  { %5280 = vmatpush1.bf16.msra.mxu0 %v8427_v17  ;;  %5444 = vmatpush1.bf16.msra.mxu1 %v8429_v18  ;;  %v8486_v17 = vcombine.high %v2315_v10, %v2319_v11  ;;  %v2322_v18 = vld [vmem:[#allocation9 + $0x640] sm:$0xff]  ;;  %v8485_v23 = vcombine.low %v2315_v10, %v2319_v11 }
 0x217   :  { %5281 = vmatprep.subr.bf16.mxu0 %v8436_v19  ;;  %5445 = vmatprep.subr.bf16.mxu1 %v8438_v20  ;;  %v2326_v19 = vld [vmem:[#allocation9 + $0x660] sm:$0xff]  ;;  %v2323_v20 = vld [vmem:[#allocation9 + $0x648] sm:$0xff] }
 0x218   :  { %v8492_v26 = vcombine.high %v2322_v18, %v2326_v19  ;;  %v8491_v38 = vcombine.low %v2322_v18, %v2326_v19  ;;  %v8493_v39 = vcombine.low %v2323_v20, %v2327_v21 }
 0x21a   :  { %5282 = vmatpush1.bf16.msra.mxu0 %v8435_v27  ;;  %5446 = vmatpush1.bf16.msra.mxu1 %v8437_v28  ;;  %v8494_v27 = vcombine.high %v2323_v20, %v2327_v21  ;;  %v2330_v28 = vld [vmem:[#allocation9 + $0x680] sm:$0xff] }
 0x21b   :  { %5283 = vmatprep.subr.bf16.mxu0 %v8444_v30  ;;  %5447 = vmatprep.subr.bf16.mxu1 %v8446_v36  ;;  %v2334_v30 = vld [vmem:[#allocation9 + $0x6a0] sm:$0xff]  ;;  %v2331_v36 = vld [vmem:[#allocation9 + $0x688] sm:$0xff] }
 0x21c   :  { %v8500_v40 = vcombine.high %v2330_v28, %v2334_v30  ;;  %v8499_v48 = vcombine.low %v2330_v28, %v2334_v30  ;;  %v8501_v13 = vcombine.low %v2331_v36, %v2335_v37  ;;  %v2383_v28 = vld [vmem:[#allocation9 + $0x828] sm:$0xff] }
 0x21e   :  { %5284 = vmatpush1.bf16.msra.mxu0 %v8443_v42  ;;  %5448 = vmatpush1.bf16.msra.mxu1 %v8445_v43  ;;  %v8502_v42 = vcombine.high %v2331_v36, %v2335_v37  ;;  %v2338_v43 = vld [vmem:[#allocation9 + $0x6c0] sm:$0xff] }
 0x21f   :  { %5285 = vmatprep.subr.bf16.mxu0 %v8452_v45  ;;  %5449 = vmatprep.subr.bf16.mxu1 %v8454_v46  ;;  %v2339_v45 = vld [vmem:[#allocation9 + $0x6c8] sm:$0xff]  ;;  %v8508_v49 = vcombine.high %v2338_v43, %v2342_v44  ;;  %v8507_v54 = vcombine.low %v2338_v43, %v2342_v44 }
 0x220   :  { %v2343_v46 = vld [vmem:[#allocation9 + $0x6e8] sm:$0xff]  ;;  %v9595_v47 = vpop.eup %9594 }
 0x221   :  { %v2092_v58 = vadd.bf16 1065369472, %v9595_v47  ;;  %v8509_v55 = vcombine.low %v2339_v45, %v2343_v46  ;;  %v2387_v43 = vld [vmem:[#allocation9 + $0x848] sm:$0xff] }
 0x222   :  { %5286 = vmatpush1.bf16.msra.mxu0 %v8451_v50  ;;  %5450 = vmatpush1.bf16.msra.mxu1 %v8453_v51  ;;  %v8510_v50 = vcombine.high %v2339_v45, %v2343_v46  ;;  %v2346_v51 = vld [vmem:[#allocation9 + $0x700] sm:$0xff]  ;;  %v2391_v44 = vld [vmem:[#allocation9 + $0x868] sm:$0xff] }
 0x223   :  { %5287 = vmatprep.subr.bf16.mxu0 %v8460_v52  ;;  %5451 = vmatprep.subr.bf16.mxu1 %v8462_v53  ;;  %v2347_v52 = vld [vmem:[#allocation9 + $0x708] sm:$0xff]  ;;  %v8516_v56 = vcombine.high %v2346_v51, %v2350_v24  ;;  %9596 = vrcp.bf16 %v2092_v58  ;;  %v8515_v41 = vcombine.low %v2346_v51, %v2350_v24 }
 0x224   :  { %v2351_v53 = vld [vmem:[#allocation9 + $0x728] sm:$0xff] }
 0x225   :  { %v8517_v63 = vcombine.low %v2347_v52, %v2351_v53  ;;  %v2395_v51 = vld [vmem:[#allocation9 + $0x888] sm:$0xff] }
 0x226   :  { %5288 = vmatpush1.bf16.msra.mxu0 %v8459_v25  ;;  %5452 = vmatpush1.bf16.msra.mxu1 %v8461_v57  ;;  %v8518_v25 = vcombine.high %v2347_v52, %v2351_v53  ;;  %v2354_v57 = vld [vmem:[#allocation9 + $0x740] sm:$0xff]  ;;  %v2399_v24 = vld [vmem:[#allocation9 + $0x8a8] sm:$0xff]  ;;  %v8557_v53 = vcombine.low %v2387_v43, %v2391_v44 }
 0x227   :  { %5289 = vmatprep.subr.bf16.mxu0 %v8468_v60  ;;  %5453 = vmatprep.subr.bf16.mxu1 %v8470_v61  ;;  %v2358_v60 = vld [vmem:[#allocation9 + $0x760] sm:$0xff]  ;;  %v2355_v61 = vld [vmem:[#allocation9 + $0x748] sm:$0xff]  ;;  %v8566_v58 = vcombine.high %v2395_v51, %v2399_v24 }
 0x228   :  { %v8524_v0 = vcombine.high %v2354_v57, %v2358_v60  ;;  %v8523_v7 = vcombine.low %v2354_v57, %v2358_v60  ;;  %v8525_v9 = vcombine.low %v2355_v61, %v2359_v62  ;;  %v8565_v60 = vcombine.low %v2395_v51, %v2399_v24  ;;  %v2443_v51 = vld [vmem:[#allocation9 + $0xa08] sm:$0xff] }
 0x229   :  { %v2447_v24 = vld [vmem:[#allocation9 + $0xa28] sm:$0xff] }
 0x22a   :  { %5290 = vmatpush1.bf16.msra.mxu0 %v8467_v1  ;;  %5454 = vmatpush1.bf16.msra.mxu1 %v8469_v2  ;;  %v8526_v1 = vcombine.high %v2355_v61, %v2359_v62  ;;  %v2362_v2 = vld [vmem:[#allocation9 + $0x780] sm:$0xff] }
 0x22b   :  { %5291 = vmatprep.subr.bf16.mxu0 %v8476_v4  ;;  %5455 = vmatprep.subr.bf16.mxu1 %v8478_v6  ;;  %v2363_v4 = vld [vmem:[#allocation9 + $0x788] sm:$0xff]  ;;  %v8532_v10 = vcombine.high %v2362_v2, %v2366_v3  ;;  %v8531_v18 = vcombine.low %v2362_v2, %v2366_v3 }
 0x22c   :  { %v2367_v6 = vld [vmem:[#allocation9 + $0x7a8] sm:$0xff] }
 0x22d   :  { %v8534_v11 = vcombine.high %v2363_v4, %v2367_v6  ;;  %v8533_v19 = vcombine.low %v2363_v4, %v2367_v6 }
 0x22e   :  { %5292 = vmatpush1.bf16.msra.mxu0 %v8475_v12  ;;  %5456 = vmatpush1.bf16.msra.mxu1 %v8477_v14  ;;  %v2370_v12 = vld [vmem:[#allocation9 + $0x7c0] sm:$0xff] }
 0x22f   :  { %5293 = vmatprep.subr.bf16.mxu0 %v8484_v15  ;;  %5457 = vmatprep.subr.bf16.mxu1 %v8486_v17  ;;  %v2374_v14 = vld [vmem:[#allocation9 + $0x7e0] sm:$0xff]  ;;  %v2371_v15 = vld [vmem:[#allocation9 + $0x7c8] sm:$0xff] }
 0x230   :  { %v2375_v17 = vld [vmem:[#allocation9 + $0x7e8] sm:$0xff]  ;;  %v8540_v20 = vcombine.high %v2370_v12, %v2374_v14  ;;  %v8539_v30 = vcombine.low %v2370_v12, %v2374_v14 }
 0x231   :  { %v8542_v21 = vcombine.high %v2371_v15, %v2375_v17  ;;  %v8541_v36 = vcombine.low %v2371_v15, %v2375_v17 }
 0x232   :  { %5294 = vmatpush1.bf16.msra.mxu0 %v8483_v22  ;;  %5458 = vmatpush1.bf16.msra.mxu1 %v8485_v23  ;;  %v2378_v22 = vld [vmem:[#allocation9 + $0x800] sm:$0xff]  ;;  %v9597_v23 = vpop.eup %9596 }
 0x233   :  { %5295 = vmatprep.subr.bf16.mxu0 %v8492_v26  ;;  %5459 = vmatprep.subr.bf16.mxu1 %v8494_v27  ;;  %v2382_v26 = vld [vmem:[#allocation9 + $0x820] sm:$0xff]  ;;  %v2379_v27 = vld [vmem:[#allocation9 + $0x808] sm:$0xff]  ;;  %v2103_v37 = vmul.bf16 1065369472, %v9597_v23 }
 0x234   :  { %v8547_v45 = vcombine.low %v2378_v22, %v2382_v26  ;;  %v8549_v46 = vcombine.low %v2379_v27, %v2383_v28 }
 0x235   :  { %v10121_v47 = vmul.bf16 %v2103_v37, %v10117_v59  ;;  %v432_v37 = vsub.s32 7, %v10074_v31 }
 0x236   :  { %5296 = vmatpush1.bf16.msra.mxu0 %v8491_v38  ;;  %5460 = vmatpush1.bf16.msra.mxu1 %v8493_v39  ;;  %v8548_v38 = vcombine.high %v2378_v22, %v2382_v26  ;;  %v8550_v39 = vcombine.high %v2379_v27, %v2383_v28  ;;  %v420_v26 = vsub.s32 4, %v10074_v31 }
 0x237   :  { %5297 = vmatprep.subr.bf16.mxu0 %v8500_v40  ;;  %5461 = vmatprep.subr.bf16.mxu1 %v8502_v42  ;;  %v2386_v40 = vld [vmem:[#allocation9 + $0x840] sm:$0xff] }
 0x238   :  { %v2390_v42 = vld [vmem:[#allocation9 + $0x860] sm:$0xff] }
 0x239   :  { %v8555_v52 = vcombine.low %v2386_v40, %v2390_v42 }
 0x23a   :  { %5298 = vmatpush1.bf16.msra.mxu0 %v8499_v48  ;;  %5462 = vmatpush1.bf16.msra.mxu1 %v8501_v13  ;;  %v8556_v48 = vcombine.high %v2386_v40, %v2390_v42  ;;  %v8558_v13 = vcombine.high %v2387_v43, %v2391_v44  ;;  %v2439_v40 = vld [vmem:[#allocation9 + $0x9e8] sm:$0xff]  ;;  %v421_v44 = vrot.slane %v10079_v33, %v420_v26 }
 0x23b   :  { %5299 = vmatprep.subr.bf16.mxu0 %v8508_v49  ;;  %5463 = vmatprep.subr.bf16.mxu1 %v8510_v50  ;;  %v2394_v49 = vld [vmem:[#allocation9 + $0x880] sm:$0xff] }
 0x23c   :  { %v2398_v50 = vld [vmem:[#allocation9 + $0x8a0] sm:$0xff] }
 0x23d   :  { %v8564_v59 = vcombine.high %v2394_v49, %v2398_v50  ;;  %v8563_v57 = vcombine.low %v2394_v49, %v2398_v50  ;;  %v433_v49 = vrot.slane %v10079_v33, %v432_v37  ;;  %v2446_v50 = vld [vmem:[#allocation9 + $0xa20] sm:$0xff] }
 0x23e   :  { %5300 = vmatpush1.bf16.msra.mxu0 %v8507_v54  ;;  %5464 = vmatpush1.bf16.msra.mxu1 %v8509_v55  ;;  %v2402_v54 = vld [vmem:[#allocation9 + $0x8c0] sm:$0xff] }
 0x23f   :  { %5301 = vmatprep.subr.bf16.mxu0 %v8516_v56  ;;  %5465 = vmatprep.subr.bf16.mxu1 %v8518_v25  ;;  %v2406_v55 = vld [vmem:[#allocation9 + $0x8e0] sm:$0xff]  ;;  %v2403_v56 = vld [vmem:[#allocation9 + $0x8c8] sm:$0xff] }
 0x240   :  { %v2407_v25 = vld [vmem:[#allocation9 + $0x8e8] sm:$0xff]  ;;  %v8572_v61 = vcombine.high %v2402_v54, %v2406_v55  ;;  %v8571_v2 = vcombine.low %v2402_v54, %v2406_v55 }
 0x241   :  { %v8574_v62 = vcombine.high %v2403_v56, %v2407_v25  ;;  %v8573_v3 = vcombine.low %v2403_v56, %v2407_v25 }
 0x242   :  { %5302 = vmatpush1.bf16.msra.mxu0 %v8515_v41  ;;  %5466 = vmatpush1.bf16.msra.mxu1 %v8517_v63  ;;  %v2410_v41 = vld [vmem:[#allocation9 + $0x900] sm:$0xff] }
 0x243   :  { %5303 = vmatprep.subr.bf16.mxu0 %v8524_v0  ;;  %5467 = vmatprep.subr.bf16.mxu1 %v8526_v1  ;;  %v2414_v63 = vld [vmem:[#allocation9 + $0x920] sm:$0xff]  ;;  %v2411_v0 = vld [vmem:[#allocation9 + $0x908] sm:$0xff] }
 0x244   :  { %v2415_v1 = vld [vmem:[#allocation9 + $0x928] sm:$0xff]  ;;  %v8580_v4 = vcombine.high %v2410_v41, %v2414_v63  ;;  %v8579_v12 = vcombine.low %v2410_v41, %v2414_v63 }
 0x245   :  { %v8582_v6 = vcombine.high %v2411_v0, %v2415_v1  ;;  %v8581_v14 = vcombine.low %v2411_v0, %v2415_v1  ;;  %v2454_v1 = vld [vmem:[#allocation9 + $0xa60] sm:$0xff] }
 0x246   :  { %5304 = vmatpush1.bf16.msra.mxu0 %v8523_v7  ;;  %5468 = vmatpush1.bf16.msra.mxu1 %v8525_v9  ;;  %v2418_v7 = vld [vmem:[#allocation9 + $0x940] sm:$0xff] }
 0x247   :  { %5305 = vmatprep.subr.bf16.mxu0 %v8532_v10  ;;  %5469 = vmatprep.subr.bf16.mxu1 %v8534_v11  ;;  %v2422_v9 = vld [vmem:[#allocation9 + $0x960] sm:$0xff]  ;;  %v2419_v10 = vld [vmem:[#allocation9 + $0x948] sm:$0xff] }
 0x248   :  { %v2423_v11 = vld [vmem:[#allocation9 + $0x968] sm:$0xff]  ;;  %v8588_v15 = vcombine.high %v2418_v7, %v2422_v9  ;;  %v8587_v22 = vcombine.low %v2418_v7, %v2422_v9 }
 0x249   :  { %v8590_v17 = vcombine.high %v2419_v10, %v2423_v11  ;;  %v8589_v23 = vcombine.low %v2419_v10, %v2423_v11  ;;  %v8613_v11 = vcombine.low %v2443_v51, %v2447_v24 }
 0x24a   :  { %5306 = vmatpush1.bf16.msra.mxu0 %v8531_v18  ;;  %5470 = vmatpush1.bf16.msra.mxu1 %v8533_v19  ;;  %v2426_v18 = vld [vmem:[#allocation9 + $0x980] sm:$0xff] }
 0x24b   :  { %5307 = vmatprep.subr.bf16.mxu0 %v8540_v20  ;;  %5471 = vmatprep.subr.bf16.mxu1 %v8542_v21  ;;  %v2430_v19 = vld [vmem:[#allocation9 + $0x9a0] sm:$0xff]  ;;  %v2427_v20 = vld [vmem:[#allocation9 + $0x988] sm:$0xff] }
 0x24c   :  { %v2431_v21 = vld [vmem:[#allocation9 + $0x9a8] sm:$0xff]  ;;  %v8596_v27 = vcombine.high %v2426_v18, %v2430_v19  ;;  %v8595_v42 = vcombine.low %v2426_v18, %v2430_v19  ;;  %v2462_v19 = vld [vmem:[#allocation9 + $0xaa0] sm:$0xff] }
 0x24d   :  { %v8598_v28 = vcombine.high %v2427_v20, %v2431_v21  ;;  %v8597_v43 = vcombine.low %v2427_v20, %v2431_v21  ;;  %v2459_v20 = vld [vmem:[#allocation9 + $0xa88] sm:$0xff] }
 0x24e   :  { %5308 = vmatpush1.bf16.msra.mxu0 %v8539_v30  ;;  %5472 = vmatpush1.bf16.msra.mxu1 %v8541_v36  ;;  %v424_v30 = vsub.s32 5, %v10074_v31  ;;  %v2434_v36 = vld [vmem:[#allocation9 + $0x9c0] sm:$0xff]  ;;  %v2463_v21 = vld [vmem:[#allocation9 + $0xaa8] sm:$0xff] }
 0x24f   :  { %5318 = vmatprep.subr.bf16.mxu0 %v8548_v38  ;;  %5482 = vmatprep.subr.bf16.mxu1 %v8550_v39  ;;  %v2438_v38 = vld [vmem:[#allocation9 + $0x9e0] sm:$0xff]  ;;  %v2435_v39 = vld [vmem:[#allocation9 + $0x9c8] sm:$0xff] }
 0x250   :  { %v8603_v54 = vcombine.low %v2434_v36, %v2438_v38  ;;  %v8605_v55 = vcombine.low %v2435_v39, %v2439_v40 }
 0x251   :  { %5310 = vmatmul.mubr.bf16.vlgmr.msra.gmra.mrb[8].mxu0 %v10121_v47  ;;  %5474 = vmatmul.mubr.bf16.vlgmr.msra.gmra.mrb[8].mxu1 %v10121_v47 }
 0x252   :  { %5319 = vmatpush1.bf16.msra.mxu0 %v8547_v45  ;;  %5483 = vmatpush1.bf16.msra.mxu1 %v8549_v46  ;;  %v425_v45 = vrot.slane %v10079_v33, %v424_v30  ;;  %v8604_v46 = vcombine.high %v2434_v36, %v2438_v38  ;;  %v2450_v33 = vld [vmem:[#allocation9 + $0xa40] sm:$0xff] }
 0x253   :  { %5320 = vmatprep.subr.bf16.mxu0 %v8556_v48  ;;  %5484 = vmatprep.subr.bf16.mxu1 %v8558_v13  ;;  %v8606_v48 = vcombine.high %v2435_v39, %v2439_v40  ;;  %v2442_v13 = vld [vmem:[#allocation9 + $0xa00] sm:$0xff]  ;;  %v2467_v39 = vld [vmem:[#allocation9 + $0xac8] sm:$0xff] }
 0x254   :  { %v8611_v10 = vcombine.low %v2442_v13, %v2446_v50  ;;  %v2466_v36 = vld [vmem:[#allocation9 + $0xac0] sm:$0xff]  ;;  %v2471_v40 = vld [vmem:[#allocation9 + $0xae8] sm:$0xff] }
 0x255   :  { %v2470_v38 = vld [vmem:[#allocation9 + $0xae0] sm:$0xff] }
 0x256   :  { %5321 = vmatpush1.bf16.msra.mxu0 %v8555_v52  ;;  %5485 = vmatpush1.bf16.msra.mxu1 %v8557_v53 }
 0x257   :  { %5322 = vmatprep.subr.bf16.mxu0 %v8564_v59  ;;  %5486 = vmatprep.subr.bf16.mxu1 %v8566_v58 }
 0x25a   :  { %5323 = vmatpush1.bf16.msra.mxu0 %v8563_v57  ;;  %5487 = vmatpush1.bf16.msra.mxu1 %v8565_v60  ;;  %v8612_v60 = vcombine.high %v2442_v13, %v2446_v50  ;;  %v2475_v13 = vld [vmem:[#allocation9 + $0xb08] sm:$0xff]  ;;  %v8635_v50 = vcombine.low %v2466_v36, %v2470_v38 }
 0x25b   :  { %5324 = vmatprep.subr.bf16.mxu0 %v8572_v61  ;;  %5488 = vmatprep.subr.bf16.mxu1 %v8574_v62  ;;  %v8614_v61 = vcombine.high %v2443_v51, %v2447_v24  ;;  %v8637_v51 = vcombine.low %v2467_v39, %v2471_v40 }
 0x25e   :  { %5325 = vmatpush1.bf16.msra.mxu0 %v8571_v2  ;;  %5489 = vmatpush1.bf16.msra.mxu1 %v8573_v3  ;;  %v2451_v2 = vld [vmem:[#allocation9 + $0xa48] sm:$0xff] }
 0x25f   :  { %5326 = vmatprep.subr.bf16.mxu0 %v8580_v4  ;;  %5490 = vmatprep.subr.bf16.mxu1 %v8582_v6  ;;  %v2455_v3 = vld [vmem:[#allocation9 + $0xa68] sm:$0xff] }
 0x262   :  { %5327 = vmatpush1.bf16.msra.mxu0 %v8579_v12  ;;  %5491 = vmatpush1.bf16.msra.mxu1 %v8581_v14  ;;  %v8620_v14 = vcombine.high %v2450_v33, %v2454_v1 }
 0x263   :  { %5328 = vmatprep.subr.bf16.mxu0 %v8588_v15  ;;  %5492 = vmatprep.subr.bf16.mxu1 %v8590_v17  ;;  %v8622_v15 = vcombine.high %v2451_v2, %v2455_v3  ;;  %v2458_v17 = vld [vmem:[#allocation9 + $0xa80] sm:$0xff] }
 0x266   :  { %5329 = vmatpush1.bf16.msra.mxu0 %v8587_v22  ;;  %5493 = vmatpush1.bf16.msra.mxu1 %v8589_v23  ;;  %v8619_v22 = vcombine.low %v2450_v33, %v2454_v1  ;;  %v8621_v23 = vcombine.low %v2451_v2, %v2455_v3  ;;  %v2490_v2 = vld [vmem:[#allocation9 + $0xb80] sm:$0xff] }
 0x267   :  { %5330 = vmatprep.subr.bf16.mxu0 %v8596_v27  ;;  %5494 = vmatprep.subr.bf16.mxu1 %v8598_v28  ;;  %v8628_v27 = vcombine.high %v2458_v17, %v2462_v19  ;;  %v8630_v28 = vcombine.high %v2459_v20, %v2463_v21  ;;  %v2494_v3 = vld [vmem:[#allocation9 + $0xba0] sm:$0xff] }
 0x26a   :  { %v1961_v52 = vpop.f32.mrb[4].mxu0  ;;  %5331 = vmatpush1.bf16.msra.mxu0 %v8595_v42  ;;  %5495 = vmatpush1.bf16.msra.mxu1 %v8597_v43  ;;  %v10137_v59 = vpop.f32.mrb[4].mxu1  ;;  %v8627_v42 = vcombine.low %v2458_v17, %v2462_v19  ;;  %v8629_v43 = vcombine.low %v2459_v20, %v2463_v21  ;;  %v2502_v17 = vld [vmem:[#allocation9 + $0xbe0] sm:$0xff]  ;;  %v2503_v19 = vld [vmem:[#allocation9 + $0xbe8] sm:$0xff]  ;;  %v8659_v20 = vcombine.low %v2490_v2, %v2494_v3 }
 0x26b   :  { %v9076_v53 = vadd.f32 %v1961_v52, %v421_v44  ;;  %v1963_v58 = vpop.f32.mrb[5].mxu0  ;;  %v2045_v25 = vpop.f32.mrb[5].mxu1  ;;  %5332 = vmatprep.subr.bf16.mxu0 %v8604_v46  ;;  %5496 = vmatprep.subr.bf16.mxu1 %v8606_v48  ;;  %v8636_v44 = vcombine.high %v2466_v36, %v2470_v38  ;;  %v2474_v46 = vld [vmem:[#allocation9 + $0xb00] sm:$0xff]  ;;  %v2507_v36 = vld [vmem:[#allocation9 + $0xc08] sm:$0xff] }
 0x26c   :  { %v9077_v56 = vadd.f32 %v1963_v58, %v425_v45  ;;  %v1965_v57 = vpop.f32.mrb[6].mxu0  ;;  %v9079_v41 = vadd.f32 %v2045_v25, %v433_v49  ;;  %v2047_v63 = vpop.f32.mrb[6].mxu1  ;;  %v8638_v45 = vcombine.high %v2467_v39, %v2471_v40  ;;  %v2478_v48 = vld [vmem:[#allocation9 + $0xb20] sm:$0xff]  ;;  %v2479_v49 = vld [vmem:[#allocation9 + $0xb28] sm:$0xff] }
 0x26d   :  { %v10139_v62 = vpack.c.bf16 %v9076_v53, %v9076_v53  ;;  %v1966_v0 = vpop.f32.mrb[7].mxu0  ;;  %v2048_v6 = vpop.f32.mrb[7].mxu1  ;;  %v8644_v52 = vcombine.high %v2474_v46, %v2478_v48  ;;  %v8646_v53 = vcombine.high %v2475_v13, %v2479_v49  ;;  %v2482_v58 = vld [vmem:[#allocation9 + $0xb40] sm:$0xff]  ;;  %v2487_v25 = vld [vmem:[#allocation9 + $0xb68] sm:$0xff]  ;;  %v8643_v33 = vcombine.low %v2474_v46, %v2478_v48 }
 0x26e   :  { %v10141_v4 = vpack.c.bf16 %v9077_v56, %v9077_v56  ;;  %v10144_v9 = vpack.c.bf16 %v9079_v41, %v9079_v41  ;;  %5333 = vmatpush1.bf16.msra.mxu0 %v8603_v54  ;;  %5497 = vmatpush1.bf16.msra.mxu1 %v8605_v55  ;;  %v2486_v55 = vld [vmem:[#allocation9 + $0xb60] sm:$0xff]  ;;  %v2483_v56 = vld [vmem:[#allocation9 + $0xb48] sm:$0xff]  ;;  %v8645_v41 = vcombine.low %v2475_v13, %v2479_v49 }
 0x26f   :  { %v8287_v7 = vmul.bf16 3216621497, %v10139_v62  ;;  %5334 = vmatprep.subr.bf16.mxu0 %v8612_v60  ;;  %5498 = vmatprep.subr.bf16.mxu1 %v8614_v61  ;;  %v8652_v0 = vcombine.high %v2482_v58, %v2486_v55  ;;  %v8654_v1 = vcombine.high %v2483_v56, %v2487_v25  ;;  %v2491_v6 = vld [vmem:[#allocation9 + $0xb88] sm:$0xff]  ;;  %v2514_v49 = vld [vmem:[#allocation9 + $0xc40] sm:$0xff] }
 0x270   :  { %v8288_v12 = vmul.bf16 3216621497, %v10141_v4  ;;  %v8290_v18 = vmul.bf16 3216621497, %v10144_v9  ;;  %v2511_v38 = vld [vmem:[#allocation9 + $0xc28] sm:$0xff] }
 0x271   :  { %9598 = vpow.bf16 %v8287_v7  ;;  %v2495_v7 = vld [vmem:[#allocation9 + $0xba8] sm:$0xff]  ;;  %v8678_v46 = vcombine.high %v2507_v36, %v2511_v38 }
 0x272   :  { %9600 = vpow.bf16 %v8288_v12  ;;  %5335 = vmatpush1.bf16.msra.mxu0 %v8611_v10  ;;  %5499 = vmatpush1.bf16.msra.mxu1 %v8613_v11  ;;  %v8651_v10 = vcombine.low %v2482_v58, %v2486_v55  ;;  %v8653_v11 = vcombine.low %v2483_v56, %v2487_v25  ;;  %v8660_v12 = vcombine.high %v2490_v2, %v2494_v3  ;;  %v2522_v56 = vld [vmem:[#allocation9 + $0xc80] sm:$0xff]  ;;  %v2535_v3 = vld [vmem:[#allocation9 + $0xce8] sm:$0xff] }
 0x273   :  { %9602 = vpow.bf16 %v8290_v18  ;;  %5336 = vmatprep.subr.bf16.mxu0 %v8620_v14  ;;  %5500 = vmatprep.subr.bf16.mxu1 %v8622_v15  ;;  %v8662_v14 = vcombine.high %v2491_v6, %v2495_v7  ;;  %v2498_v15 = vld [vmem:[#allocation9 + $0xbc0] sm:$0xff]  ;;  %v2499_v18 = vld [vmem:[#allocation9 + $0xbc8] sm:$0xff]  ;;  %v8661_v21 = vcombine.low %v2491_v6, %v2495_v7 }
 0x274   :  { %v8667_v40 = vcombine.low %v2498_v15, %v2502_v17  ;;  %v2534_v2 = vld [vmem:[#allocation9 + $0xce0] sm:$0xff] }
 0x276   :  { %5337 = vmatpush1.bf16.msra.mxu0 %v8619_v22  ;;  %5501 = vmatpush1.bf16.msra.mxu1 %v8621_v23  ;;  %v8668_v22 = vcombine.high %v2498_v15, %v2502_v17  ;;  %v8670_v23 = vcombine.high %v2499_v18, %v2503_v19  ;;  %v2542_v15 = vld [vmem:[#allocation9 + $0xd20] sm:$0xff]  ;;  %v2539_v17 = vld [vmem:[#allocation9 + $0xd08] sm:$0xff] }
 0x277   :  { %5338 = vmatprep.subr.bf16.mxu0 %v8628_v27  ;;  %5502 = vmatprep.subr.bf16.mxu1 %v8630_v28  ;;  %v2506_v27 = vld [vmem:[#allocation9 + $0xc00] sm:$0xff] }
 0x278   :  { %v2510_v28 = vld [vmem:[#allocation9 + $0xc20] sm:$0xff] }
 0x279   :  { %v8675_v58 = vcombine.low %v2506_v27, %v2510_v28 }
 0x27a   :  { %5339 = vmatpush1.bf16.msra.mxu0 %v8627_v42  ;;  %5503 = vmatpush1.bf16.msra.mxu1 %v8629_v43  ;;  %v8669_v42 = vcombine.low %v2499_v18, %v2503_v19  ;;  %v2543_v18 = vld [vmem:[#allocation9 + $0xd28] sm:$0xff] }
 0x27b   :  { %5340 = vmatprep.subr.bf16.mxu0 %v8636_v44  ;;  %5504 = vmatprep.subr.bf16.mxu1 %v8638_v45  ;;  %v8676_v45 = vcombine.high %v2506_v27, %v2510_v28  ;;  %v8710_v27 = vcombine.high %v2539_v17, %v2543_v18  ;;  %v2546_v28 = vld [vmem:[#allocation9 + $0xd40] sm:$0xff] }
 0x27c   :  { %v9599_v24 = vpop.eup %9598 }
 0x27d   :  { %v2094_v54 = vadd.bf16 1065369472, %v9599_v24  ;;  %v9601_v57 = vpop.eup %9600  ;;  %v2515_v24 = vld [vmem:[#allocation9 + $0xc48] sm:$0xff] }
 0x27e   :  { %v9603_v60 = vpop.eup %9602  ;;  %v2095_v61 = vadd.bf16 1065369472, %v9601_v57  ;;  %5341 = vmatpush1.bf16.msra.mxu0 %v8635_v50  ;;  %5505 = vmatpush1.bf16.msra.mxu1 %v8637_v51  ;;  %v2518_v51 = vld [vmem:[#allocation9 + $0xc60] sm:$0xff] }
 0x27f   :  { %9604 = vrcp.bf16 %v2094_v54  ;;  %v2097_v63 = vadd.bf16 1065369472, %v9603_v60  ;;  %5342 = vmatprep.subr.bf16.mxu0 %v8644_v52  ;;  %5506 = vmatprep.subr.bf16.mxu1 %v8646_v53  ;;  %v2519_v52 = vld [vmem:[#allocation9 + $0xc68] sm:$0xff]  ;;  %v8677_v54 = vcombine.low %v2507_v36, %v2511_v38  ;;  %v8684_v25 = vcombine.high %v2514_v49, %v2518_v51  ;;  %v2526_v60 = vld [vmem:[#allocation9 + $0xca0] sm:$0xff] }
 0x280   :  { %9606 = vrcp.bf16 %v2095_v61  ;;  %v8686_v57 = vcombine.high %v2515_v24, %v2519_v52  ;;  %v2523_v61 = vld [vmem:[#allocation9 + $0xc88] sm:$0xff]  ;;  %v8691_v6 = vcombine.low %v2522_v56, %v2526_v60  ;;  %v2550_v36 = vld [vmem:[#allocation9 + $0xd60] sm:$0xff] }
 0x281   :  { %9608 = vrcp.bf16 %v2097_v63  ;;  %v8692_v63 = vcombine.high %v2522_v56, %v2526_v60  ;;  %v2547_v38 = vld [vmem:[#allocation9 + $0xd48] sm:$0xff] }
 0x282   :  { %5343 = vmatpush1.bf16.msra.mxu0 %v8643_v33  ;;  %5507 = vmatpush1.bf16.msra.mxu1 %v8645_v41  ;;  %v8685_v41 = vcombine.low %v2515_v24, %v2519_v52  ;;  %v2563_v56 = vld [vmem:[#allocation9 + $0xdc8] sm:$0xff] }
 0x283   :  { %5344 = vmatprep.subr.bf16.mxu0 %v8652_v0  ;;  %5508 = vmatprep.subr.bf16.mxu1 %v8654_v1  ;;  %v2530_v1 = vld [vmem:[#allocation9 + $0xcc0] sm:$0xff] }
 0x284   :  { %v8699_v19 = vcombine.low %v2530_v1, %v2534_v2 }
 0x286   :  { %5345 = vmatpush1.bf16.msra.mxu0 %v8651_v10  ;;  %5509 = vmatpush1.bf16.msra.mxu1 %v8653_v11  ;;  %v428_v10 = vsub.s32 6, %v10074_v31  ;;  %v8700_v11 = vcombine.high %v2530_v1, %v2534_v2  ;;  %v2575_v1 = vld [vmem:[#allocation9 + $0xe28] sm:$0xff] }
 0x287   :  { %5346 = vmatprep.subr.bf16.mxu0 %v8660_v12  ;;  %5510 = vmatprep.subr.bf16.mxu1 %v8662_v14  ;;  %v2538_v14 = vld [vmem:[#allocation9 + $0xd00] sm:$0xff] }
 0x28a   :  { %v9605_v39 = vpop.eup %9604  ;;  %5347 = vmatpush1.bf16.msra.mxu0 %v8659_v20  ;;  %5511 = vmatpush1.bf16.msra.mxu1 %v8661_v21  ;;  %v9662_v21 = vld [vmem:[#allocation8] sm:$0xff] }
 0x28b   :  { %v9607_v43 = vpop.eup %9606  ;;  %v2107_v44 = vmul.bf16 1065369472, %v9605_v39  ;;  %5348 = vmatprep.subr.bf16.mxu0 %v8668_v22  ;;  %5512 = vmatprep.subr.bf16.mxu1 %v8670_v23  ;;  %v429_v22 = vrot.slane %v9662_v21, %v428_v10  ;;  %v8708_v23 = vcombine.high %v2538_v14, %v2542_v15  ;;  %v2551_v39 = vld [vmem:[#allocation9 + $0xd68] sm:$0xff]  ;;  %v2590_v21 = vld [vmem:[#allocation9 + $0xea0] sm:$0xff] }
 0x28c   :  { %v9609_v48 = vpop.eup %9608  ;;  %v2109_v13 = vmul.bf16 1065369472, %v9607_v43 }
 0x28d   :  { %v2113_v50 = vmul.bf16 1065369472, %v9609_v48  ;;  %v10152_v55 = vmul.bf16 %v2107_v44, %v10139_v62  ;;  %v8683_v62 = vcombine.low %v2514_v49, %v2518_v51  ;;  %v9078_v43 = vadd.f32 %v10137_v59, %v429_v22  ;;  %v2558_v48 = vld [vmem:[#allocation9 + $0xda0] sm:$0xff]  ;;  %v2559_v49 = vld [vmem:[#allocation9 + $0xda8] sm:$0xff] }
 0x28e   :  { %v10149_v53 = vmul.bf16 %v2109_v13, %v10141_v4  ;;  %5349 = vmatpush1.bf16.msra.mxu0 %v8667_v40  ;;  %5513 = vmatpush1.bf16.msra.mxu1 %v8669_v42  ;;  %v2527_v4 = vld [vmem:[#allocation9 + $0xca8] sm:$0xff]  ;;  %v8707_v40 = vcombine.low %v2538_v14, %v2542_v15  ;;  %v8709_v42 = vcombine.low %v2539_v17, %v2543_v18  ;;  %v2566_v59 = vld [vmem:[#allocation9 + $0xde0] sm:$0xff] }
 0x28f   :  { %5359 = vmatprep.subr.bf16.mxu0 %v8676_v45  ;;  %5523 = vmatprep.subr.bf16.mxu1 %v8678_v46  ;;  %v10157_v33 = vmul.bf16 %v2113_v50, %v10144_v9  ;;  %v8694_v0 = vcombine.high %v2523_v61, %v2527_v4  ;;  %v2531_v9 = vld [vmem:[#allocation9 + $0xcc8] sm:$0xff]  ;;  %v8693_v7 = vcombine.low %v2523_v61, %v2527_v4  ;;  %v2554_v46 = vld [vmem:[#allocation9 + $0xd80] sm:$0xff] }
 0x290   :  { %5350 = vmatprep.mubr.bf16.mxu0 %v10149_v53  ;;  %5514 = vmatprep.mubr.bf16.mxu1 %v10149_v53  ;;  %v8702_v12 = vcombine.high %v2531_v9, %v2535_v3  ;;  %v8701_v20 = vcombine.low %v2531_v9, %v2535_v3  ;;  %v8716_v44 = vcombine.high %v2546_v28, %v2550_v36  ;;  %v2555_v13 = vld [vmem:[#allocation9 + $0xd88] sm:$0xff] }
 0x291   :  { %5351 = vmatmul.mubr.bf16.vlgmr.msra.gmra.mrb[8].mxu0 %v10152_v55  ;;  %5515 = vmatmul.mubr.bf16.vlgmr.msra.gmra.mrb[8].mxu1 %v10152_v55  ;;  %v8718_v45 = vcombine.high %v2547_v38, %v2551_v39  ;;  %v8715_v50 = vcombine.low %v2546_v28, %v2550_v36  ;;  %v8717_v51 = vcombine.low %v2547_v38, %v2551_v39  ;;  %v2583_v14 = vld [vmem:[#allocation9 + $0xe68] sm:$0xff]  ;;  %v2594_v39 = vld [vmem:[#allocation9 + $0xec0] sm:$0xff] }
 0x292   :  { %5360 = vmatpush1.bf16.msra.mxu0 %v8675_v58  ;;  %5524 = vmatpush1.bf16.msra.mxu1 %v8677_v54  ;;  %v10167_v24 = vpack.c.bf16 %v9078_v43, %v9078_v43  ;;  %v8724_v52 = vcombine.high %v2554_v46, %v2558_v48  ;;  %v8726_v58 = vcombine.high %v2555_v13, %v2559_v49  ;;  %v2562_v54 = vld [vmem:[#allocation9 + $0xdc0] sm:$0xff]  ;;  %v2587_v22 = vld [vmem:[#allocation9 + $0xe88] sm:$0xff] }
 0x293   :  { %5391 = vmatprep.mubr.bf16.mxu0 %v10157_v33  ;;  %5555 = vmatprep.mubr.bf16.mxu1 %v10157_v33  ;;  %v8725_v60 = vcombine.low %v2555_v13, %v2559_v49  ;;  %v8732_v4 = vcombine.high %v2562_v54, %v2566_v59  ;;  %v8731_v2 = vcombine.low %v2562_v54, %v2566_v59  ;;  %v2599_v43 = vld [vmem:[#allocation9 + $0xee8] sm:$0xff]  ;;  %v2602_v49 = vld [vmem:[#allocation9 + $0xf00] sm:$0xff] }
 0x294   :  { %5361 = vmatprep.subr.bf16.mxu0 %v8684_v25  ;;  %5525 = vmatprep.subr.bf16.mxu1 %v8686_v57  ;;  %v2567_v25 = vld [vmem:[#allocation9 + $0xde8] sm:$0xff]  ;;  %v8723_v57 = vcombine.low %v2554_v46, %v2558_v48  ;;  %v8289_v61 = vmul.bf16 3216621497, %v10167_v24 }
 0x295   :  { %v8733_v9 = vcombine.low %v2563_v56, %v2567_v25 }
 0x296   :  { %5362 = vmatpush1.bf16.msra.mxu0 %v8683_v62  ;;  %5526 = vmatpush1.bf16.msra.mxu1 %v8685_v41  ;;  %v8734_v62 = vcombine.high %v2563_v56, %v2567_v25  ;;  %v2570_v41 = vld [vmem:[#allocation9 + $0xe00] sm:$0xff]  ;;  %9610 = vpow.bf16 %v8289_v61  ;;  %v2611_v61 = vld [vmem:[#allocation9 + $0xf48] sm:$0xff] }
 0x297   :  { %5363 = vmatprep.subr.bf16.mxu0 %v8692_v63  ;;  %5527 = vmatprep.subr.bf16.mxu1 %v8694_v0  ;;  %v2574_v63 = vld [vmem:[#allocation9 + $0xe20] sm:$0xff]  ;;  %v2571_v0 = vld [vmem:[#allocation9 + $0xe08] sm:$0xff] }
 0x298   :  { %v8740_v3 = vcombine.high %v2570_v41, %v2574_v63  ;;  %v8739_v15 = vcombine.low %v2570_v41, %v2574_v63  ;;  %v8741_v17 = vcombine.low %v2571_v0, %v2575_v1 }
 0x29a   :  { %5364 = vmatpush1.bf16.msra.mxu0 %v8691_v6  ;;  %5528 = vmatpush1.bf16.msra.mxu1 %v8693_v7  ;;  %v8742_v6 = vcombine.high %v2571_v0, %v2575_v1  ;;  %v2578_v7 = vld [vmem:[#allocation9 + $0xe40] sm:$0xff] }
 0x29b   :  { %5365 = vmatprep.subr.bf16.mxu0 %v8700_v11  ;;  %5529 = vmatprep.subr.bf16.mxu1 %v8702_v12  ;;  %v2582_v11 = vld [vmem:[#allocation9 + $0xe60] sm:$0xff]  ;;  %v2579_v12 = vld [vmem:[#allocation9 + $0xe48] sm:$0xff] }
 0x29c   :  { %v8748_v18 = vcombine.high %v2578_v7, %v2582_v11  ;;  %v8749_v28 = vcombine.low %v2579_v12, %v2583_v14  ;;  %v2618_v1 = vld [vmem:[#allocation9 + $0xf80] sm:$0xff] }
 0x29e   :  { %5366 = vmatpush1.bf16.msra.mxu0 %v8699_v19  ;;  %5530 = vmatpush1.bf16.msra.mxu1 %v8701_v20  ;;  %v8750_v19 = vcombine.high %v2579_v12, %v2583_v14  ;;  %v2586_v20 = vld [vmem:[#allocation9 + $0xe80] sm:$0xff] }
 0x29f   :  { %5367 = vmatprep.subr.bf16.mxu0 %v8708_v23  ;;  %5531 = vmatprep.subr.bf16.mxu1 %v8710_v27  ;;  %v2591_v23 = vld [vmem:[#allocation9 + $0xea8] sm:$0xff]  ;;  %v8747_v27 = vcombine.low %v2578_v7, %v2582_v11  ;;  %v8756_v36 = vcombine.high %v2586_v20, %v2590_v21  ;;  %v2626_v14 = vld [vmem:[#allocation9 + $0xfc0] sm:$0xff] }
 0x2a0   :  { %v8758_v38 = vcombine.high %v2587_v22, %v2591_v23  ;;  %v8757_v46 = vcombine.low %v2587_v22, %v2591_v23  ;;  %v2124_v23 = vld [vmem:[#allocation9 + $0x10] sm:$0xff] }
 0x2a2   :  { %5368 = vmatpush1.bf16.msra.mxu0 %v8707_v40  ;;  %5532 = vmatpush1.bf16.msra.mxu1 %v8709_v42  ;;  %v2598_v40 = vld [vmem:[#allocation9 + $0xee0] sm:$0xff]  ;;  %v2595_v42 = vld [vmem:[#allocation9 + $0xec8] sm:$0xff] }
 0x2a3   :  { %5369 = vmatprep.subr.bf16.mxu0 %v8716_v44  ;;  %5533 = vmatprep.subr.bf16.mxu1 %v8718_v45  ;;  %v9611_v44 = vpop.eup %9610  ;;  %v8755_v45 = vcombine.low %v2586_v20, %v2590_v21  ;;  %v8764_v48 = vcombine.high %v2594_v39, %v2598_v40  ;;  %v8766_v13 = vcombine.high %v2595_v42, %v2599_v43 }
 0x2a4   :  { %v8763_v54 = vcombine.low %v2594_v39, %v2598_v40  ;;  %v8765_v59 = vcombine.low %v2595_v42, %v2599_v43 }
 0x2a6   :  { %5370 = vmatpush1.bf16.msra.mxu0 %v8715_v50  ;;  %5534 = vmatpush1.bf16.msra.mxu1 %v8717_v51  ;;  %v2606_v50 = vld [vmem:[#allocation9 + $0xf20] sm:$0xff]  ;;  %v2603_v51 = vld [vmem:[#allocation9 + $0xf08] sm:$0xff] }
 0x2a7   :  { %5371 = vmatprep.subr.bf16.mxu0 %v8724_v52  ;;  %5535 = vmatprep.subr.bf16.mxu1 %v8726_v58  ;;  %v2607_v52 = vld [vmem:[#allocation9 + $0xf28] sm:$0xff]  ;;  %v2096_v58 = vadd.bf16 1065369472, %v9611_v44  ;;  %v8772_v56 = vcombine.high %v2602_v49, %v2606_v50 }
 0x2a8   :  { %v8774_v25 = vcombine.high %v2603_v51, %v2607_v52  ;;  %v8773_v41 = vcombine.low %v2603_v51, %v2607_v52 }
 0x2a9   :  { %9612 = vrcp.bf16 %v2096_v58 }
 0x2aa   :  { %5372 = vmatpush1.bf16.msra.mxu0 %v8723_v57  ;;  %5536 = vmatpush1.bf16.msra.mxu1 %v8725_v60  ;;  %v2610_v57 = vld [vmem:[#allocation9 + $0xf40] sm:$0xff] }
 0x2ab   :  { %5373 = vmatprep.subr.bf16.mxu0 %v8732_v4  ;;  %5537 = vmatprep.subr.bf16.mxu1 %v8734_v62  ;;  %v2614_v60 = vld [vmem:[#allocation9 + $0xf60] sm:$0xff]  ;;  %v2615_v4 = vld [vmem:[#allocation9 + $0xf68] sm:$0xff]  ;;  %v8771_v62 = vcombine.low %v2602_v49, %v2606_v50 }
 0x2ac   :  { %v8780_v63 = vcombine.high %v2610_v57, %v2614_v60  ;;  %v8782_v0 = vcombine.high %v2611_v61, %v2615_v4  ;;  %v8781_v7 = vcombine.low %v2611_v61, %v2615_v4  ;;  %v2148_v4 = vld [vmem:[#allocation9 + $0xd0] sm:$0xff] }
 0x2ae   :  { %5374 = vmatpush1.bf16.msra.mxu0 %v8731_v2  ;;  %5538 = vmatpush1.bf16.msra.mxu1 %v8733_v9  ;;  %v2622_v2 = vld [vmem:[#allocation9 + $0xfa0] sm:$0xff]  ;;  %v2619_v9 = vld [vmem:[#allocation9 + $0xf88] sm:$0xff] }
 0x2af   :  { %5375 = vmatprep.subr.bf16.mxu0 %v8740_v3  ;;  %5539 = vmatprep.subr.bf16.mxu1 %v8742_v6  ;;  %v2623_v3 = vld [vmem:[#allocation9 + $0xfa8] sm:$0xff]  ;;  %v8779_v6 = vcombine.low %v2610_v57, %v2614_v60  ;;  %v8788_v11 = vcombine.high %v2618_v1, %v2622_v2 }
 0x2b0   :  { %v8790_v12 = vcombine.high %v2619_v9, %v2623_v3  ;;  %v8789_v20 = vcombine.low %v2619_v9, %v2623_v3  ;;  %v2156_v3 = vld [vmem:[#allocation9 + $0x110] sm:$0xff] }
 0x2b2   :  { %5376 = vmatpush1.bf16.msra.mxu0 %v8739_v15  ;;  %5540 = vmatpush1.bf16.msra.mxu1 %v8741_v17  ;;  %v2630_v15 = vld [vmem:[#allocation9 + $0xfe0] sm:$0xff]  ;;  %v2627_v17 = vld [vmem:[#allocation9 + $0xfc8] sm:$0xff] }
 0x2b3   :  { %5377 = vmatprep.subr.bf16.mxu0 %v8748_v18  ;;  %5541 = vmatprep.subr.bf16.mxu1 %v8750_v19  ;;  %v2631_v18 = vld [vmem:[#allocation9 + $0xfe8] sm:$0xff]  ;;  %v8787_v19 = vcombine.low %v2618_v1, %v2622_v2  ;;  %v8796_v21 = vcombine.high %v2626_v14, %v2630_v15  ;;  %v8795_v39 = vcombine.low %v2626_v14, %v2630_v15 }
 0x2b4   :  { %v8798_v22 = vcombine.high %v2627_v17, %v2631_v18  ;;  %v8797_v40 = vcombine.low %v2627_v17, %v2631_v18  ;;  %v2164_v17 = vld [vmem:[#allocation9 + $0x150] sm:$0xff] }
 0x2b5   :  { %v2168_v18 = vld [vmem:[#allocation9 + $0x170] sm:$0xff] }
 0x2b6   :  { %5378 = vmatpush1.bf16.msra.mxu0 %v8747_v27  ;;  %5542 = vmatpush1.bf16.msra.mxu1 %v8749_v28  ;;  %v9613_v27 = vpop.eup %9612  ;;  %v2128_v28 = vld [vmem:[#allocation9 + $0x30] sm:$0xff] }
 0x2b7   :  { %5379 = vmatprep.subr.bf16.mxu0 %v8756_v36  ;;  %5543 = vmatprep.subr.bf16.mxu1 %v8758_v38  ;;  %v2125_v36 = vld [vmem:[#allocation9 + $0x18] sm:$0xff]  ;;  %v2111_v42 = vmul.bf16 1065369472, %v9613_v27  ;;  %v8296_v43 = vcombine.high %v2124_v23, %v2128_v28  ;;  %v8295_v49 = vcombine.low %v2124_v23, %v2128_v28  ;;  %v8336_v23 = vcombine.high %v2164_v17, %v2168_v18  ;;  %v2172_v28 = vld [vmem:[#allocation9 + $0x190] sm:$0xff] }
 0x2b8   :  { %v2129_v38 = vld [vmem:[#allocation9 + $0x38] sm:$0xff] }
 0x2b9   :  { %v8298_v44 = vcombine.high %v2125_v36, %v2129_v38  ;;  %v10171_v50 = vmul.bf16 %v2111_v42, %v10167_v24  ;;  %v8297_v51 = vcombine.low %v2125_v36, %v2129_v38  ;;  %v2176_v36 = vld [vmem:[#allocation9 + $0x1b0] sm:$0xff]  ;;  %v2173_v38 = vld [vmem:[#allocation9 + $0x198] sm:$0xff] }
 0x2ba   :  { %5380 = vmatpush1.bf16.msra.mxu0 %v8755_v45  ;;  %5544 = vmatpush1.bf16.msra.mxu1 %v8757_v46  ;;  %v2132_v45 = vld [vmem:[#allocation9 + $0x50] sm:$0xff] }
 0x2bb   :  { %5381 = vmatprep.subr.bf16.mxu0 %v8764_v48  ;;  %5545 = vmatprep.subr.bf16.mxu1 %v8766_v13  ;;  %v2136_v46 = vld [vmem:[#allocation9 + $0x70] sm:$0xff]  ;;  %v2133_v48 = vld [vmem:[#allocation9 + $0x58] sm:$0xff] }
 0x2bc   :  { %v2137_v13 = vld [vmem:[#allocation9 + $0x78] sm:$0xff]  ;;  %v8304_v52 = vcombine.high %v2132_v45, %v2136_v46  ;;  %v8303_v57 = vcombine.low %v2132_v45, %v2136_v46  ;;  %v2180_v45 = vld [vmem:[#allocation9 + $0x1d0] sm:$0xff] }
 0x2bd   :  { %v8306_v58 = vcombine.high %v2133_v48, %v2137_v13  ;;  %v8305_v24 = vcombine.low %v2133_v48, %v2137_v13  ;;  %v2184_v46 = vld [vmem:[#allocation9 + $0x1f0] sm:$0xff]  ;;  %v2181_v48 = vld [vmem:[#allocation9 + $0x1d8] sm:$0xff] }
 0x2be   :  { %5382 = vmatpush1.bf16.msra.mxu0 %v8763_v54  ;;  %5546 = vmatpush1.bf16.msra.mxu1 %v8765_v59  ;;  %v2140_v54 = vld [vmem:[#allocation9 + $0x90] sm:$0xff]  ;;  %v2185_v13 = vld [vmem:[#allocation9 + $0x1f8] sm:$0xff] }
 0x2bf   :  { %5383 = vmatprep.subr.bf16.mxu0 %v8772_v56  ;;  %5547 = vmatprep.subr.bf16.mxu1 %v8774_v25  ;;  %v2144_v59 = vld [vmem:[#allocation9 + $0xb0] sm:$0xff]  ;;  %v2141_v56 = vld [vmem:[#allocation9 + $0x98] sm:$0xff] }
 0x2c0   :  { %v2145_v25 = vld [vmem:[#allocation9 + $0xb8] sm:$0xff]  ;;  %v8312_v60 = vcombine.high %v2140_v54, %v2144_v59 }
 0x2c1   :  { %v8314_v61 = vcombine.high %v2141_v56, %v2145_v25  ;;  %v8313_v1 = vcombine.low %v2141_v56, %v2145_v25  ;;  %v2189_v56 = vld [vmem:[#allocation9 + $0x218] sm:$0xff] }
 0x2c2   :  { %5384 = vmatpush1.bf16.msra.mxu0 %v8771_v62  ;;  %5548 = vmatpush1.bf16.msra.mxu1 %v8773_v41  ;;  %v2152_v62 = vld [vmem:[#allocation9 + $0xf0] sm:$0xff]  ;;  %v2149_v41 = vld [vmem:[#allocation9 + $0xd8] sm:$0xff] }
 0x2c3   :  { %5385 = vmatprep.subr.bf16.mxu0 %v8780_v63  ;;  %5549 = vmatprep.subr.bf16.mxu1 %v8782_v0  ;;  %v2153_v63 = vld [vmem:[#allocation9 + $0xf8] sm:$0xff]  ;;  %v8311_v0 = vcombine.low %v2140_v54, %v2144_v59  ;;  %v8320_v2 = vcombine.high %v2148_v4, %v2152_v62  ;;  %v2188_v54 = vld [vmem:[#allocation9 + $0x210] sm:$0xff] }
 0x2c4   :  { %v8322_v9 = vcombine.high %v2149_v41, %v2153_v63  ;;  %v2192_v59 = vld [vmem:[#allocation9 + $0x230] sm:$0xff]  ;;  %v2193_v25 = vld [vmem:[#allocation9 + $0x238] sm:$0xff] }
 0x2c6   :  { %5386 = vmatpush1.bf16.msra.mxu0 %v8779_v6  ;;  %5550 = vmatpush1.bf16.msra.mxu1 %v8781_v7  ;;  %v2160_v6 = vld [vmem:[#allocation9 + $0x130] sm:$0xff]  ;;  %v2161_v7 = vld [vmem:[#allocation9 + $0x138] sm:$0xff] }
 0x2c7   :  { %5387 = vmatprep.subr.bf16.mxu0 %v8788_v11  ;;  %5551 = vmatprep.subr.bf16.mxu1 %v8790_v12  ;;  %v8319_v11 = vcombine.low %v2148_v4, %v2152_v62  ;;  %v8321_v12 = vcombine.low %v2149_v41, %v2153_v63  ;;  %v8328_v14 = vcombine.high %v2156_v3, %v2160_v6  ;;  %v2196_v4 = vld [vmem:[#allocation9 + $0x250] sm:$0xff]  ;;  %v2197_v41 = vld [vmem:[#allocation9 + $0x258] sm:$0xff] }
 0x2c8   :  { %v2200_v62 = vld [vmem:[#allocation9 + $0x270] sm:$0xff]  ;;  %v2201_v63 = vld [vmem:[#allocation9 + $0x278] sm:$0xff] }
 0x2ca   :  { %5388 = vmatpush1.bf16.msra.mxu0 %v8787_v19  ;;  %5552 = vmatpush1.bf16.msra.mxu1 %v8789_v20  ;;  %v2165_v19 = vld [vmem:[#allocation9 + $0x158] sm:$0xff] }
 0x2cb   :  { %5389 = vmatprep.subr.bf16.mxu0 %v8796_v21  ;;  %5553 = vmatprep.subr.bf16.mxu1 %v8798_v22  ;;  %v2169_v20 = vld [vmem:[#allocation9 + $0x178] sm:$0xff]  ;;  %v8327_v21 = vcombine.low %v2156_v3, %v2160_v6  ;;  %v2204_v3 = vld [vmem:[#allocation9 + $0x290] sm:$0xff] }
 0x2cc   :  { %v8338_v27 = vcombine.high %v2165_v19, %v2169_v20  ;;  %v8337_v42 = vcombine.low %v2165_v19, %v2169_v20  ;;  %v2208_v6 = vld [vmem:[#allocation9 + $0x2b0] sm:$0xff]  ;;  %v2213_v19 = vld [vmem:[#allocation9 + $0x2d8] sm:$0xff] }
 0x2cd   :  { %v2217_v20 = vld [vmem:[#allocation9 + $0x2f8] sm:$0xff] }
 0x2ce   :  { %5390 = vmatpush1.bf16.msra.mxu0 %v8795_v39  ;;  %5554 = vmatpush1.bf16.msra.mxu1 %v8797_v40  ;;  %v2177_v39 = vld [vmem:[#allocation9 + $0x1b8] sm:$0xff]  ;;  %v8335_v40 = vcombine.low %v2164_v17, %v2168_v18  ;;  %v2212_v17 = vld [vmem:[#allocation9 + $0x2d0] sm:$0xff] }
 0x2cf   :  { %5564 = vmatprep.subr.bf16.mxu0 %v8296_v43  ;;  %5728 = vmatprep.subr.bf16.mxu1 %v8298_v44  ;;  %v8344_v43 = vcombine.high %v2172_v28, %v2176_v36  ;;  %v8346_v44 = vcombine.high %v2173_v38, %v2177_v39  ;;  %v2216_v18 = vld [vmem:[#allocation9 + $0x2f0] sm:$0xff] }
 0x2d1   :  { %5392 = vmatmul.mubr.bf16.vlgmr.msra.gmra.mrb[8].mxu0 %v10171_v50  ;;  %5556 = vmatmul.mubr.bf16.vlgmr.msra.gmra.mrb[8].mxu1 %v10171_v50 }
 0x2d2   :  { %5565 = vmatpush1.bf16.msra.mxu0 %v8295_v49  ;;  %5596 = vmatprep.mubr.bf16.mxu0 %v10095_v5  ;;  %v8343_v49 = vcombine.low %v2172_v28, %v2176_v36  ;;  %v2220_v28 = vld [vmem:[#allocation9 + $0x310] sm:$0xff] }
 0x2d3   :  { %5729 = vmatpush1.bf16.msra.mxu1 %v8297_v51  ;;  %5760 = vmatprep.mubr.bf16.mxu1 %v10095_v5  ;;  %v2157_v5 = vld [vmem:[#allocation9 + $0x118] sm:$0xff]  ;;  %v8345_v51 = vcombine.low %v2173_v38, %v2177_v39  ;;  %v2224_v36 = vld [vmem:[#allocation9 + $0x330] sm:$0xff] }
 0x2d4   :  { %5566 = vmatprep.subr.bf16.mxu0 %v8304_v52  ;;  %5730 = vmatprep.subr.bf16.mxu1 %v8306_v58  ;;  %v8330_v15 = vcombine.high %v2157_v5, %v2161_v7  ;;  %v8329_v22 = vcombine.low %v2157_v5, %v2161_v7  ;;  %v8352_v52 = vcombine.high %v2180_v45, %v2184_v46  ;;  %v2205_v5 = vld [vmem:[#allocation9 + $0x298] sm:$0xff] }
 0x2d5   :  { %v8354_v58 = vcombine.high %v2181_v48, %v2185_v13  ;;  %v2209_v7 = vld [vmem:[#allocation9 + $0x2b8] sm:$0xff] }
 0x2d6   :  { %5567 = vmatpush1.bf16.msra.mxu0 %v8303_v57  ;;  %v8351_v57 = vcombine.low %v2180_v45, %v2184_v46  ;;  %v2221_v38 = vld [vmem:[#allocation9 + $0x318] sm:$0xff]  ;;  %v2228_v45 = vld [vmem:[#allocation9 + $0x350] sm:$0xff] }
 0x2d7   :  { %5731 = vmatpush1.bf16.msra.mxu1 %v8305_v24  ;;  %5568 = vmatprep.subr.bf16.mxu0 %v8312_v60  ;;  %v8353_v24 = vcombine.low %v2181_v48, %v2185_v13  ;;  %v8360_v60 = vcombine.high %v2188_v54, %v2192_v59  ;;  %v2225_v39 = vld [vmem:[#allocation9 + $0x338] sm:$0xff]  ;;  %v2232_v46 = vld [vmem:[#allocation9 + $0x370] sm:$0xff] }
 0x2d8   :  { %5732 = vmatprep.subr.bf16.mxu1 %v8314_v61  ;;  %v8362_v61 = vcombine.high %v2189_v56, %v2193_v25  ;;  %v2229_v48 = vld [vmem:[#allocation9 + $0x358] sm:$0xff] }
 0x2d9   :  { %v2233_v13 = vld [vmem:[#allocation9 + $0x378] sm:$0xff] }
 0x2da   :  { %5569 = vmatpush1.bf16.msra.mxu0 %v8311_v0  ;;  %v8359_v0 = vcombine.low %v2188_v54, %v2192_v59  ;;  %v2236_v54 = vld [vmem:[#allocation9 + $0x390] sm:$0xff] }
 0x2db   :  { %5733 = vmatpush1.bf16.msra.mxu1 %v8313_v1  ;;  %5570 = vmatprep.subr.bf16.mxu0 %v8320_v2  ;;  %v8361_v1 = vcombine.low %v2189_v56, %v2193_v25  ;;  %v8368_v2 = vcombine.high %v2196_v4, %v2200_v62  ;;  %v2240_v59 = vld [vmem:[#allocation9 + $0x3b0] sm:$0xff]  ;;  %v2237_v56 = vld [vmem:[#allocation9 + $0x398] sm:$0xff] }
 0x2dc   :  { %5734 = vmatprep.subr.bf16.mxu1 %v8322_v9  ;;  %v8370_v9 = vcombine.high %v2197_v41, %v2201_v63  ;;  %v2241_v25 = vld [vmem:[#allocation9 + $0x3b8] sm:$0xff] }
 0x2de   :  { %5571 = vmatpush1.bf16.msra.mxu0 %v8319_v11  ;;  %v8367_v11 = vcombine.low %v2196_v4, %v2200_v62  ;;  %v2244_v4 = vld [vmem:[#allocation9 + $0x3d0] sm:$0xff] }
 0x2df   :  { %5735 = vmatpush1.bf16.msra.mxu1 %v8321_v12  ;;  %5572 = vmatprep.subr.bf16.mxu0 %v8328_v14  ;;  %v8369_v12 = vcombine.low %v2197_v41, %v2201_v63  ;;  %v8376_v14 = vcombine.high %v2204_v3, %v2208_v6  ;;  %v2248_v62 = vld [vmem:[#allocation9 + $0x3f0] sm:$0xff]  ;;  %v2245_v41 = vld [vmem:[#allocation9 + $0x3d8] sm:$0xff] }
 0x2e0   :  { %5736 = vmatprep.subr.bf16.mxu1 %v8330_v15  ;;  %v8378_v15 = vcombine.high %v2205_v5, %v2209_v7  ;;  %v2249_v63 = vld [vmem:[#allocation9 + $0x3f8] sm:$0xff] }
 0x2e2   :  { %5573 = vmatpush1.bf16.msra.mxu0 %v8327_v21  ;;  %v8375_v21 = vcombine.low %v2204_v3, %v2208_v6  ;;  %v2252_v3 = vld [vmem:[#allocation9 + $0x410] sm:$0xff] }
 0x2e3   :  { %5737 = vmatpush1.bf16.msra.mxu1 %v8329_v22  ;;  %5574 = vmatprep.subr.bf16.mxu0 %v8336_v23  ;;  %v8377_v22 = vcombine.low %v2205_v5, %v2209_v7  ;;  %v8384_v23 = vcombine.high %v2212_v17, %v2216_v18  ;;  %v2256_v6 = vld [vmem:[#allocation9 + $0x430] sm:$0xff]  ;;  %v2253_v5 = vld [vmem:[#allocation9 + $0x418] sm:$0xff] }
 0x2e4   :  { %5738 = vmatprep.subr.bf16.mxu1 %v8338_v27  ;;  %v8386_v27 = vcombine.high %v2213_v19, %v2217_v20  ;;  %v2257_v7 = vld [vmem:[#allocation9 + $0x438] sm:$0xff] }
 0x2e6   :  { %5575 = vmatpush1.bf16.msra.mxu0 %v8335_v40  ;;  %v8383_v40 = vcombine.low %v2212_v17, %v2216_v18  ;;  %v2260_v17 = vld [vmem:[#allocation9 + $0x450] sm:$0xff] }
 0x2e7   :  { %5739 = vmatpush1.bf16.msra.mxu1 %v8337_v42  ;;  %5576 = vmatprep.subr.bf16.mxu0 %v8344_v43  ;;  %v8385_v42 = vcombine.low %v2213_v19, %v2217_v20  ;;  %v8392_v43 = vcombine.high %v2220_v28, %v2224_v36  ;;  %v2264_v18 = vld [vmem:[#allocation9 + $0x470] sm:$0xff]  ;;  %v8423_v19 = vcombine.low %v2252_v3, %v2256_v6  ;;  %v2261_v20 = vld [vmem:[#allocation9 + $0x458] sm:$0xff] }
 0x2e8   :  { %5740 = vmatprep.subr.bf16.mxu1 %v8346_v44  ;;  %v8394_v44 = vcombine.high %v2221_v38, %v2225_v39 }
 0x2ea   :  { %5577 = vmatpush1.bf16.msra.mxu0 %v8343_v49  ;;  %v8391_v49 = vcombine.low %v2220_v28, %v2224_v36  ;;  %v2272_v28 = vld [vmem:[#allocation9 + $0x4b0] sm:$0xff] }
 0x2eb   :  { %5741 = vmatpush1.bf16.msra.mxu1 %v8345_v51  ;;  %5578 = vmatprep.subr.bf16.mxu0 %v8352_v52  ;;  %v8393_v51 = vcombine.low %v2221_v38, %v2225_v39  ;;  %v8400_v52 = vcombine.high %v2228_v45, %v2232_v46  ;;  %v2269_v38 = vld [vmem:[#allocation9 + $0x498] sm:$0xff] }
 0x2ec   :  { %5742 = vmatprep.subr.bf16.mxu1 %v8354_v58  ;;  %v8402_v58 = vcombine.high %v2229_v48, %v2233_v13  ;;  %v2273_v39 = vld [vmem:[#allocation9 + $0x4b8] sm:$0xff] }
 0x2ee   :  { %5579 = vmatpush1.bf16.msra.mxu0 %v8351_v57  ;;  %v8399_v57 = vcombine.low %v2228_v45, %v2232_v46  ;;  %v2276_v45 = vld [vmem:[#allocation9 + $0x4d0] sm:$0xff] }
 0x2ef   :  { %5743 = vmatpush1.bf16.msra.mxu1 %v8353_v24  ;;  %5580 = vmatprep.subr.bf16.mxu0 %v8360_v60  ;;  %v8401_v24 = vcombine.low %v2229_v48, %v2233_v13  ;;  %v8408_v60 = vcombine.high %v2236_v54, %v2240_v59  ;;  %v2280_v46 = vld [vmem:[#allocation9 + $0x4f0] sm:$0xff]  ;;  %v2277_v48 = vld [vmem:[#allocation9 + $0x4d8] sm:$0xff] }
 0x2f0   :  { %5744 = vmatprep.subr.bf16.mxu1 %v8362_v61  ;;  %v8410_v61 = vcombine.high %v2237_v56, %v2241_v25  ;;  %v2281_v13 = vld [vmem:[#allocation9 + $0x4f8] sm:$0xff] }
 0x2f2   :  { %5581 = vmatpush1.bf16.msra.mxu0 %v8359_v0  ;;  %v8407_v0 = vcombine.low %v2236_v54, %v2240_v59  ;;  %v2288_v54 = vld [vmem:[#allocation9 + $0x530] sm:$0xff]  ;;  %v2285_v59 = vld [vmem:[#allocation9 + $0x518] sm:$0xff] }
 0x2f3   :  { %5745 = vmatpush1.bf16.msra.mxu1 %v8361_v1  ;;  %5582 = vmatprep.subr.bf16.mxu0 %v8368_v2  ;;  %v8409_v1 = vcombine.low %v2237_v56, %v2241_v25  ;;  %v8416_v2 = vcombine.high %v2244_v4, %v2248_v62  ;;  %v2289_v56 = vld [vmem:[#allocation9 + $0x538] sm:$0xff]  ;;  %v8449_v25 = vcombine.low %v2277_v48, %v2281_v13 }
 0x2f4   :  { %5746 = vmatprep.subr.bf16.mxu1 %v8370_v9  ;;  %v8418_v9 = vcombine.high %v2245_v41, %v2249_v63 }
 0x2f6   :  { %5583 = vmatpush1.bf16.msra.mxu0 %v8367_v11  ;;  %v8415_v11 = vcombine.low %v2244_v4, %v2248_v62  ;;  %v2293_v4 = vld [vmem:[#allocation9 + $0x558] sm:$0xff] }
 0x2f7   :  { %5747 = vmatpush1.bf16.msra.mxu1 %v8369_v12  ;;  %5584 = vmatprep.subr.bf16.mxu0 %v8376_v14  ;;  %v8417_v12 = vcombine.low %v2245_v41, %v2249_v63  ;;  %v8424_v14 = vcombine.high %v2252_v3, %v2256_v6  ;;  %v2297_v62 = vld [vmem:[#allocation9 + $0x578] sm:$0xff]  ;;  %v8457_v63 = vcombine.low %v2285_v59, %v2289_v56 }
 0x2f8   :  { %5748 = vmatprep.subr.bf16.mxu1 %v8378_v15  ;;  %v8426_v15 = vcombine.high %v2253_v5, %v2257_v7  ;;  %v2301_v3 = vld [vmem:[#allocation9 + $0x598] sm:$0xff] }
 0x2f9   :  { %v2305_v6 = vld [vmem:[#allocation9 + $0x5b8] sm:$0xff] }
 0x2fa   :  { %5585 = vmatpush1.bf16.msra.mxu0 %v8375_v21  ;;  %v2265_v21 = vld [vmem:[#allocation9 + $0x478] sm:$0xff] }
 0x2fb   :  { %5749 = vmatpush1.bf16.msra.mxu1 %v8377_v22  ;;  %5586 = vmatprep.subr.bf16.mxu0 %v8384_v23  ;;  %v8425_v22 = vcombine.low %v2253_v5, %v2257_v7  ;;  %v8432_v23 = vcombine.high %v2260_v17, %v2264_v18  ;;  %v8434_v36 = vcombine.high %v2261_v20, %v2265_v21 }
 0x2fc   :  { %5750 = vmatprep.subr.bf16.mxu1 %v8386_v27  ;;  %v2268_v27 = vld [vmem:[#allocation9 + $0x490] sm:$0xff]  ;;  %v8465_v7 = vcombine.low %v2293_v4, %v2297_v62 }
 0x2fe   :  { %5587 = vmatpush1.bf16.msra.mxu0 %v8383_v40  ;;  %v8431_v40 = vcombine.low %v2260_v17, %v2264_v18  ;;  %v2309_v17 = vld [vmem:[#allocation9 + $0x5d8] sm:$0xff] }
 0x2ff   :  { %5751 = vmatpush1.bf16.msra.mxu1 %v8385_v42  ;;  %5588 = vmatprep.subr.bf16.mxu0 %v8392_v43  ;;  %v8433_v42 = vcombine.low %v2261_v20, %v2265_v21  ;;  %v8440_v43 = vcombine.high %v2268_v27, %v2272_v28  ;;  %v2313_v18 = vld [vmem:[#allocation9 + $0x5f8] sm:$0xff]  ;;  %v8473_v20 = vcombine.low %v2301_v3, %v2305_v6 }
 0x300   :  { %5752 = vmatprep.subr.bf16.mxu1 %v8394_v44  ;;  %v8442_v44 = vcombine.high %v2269_v38, %v2273_v39 }
 0x302   :  { %5589 = vmatpush1.bf16.msra.mxu0 %v8391_v49  ;;  %v8439_v49 = vcombine.low %v2268_v27, %v2272_v28  ;;  %v2320_v27 = vld [vmem:[#allocation9 + $0x630] sm:$0xff]  ;;  %v2317_v28 = vld [vmem:[#allocation9 + $0x618] sm:$0xff] }
 0x303   :  { %5753 = vmatpush1.bf16.msra.mxu1 %v8393_v51  ;;  %5590 = vmatprep.subr.bf16.mxu0 %v8400_v52  ;;  %v8448_v51 = vcombine.high %v2276_v45, %v2280_v46  ;;  %v8450_v52 = vcombine.high %v2277_v48, %v2281_v13 }
 0x304   :  { %5754 = vmatprep.subr.bf16.mxu1 %v8402_v58  ;;  %v2284_v58 = vld [vmem:[#allocation9 + $0x510] sm:$0xff] }
 0x305   :  { %v8455_v41 = vcombine.low %v2284_v58, %v2288_v54 }
 0x306   :  { %5591 = vmatpush1.bf16.msra.mxu0 %v8399_v57  ;;  %v8456_v57 = vcombine.high %v2284_v58, %v2288_v54  ;;  %v2333_v58 = vld [vmem:[#allocation9 + $0x698] sm:$0xff] }
 0x307   :  { %5755 = vmatpush1.bf16.msra.mxu1 %v8401_v24  ;;  %5592 = vmatprep.subr.bf16.mxu0 %v8408_v60  ;;  %v8458_v24 = vcombine.high %v2285_v59, %v2289_v56  ;;  %v2292_v60 = vld [vmem:[#allocation9 + $0x550] sm:$0xff]  ;;  %v2337_v54 = vld [vmem:[#allocation9 + $0x6b8] sm:$0xff] }
 0x308   :  { %5756 = vmatprep.subr.bf16.mxu1 %v8410_v61  ;;  %v2296_v61 = vld [vmem:[#allocation9 + $0x570] sm:$0xff] }
 0x309   :  { %v8463_v5 = vcombine.low %v2292_v60, %v2296_v61 }
 0x30a   :  { %5593 = vmatpush1.bf16.msra.mxu0 %v8407_v0  ;;  %v8464_v0 = vcombine.high %v2292_v60, %v2296_v61  ;;  %v2341_v60 = vld [vmem:[#allocation9 + $0x6d8] sm:$0xff] }
 0x30b   :  { %5757 = vmatpush1.bf16.msra.mxu1 %v8409_v1  ;;  %5594 = vmatprep.subr.bf16.mxu0 %v8416_v2  ;;  %v8466_v1 = vcombine.high %v2293_v4, %v2297_v62  ;;  %v2300_v2 = vld [vmem:[#allocation9 + $0x590] sm:$0xff]  ;;  %v2345_v61 = vld [vmem:[#allocation9 + $0x6f8] sm:$0xff]  ;;  %v8505_v62 = vcombine.low %v2333_v58, %v2337_v54 }
 0x30c   :  { %5758 = vmatprep.subr.bf16.mxu1 %v8418_v9  ;;  %v2304_v9 = vld [vmem:[#allocation9 + $0x5b0] sm:$0xff] }
 0x30e   :  { %5595 = vmatpush1.bf16.msra.mxu0 %v8415_v11  ;;  %v8472_v11 = vcombine.high %v2300_v2, %v2304_v9 }
 0x30f   :  { %5759 = vmatpush1.bf16.msra.mxu1 %v8417_v12  ;;  %5605 = vmatprep.subr.bf16.mxu0 %v8424_v14  ;;  %v8474_v12 = vcombine.high %v2301_v3, %v2305_v6  ;;  %v2308_v14 = vld [vmem:[#allocation9 + $0x5d0] sm:$0xff]  ;;  %v8513_v6 = vcombine.low %v2341_v60, %v2345_v61 }
 0x310   :  { %5769 = vmatprep.subr.bf16.mxu1 %v8426_v15  ;;  %v2312_v15 = vld [vmem:[#allocation9 + $0x5f0] sm:$0xff] }
 0x311   :  { %5597 = vmatmul.mubr.bf16.vlgmr.msra.gmra.mrb[12].mxu0 %v10101_v8  ;;  %v8480_v21 = vcombine.high %v2308_v14, %v2312_v15 }
 0x312   :  { %5761 = vmatmul.mubr.bf16.vlgmr.msra.gmra.mrb[12].mxu1 %v10101_v8  ;;  %5606 = vmatpush1.bf16.msra.mxu0 %v8423_v19  ;;  %v8441_v8 = vcombine.low %v2269_v38, %v2273_v39  ;;  %v8471_v19 = vcombine.low %v2300_v2, %v2304_v9  ;;  %v8479_v38 = vcombine.low %v2308_v14, %v2312_v15  ;;  %v2349_v2 = vld [vmem:[#allocation9 + $0x718] sm:$0xff] }
 0x313   :  { %5637 = vmatprep.mubr.bf16.mxu0 %v10105_v16  ;;  %5770 = vmatpush1.bf16.msra.mxu1 %v8425_v22  ;;  %v8482_v22 = vcombine.high %v2309_v17, %v2313_v18  ;;  %v8481_v39 = vcombine.low %v2309_v17, %v2313_v18  ;;  %v2353_v9 = vld [vmem:[#allocation9 + $0x738] sm:$0xff] }
 0x314   :  { %5801 = vmatprep.mubr.bf16.mxu1 %v10105_v16  ;;  %5607 = vmatprep.subr.bf16.mxu0 %v8432_v23  ;;  %v8447_v16 = vcombine.low %v2276_v45, %v2280_v46  ;;  %v2316_v23 = vld [vmem:[#allocation9 + $0x610] sm:$0xff]  ;;  %v2325_v45 = vld [vmem:[#allocation9 + $0x658] sm:$0xff]  ;;  %v8521_v18 = vcombine.low %v2349_v2, %v2353_v9 }
 0x315   :  { %5771 = vmatprep.subr.bf16.mxu1 %v8434_v36  ;;  %v2321_v36 = vld [vmem:[#allocation9 + $0x638] sm:$0xff]  ;;  %v8487_v48 = vcombine.low %v2316_v23, %v2320_v27 }
 0x316   :  { %5608 = vmatpush1.bf16.msra.mxu0 %v8431_v40  ;;  %v8488_v40 = vcombine.high %v2316_v23, %v2320_v27  ;;  %v2329_v46 = vld [vmem:[#allocation9 + $0x678] sm:$0xff]  ;;  %v8489_v13 = vcombine.low %v2317_v28, %v2321_v36 }
 0x317   :  { %5772 = vmatpush1.bf16.msra.mxu1 %v8433_v42  ;;  %5609 = vmatprep.subr.bf16.mxu0 %v8440_v43  ;;  %v8490_v42 = vcombine.high %v2317_v28, %v2321_v36  ;;  %v2324_v43 = vld [vmem:[#allocation9 + $0x650] sm:$0xff]  ;;  %v8497_v56 = vcombine.low %v2325_v45, %v2329_v46  ;;  %v2357_v14 = vld [vmem:[#allocation9 + $0x758] sm:$0xff] }
 0x318   :  { %5773 = vmatprep.subr.bf16.mxu1 %v8442_v44  ;;  %v2328_v44 = vld [vmem:[#allocation9 + $0x670] sm:$0xff]  ;;  %v2361_v15 = vld [vmem:[#allocation9 + $0x778] sm:$0xff] }
 0x319   :  { %v8495_v59 = vcombine.low %v2324_v43, %v2328_v44  ;;  %v2365_v23 = vld [vmem:[#allocation9 + $0x798] sm:$0xff]  ;;  %v8529_v36 = vcombine.low %v2357_v14, %v2361_v15 }
 0x31a   :  { %5610 = vmatpush1.bf16.msra.mxu0 %v8439_v49  ;;  %v8496_v49 = vcombine.high %v2324_v43, %v2328_v44  ;;  %v2369_v27 = vld [vmem:[#allocation9 + $0x7b8] sm:$0xff] }
 0x31b   :  { %5774 = vmatpush1.bf16.msra.mxu1 %v8441_v8  ;;  %5611 = vmatprep.subr.bf16.mxu0 %v8448_v51  ;;  %v8498_v8 = vcombine.high %v2325_v45, %v2329_v46  ;;  %v2332_v51 = vld [vmem:[#allocation9 + $0x690] sm:$0xff]  ;;  %v2373_v43 = vld [vmem:[#allocation9 + $0x7d8] sm:$0xff]  ;;  %v8537_v46 = vcombine.low %v2365_v23, %v2369_v27 }
 0x31c   :  { %5775 = vmatprep.subr.bf16.mxu1 %v8450_v52  ;;  %v2336_v52 = vld [vmem:[#allocation9 + $0x6b0] sm:$0xff]  ;;  %v2377_v44 = vld [vmem:[#allocation9 + $0x7f8] sm:$0xff] }
 0x31d   :  { %v8503_v4 = vcombine.low %v2332_v51, %v2336_v52 }
 0x31e   :  { %5612 = vmatpush1.bf16.msra.mxu0 %v8447_v16  ;;  %v8504_v16 = vcombine.high %v2332_v51, %v2336_v52  ;;  %v2381_v51 = vld [vmem:[#allocation9 + $0x818] sm:$0xff] }
 0x31f   :  { %5776 = vmatpush1.bf16.msra.mxu1 %v8449_v25  ;;  %5613 = vmatprep.subr.bf16.mxu0 %v8456_v57  ;;  %v8506_v25 = vcombine.high %v2333_v58, %v2337_v54  ;;  %v2340_v57 = vld [vmem:[#allocation9 + $0x6d0] sm:$0xff]  ;;  %v2385_v52 = vld [vmem:[#allocation9 + $0x838] sm:$0xff]  ;;  %v8545_v54 = vcombine.low %v2373_v43, %v2377_v44 }
 0x320   :  { %5777 = vmatprep.subr.bf16.mxu1 %v8458_v24  ;;  %v2344_v24 = vld [vmem:[#allocation9 + $0x6f0] sm:$0xff] }
 0x321   :  { %v8511_v3 = vcombine.low %v2340_v57, %v2344_v24 }
 0x322   :  { %5614 = vmatpush1.bf16.msra.mxu0 %v8455_v41  ;;  %v8512_v41 = vcombine.high %v2340_v57, %v2344_v24  ;;  %v2389_v24 = vld [vmem:[#allocation9 + $0x858] sm:$0xff] }
 0x323   :  { %5778 = vmatpush1.bf16.msra.mxu1 %v8457_v63  ;;  %5615 = vmatprep.subr.bf16.mxu0 %v8464_v0  ;;  %v8514_v63 = vcombine.high %v2341_v60, %v2345_v61  ;;  %v2348_v0 = vld [vmem:[#allocation9 + $0x710] sm:$0xff]  ;;  %v2393_v60 = vld [vmem:[#allocation9 + $0x878] sm:$0xff]  ;;  %v8553_v61 = vcombine.low %v2381_v51, %v2385_v52 }
 0x324   :  { %5779 = vmatprep.subr.bf16.mxu1 %v8466_v1  ;;  %v2352_v1 = vld [vmem:[#allocation9 + $0x730] sm:$0xff] }
 0x325   :  { %v8519_v17 = vcombine.low %v2348_v0, %v2352_v1 }
 0x326   :  { %5616 = vmatpush1.bf16.msra.mxu0 %v8463_v5  ;;  %v8520_v5 = vcombine.high %v2348_v0, %v2352_v1  ;;  %v2397_v0 = vld [vmem:[#allocation9 + $0x898] sm:$0xff] }
 0x327   :  { %5780 = vmatpush1.bf16.msra.mxu1 %v8465_v7  ;;  %5617 = vmatprep.subr.bf16.mxu0 %v8472_v11  ;;  %v8522_v7 = vcombine.high %v2349_v2, %v2353_v9  ;;  %v2356_v11 = vld [vmem:[#allocation9 + $0x750] sm:$0xff]  ;;  %v2401_v1 = vld [vmem:[#allocation9 + $0x8b8] sm:$0xff]  ;;  %v8561_v9 = vcombine.low %v2389_v24, %v2393_v60 }
 0x328   :  { %5781 = vmatprep.subr.bf16.mxu1 %v8474_v12  ;;  %v2360_v12 = vld [vmem:[#allocation9 + $0x770] sm:$0xff] }
 0x329   :  { %v8527_v28 = vcombine.low %v2356_v11, %v2360_v12 }
 0x32a   :  { %5618 = vmatpush1.bf16.msra.mxu0 %v8471_v19  ;;  %v8528_v19 = vcombine.high %v2356_v11, %v2360_v12  ;;  %v2405_v11 = vld [vmem:[#allocation9 + $0x8d8] sm:$0xff] }
 0x32b   :  { %5782 = vmatpush1.bf16.msra.mxu1 %v8473_v20  ;;  %5619 = vmatprep.subr.bf16.mxu0 %v8480_v21  ;;  %v8530_v20 = vcombine.high %v2357_v14, %v2361_v15  ;;  %v2364_v21 = vld [vmem:[#allocation9 + $0x790] sm:$0xff]  ;;  %v2409_v12 = vld [vmem:[#allocation9 + $0x8f8] sm:$0xff] }
 0x32c   :  { %5783 = vmatprep.subr.bf16.mxu1 %v8482_v22  ;;  %v2368_v22 = vld [vmem:[#allocation9 + $0x7b0] sm:$0xff] }
 0x32d   :  { %v8535_v45 = vcombine.low %v2364_v21, %v2368_v22 }
 0x32e   :  { %5620 = vmatpush1.bf16.msra.mxu0 %v8479_v38  ;;  %v8536_v38 = vcombine.high %v2364_v21, %v2368_v22  ;;  %v2417_v21 = vld [vmem:[#allocation9 + $0x938] sm:$0xff]  ;;  %v8577_v22 = vcombine.low %v2405_v11, %v2409_v12 }
 0x32f   :  { %5784 = vmatpush1.bf16.msra.mxu1 %v8481_v39  ;;  %5621 = vmatprep.subr.bf16.mxu0 %v8488_v40  ;;  %v8538_v39 = vcombine.high %v2365_v23, %v2369_v27  ;;  %v2372_v40 = vld [vmem:[#allocation9 + $0x7d0] sm:$0xff] }
 0x330   :  { %5785 = vmatprep.subr.bf16.mxu1 %v8490_v42  ;;  %v2376_v42 = vld [vmem:[#allocation9 + $0x7f0] sm:$0xff] }
 0x331   :  { %v8543_v58 = vcombine.low %v2372_v40, %v2376_v42 }
 0x332   :  { %5622 = vmatpush1.bf16.msra.mxu0 %v8487_v48  ;;  %v8544_v48 = vcombine.high %v2372_v40, %v2376_v42 }
 0x333   :  { %5786 = vmatpush1.bf16.msra.mxu1 %v8489_v13  ;;  %5623 = vmatprep.subr.bf16.mxu0 %v8496_v49  ;;  %v8546_v13 = vcombine.high %v2373_v43, %v2377_v44  ;;  %v2380_v49 = vld [vmem:[#allocation9 + $0x810] sm:$0xff] }
 0x334   :  { %5787 = vmatprep.subr.bf16.mxu1 %v8498_v8  ;;  %v2384_v8 = vld [vmem:[#allocation9 + $0x830] sm:$0xff] }
 0x335   :  { %v8551_v57 = vcombine.low %v2380_v49, %v2384_v8 }
 0x336   :  { %5624 = vmatpush1.bf16.msra.mxu0 %v8495_v59  ;;  %v8552_v59 = vcombine.high %v2380_v49, %v2384_v8 }
 0x337   :  { %5788 = vmatpush1.bf16.msra.mxu1 %v8497_v56  ;;  %5625 = vmatprep.subr.bf16.mxu0 %v8504_v16  ;;  %v8554_v56 = vcombine.high %v2381_v51, %v2385_v52  ;;  %v2388_v16 = vld [vmem:[#allocation9 + $0x850] sm:$0xff] }
 0x338   :  { %5789 = vmatprep.subr.bf16.mxu1 %v8506_v25  ;;  %v2392_v25 = vld [vmem:[#allocation9 + $0x870] sm:$0xff] }
 0x339   :  { %v8559_v2 = vcombine.low %v2388_v16, %v2392_v25 }
 0x33a   :  { %5626 = vmatpush1.bf16.msra.mxu0 %v8503_v4  ;;  %v8560_v4 = vcombine.high %v2388_v16, %v2392_v25 }
 0x33b   :  { %5790 = vmatpush1.bf16.msra.mxu1 %v8505_v62  ;;  %5627 = vmatprep.subr.bf16.mxu0 %v8512_v41  ;;  %v2396_v62 = vld [vmem:[#allocation9 + $0x890] sm:$0xff] }
 0x33c   :  { %5791 = vmatprep.subr.bf16.mxu1 %v8514_v63  ;;  %v2400_v41 = vld [vmem:[#allocation9 + $0x8b0] sm:$0xff]  ;;  %v8562_v63 = vcombine.high %v2389_v24, %v2393_v60 }
 0x33d   :  { %v8567_v14 = vcombine.low %v2396_v62, %v2400_v41  ;;  %v2444_v60 = vld [vmem:[#allocation9 + $0xa10] sm:$0xff] }
 0x33e   :  { %5628 = vmatpush1.bf16.msra.mxu0 %v8511_v3  ;;  %v8568_v3 = vcombine.high %v2396_v62, %v2400_v41  ;;  %v2449_v62 = vld [vmem:[#allocation9 + $0xa38] sm:$0xff] }
 0x33f   :  { %5792 = vmatpush1.bf16.msra.mxu1 %v8513_v6  ;;  %5629 = vmatprep.subr.bf16.mxu0 %v8520_v5  ;;  %v8570_v6 = vcombine.high %v2397_v0, %v2401_v1  ;;  %v2404_v5 = vld [vmem:[#allocation9 + $0x8d0] sm:$0xff] }
 0x340   :  { %5793 = vmatprep.subr.bf16.mxu1 %v8522_v7  ;;  %v2408_v7 = vld [vmem:[#allocation9 + $0x8f0] sm:$0xff] }
 0x341   :  { %v8576_v15 = vcombine.high %v2404_v5, %v2408_v7 }
 0x342   :  { %5630 = vmatpush1.bf16.msra.mxu0 %v8519_v17  ;;  %v8578_v17 = vcombine.high %v2405_v11, %v2409_v12 }
 0x343   :  { %5794 = vmatpush1.bf16.msra.mxu1 %v8521_v18  ;;  %5631 = vmatprep.subr.bf16.mxu0 %v8528_v19  ;;  %v2412_v18 = vld [vmem:[#allocation9 + $0x910] sm:$0xff] }
 0x344   :  { %5795 = vmatprep.subr.bf16.mxu1 %v8530_v20  ;;  %v2416_v19 = vld [vmem:[#allocation9 + $0x930] sm:$0xff]  ;;  %v2413_v20 = vld [vmem:[#allocation9 + $0x918] sm:$0xff] }
 0x345   :  { %v8584_v23 = vcombine.high %v2412_v18, %v2416_v19  ;;  %v8586_v27 = vcombine.high %v2413_v20, %v2417_v21  ;;  %v8583_v40 = vcombine.low %v2412_v18, %v2416_v19  ;;  %v8585_v42 = vcombine.low %v2413_v20, %v2417_v21 }
 0x346   :  { %5632 = vmatpush1.bf16.msra.mxu0 %v8527_v28  ;;  %v2420_v28 = vld [vmem:[#allocation9 + $0x950] sm:$0xff] }
 0x347   :  { %5796 = vmatpush1.bf16.msra.mxu1 %v8529_v36  ;;  %5633 = vmatprep.subr.bf16.mxu0 %v8536_v38  ;;  %v2424_v36 = vld [vmem:[#allocation9 + $0x970] sm:$0xff]  ;;  %v2421_v38 = vld [vmem:[#allocation9 + $0x958] sm:$0xff] }
 0x348   :  { %5797 = vmatprep.subr.bf16.mxu1 %v8538_v39  ;;  %v2425_v39 = vld [vmem:[#allocation9 + $0x978] sm:$0xff]  ;;  %v8592_v43 = vcombine.high %v2420_v28, %v2424_v36  ;;  %v8591_v49 = vcombine.low %v2420_v28, %v2424_v36 }
 0x349   :  { %v8594_v44 = vcombine.high %v2421_v38, %v2425_v39  ;;  %v8593_v8 = vcombine.low %v2421_v38, %v2425_v39 }
 0x34a   :  { %5634 = vmatpush1.bf16.msra.mxu0 %v8535_v45  ;;  %v2428_v45 = vld [vmem:[#allocation9 + $0x990] sm:$0xff] }
 0x34b   :  { %5798 = vmatpush1.bf16.msra.mxu1 %v8537_v46  ;;  %5635 = vmatprep.subr.bf16.mxu0 %v8544_v48  ;;  %v2432_v46 = vld [vmem:[#allocation9 + $0x9b0] sm:$0xff]  ;;  %v2429_v48 = vld [vmem:[#allocation9 + $0x998] sm:$0xff] }
 0x34c   :  { %5799 = vmatprep.subr.bf16.mxu1 %v8546_v13  ;;  %v2433_v13 = vld [vmem:[#allocation9 + $0x9b8] sm:$0xff]  ;;  %v8600_v51 = vcombine.high %v2428_v45, %v2432_v46  ;;  %v8599_v16 = vcombine.low %v2428_v45, %v2432_v46 }
 0x34d   :  { %v8602_v52 = vcombine.high %v2429_v48, %v2433_v13  ;;  %v8601_v25 = vcombine.low %v2429_v48, %v2433_v13 }
 0x34e   :  { %5636 = vmatpush1.bf16.msra.mxu0 %v8543_v58  ;;  %v2436_v58 = vld [vmem:[#allocation9 + $0x9d0] sm:$0xff] }
 0x34f   :  { %5800 = vmatpush1.bf16.msra.mxu1 %v8545_v54  ;;  %5646 = vmatprep.subr.bf16.mxu0 %v8552_v59  ;;  %v2440_v54 = vld [vmem:[#allocation9 + $0x9f0] sm:$0xff]  ;;  %v2437_v59 = vld [vmem:[#allocation9 + $0x9d8] sm:$0xff] }
 0x350   :  { %5810 = vmatprep.subr.bf16.mxu1 %v8554_v56  ;;  %v2441_v56 = vld [vmem:[#allocation9 + $0x9f8] sm:$0xff]  ;;  %v8607_v41 = vcombine.low %v2436_v58, %v2440_v54 }
 0x351   :  { %5638 = vmatmul.mubr.bf16.vlgmr.msra.gmra.mrb[12].mxu0 %v10121_v47  ;;  %v8610_v24 = vcombine.high %v2437_v59, %v2441_v56 }
 0x352   :  { %5802 = vmatmul.mubr.bf16.vlgmr.msra.gmra.mrb[12].mxu1 %v10121_v47  ;;  %5647 = vmatpush1.bf16.msra.mxu0 %v8551_v57  ;;  %v8569_v47 = vcombine.low %v2397_v0, %v2401_v1  ;;  %v8608_v57 = vcombine.high %v2436_v58, %v2440_v54 }
 0x353   :  { %5678 = vmatprep.mubr.bf16.mxu0 %v10149_v53  ;;  %5811 = vmatpush1.bf16.msra.mxu1 %v8553_v61  ;;  %v2448_v61 = vld [vmem:[#allocation9 + $0xa30] sm:$0xff] }
 0x354   :  { %5842 = vmatprep.mubr.bf16.mxu1 %v10149_v53  ;;  %5648 = vmatprep.subr.bf16.mxu0 %v8560_v4  ;;  %v8575_v53 = vcombine.low %v2404_v5, %v2408_v7  ;;  %v2445_v4 = vld [vmem:[#allocation9 + $0xa18] sm:$0xff]  ;;  %v8616_v0 = vcombine.high %v2444_v60, %v2448_v61  ;;  %v8615_v5 = vcombine.low %v2444_v60, %v2448_v61 }
 0x355   :  { %5812 = vmatprep.subr.bf16.mxu1 %v8562_v63  ;;  %v8609_v63 = vcombine.low %v2437_v59, %v2441_v56  ;;  %v8618_v1 = vcombine.high %v2445_v4, %v2449_v62  ;;  %v8617_v7 = vcombine.low %v2445_v4, %v2449_v62 }
 0x356   :  { %5649 = vmatpush1.bf16.msra.mxu0 %v8559_v2  ;;  %v2452_v2 = vld [vmem:[#allocation9 + $0xa50] sm:$0xff] }
 0x357   :  { %5813 = vmatpush1.bf16.msra.mxu1 %v8561_v9  ;;  %5650 = vmatprep.subr.bf16.mxu0 %v8568_v3  ;;  %v2456_v9 = vld [vmem:[#allocation9 + $0xa70] sm:$0xff]  ;;  %v2453_v3 = vld [vmem:[#allocation9 + $0xa58] sm:$0xff] }
 0x358   :  { %5814 = vmatprep.subr.bf16.mxu1 %v8570_v6  ;;  %v2457_v6 = vld [vmem:[#allocation9 + $0xa78] sm:$0xff]  ;;  %v8624_v11 = vcombine.high %v2452_v2, %v2456_v9  ;;  %v8623_v18 = vcombine.low %v2452_v2, %v2456_v9 }
 0x359   :  { %v8626_v12 = vcombine.high %v2453_v3, %v2457_v6  ;;  %v8625_v19 = vcombine.low %v2453_v3, %v2457_v6 }
 0x35a   :  { %5651 = vmatpush1.bf16.msra.mxu0 %v8567_v14  ;;  %v2460_v14 = vld [vmem:[#allocation9 + $0xa90] sm:$0xff] }
 0x35b   :  { %5815 = vmatpush1.bf16.msra.mxu1 %v8569_v47  ;;  %5652 = vmatprep.subr.bf16.mxu0 %v8576_v15  ;;  %v2464_v47 = vld [vmem:[#allocation9 + $0xab0] sm:$0xff]  ;;  %v2461_v15 = vld [vmem:[#allocation9 + $0xa98] sm:$0xff] }
 0x35c   :  { %5816 = vmatprep.subr.bf16.mxu1 %v8578_v17  ;;  %v2465_v17 = vld [vmem:[#allocation9 + $0xab8] sm:$0xff]  ;;  %v8632_v20 = vcombine.high %v2460_v14, %v2464_v47  ;;  %v8631_v28 = vcombine.low %v2460_v14, %v2464_v47 }
 0x35d   :  { %v8634_v21 = vcombine.high %v2461_v15, %v2465_v17  ;;  %v8633_v36 = vcombine.low %v2461_v15, %v2465_v17 }
 0x35e   :  { %5653 = vmatpush1.bf16.msra.mxu0 %v8575_v53  ;;  %v2468_v53 = vld [vmem:[#allocation9 + $0xad0] sm:$0xff] }
 0x35f   :  { %5817 = vmatpush1.bf16.msra.mxu1 %v8577_v22  ;;  %5654 = vmatprep.subr.bf16.mxu0 %v8584_v23  ;;  %v2472_v22 = vld [vmem:[#allocation9 + $0xaf0] sm:$0xff]  ;;  %v2469_v23 = vld [vmem:[#allocation9 + $0xad8] sm:$0xff] }
 0x360   :  { %5818 = vmatprep.subr.bf16.mxu1 %v8586_v27  ;;  %v2473_v27 = vld [vmem:[#allocation9 + $0xaf8] sm:$0xff]  ;;  %v8640_v38 = vcombine.high %v2468_v53, %v2472_v22  ;;  %v8639_v45 = vcombine.low %v2468_v53, %v2472_v22 }
 0x361   :  { %v8642_v39 = vcombine.high %v2469_v23, %v2473_v27  ;;  %v8641_v46 = vcombine.low %v2469_v23, %v2473_v27  ;;  %v2521_v53 = vld [vmem:[#allocation9 + $0xc78] sm:$0xff]  ;;  %v2524_v27 = vld [vmem:[#allocation9 + $0xc90] sm:$0xff] }
 0x362   :  { %5655 = vmatpush1.bf16.msra.mxu0 %v8583_v40  ;;  %v2476_v40 = vld [vmem:[#allocation9 + $0xb10] sm:$0xff] }
 0x363   :  { %5819 = vmatpush1.bf16.msra.mxu1 %v8585_v42  ;;  %5656 = vmatprep.subr.bf16.mxu0 %v8592_v43  ;;  %v2480_v42 = vld [vmem:[#allocation9 + $0xb30] sm:$0xff]  ;;  %v2477_v43 = vld [vmem:[#allocation9 + $0xb18] sm:$0xff] }
 0x364   :  { %5820 = vmatprep.subr.bf16.mxu1 %v8594_v44  ;;  %v2481_v44 = vld [vmem:[#allocation9 + $0xb38] sm:$0xff]  ;;  %v8648_v48 = vcombine.high %v2476_v40, %v2480_v42  ;;  %v8647_v58 = vcombine.low %v2476_v40, %v2480_v42 }
 0x365   :  { %v8650_v13 = vcombine.high %v2477_v43, %v2481_v44  ;;  %v8649_v54 = vcombine.low %v2477_v43, %v2481_v44 }
 0x366   :  { %5657 = vmatpush1.bf16.msra.mxu0 %v8591_v49  ;;  %v2484_v49 = vld [vmem:[#allocation9 + $0xb50] sm:$0xff] }
 0x367   :  { %5821 = vmatpush1.bf16.msra.mxu1 %v8593_v8  ;;  %5658 = vmatprep.subr.bf16.mxu0 %v8600_v51  ;;  %v2488_v8 = vld [vmem:[#allocation9 + $0xb70] sm:$0xff]  ;;  %v2485_v51 = vld [vmem:[#allocation9 + $0xb58] sm:$0xff] }
 0x368   :  { %5822 = vmatprep.subr.bf16.mxu1 %v8602_v52  ;;  %v2489_v52 = vld [vmem:[#allocation9 + $0xb78] sm:$0xff]  ;;  %v8656_v59 = vcombine.high %v2484_v49, %v2488_v8  ;;  %v8655_v60 = vcombine.low %v2484_v49, %v2488_v8 }
 0x369   :  { %v8658_v56 = vcombine.high %v2485_v51, %v2489_v52  ;;  %v8657_v61 = vcombine.low %v2485_v51, %v2489_v52  ;;  %v2540_v52 = vld [vmem:[#allocation9 + $0xd10] sm:$0xff] }
 0x36a   :  { %5659 = vmatpush1.bf16.msra.mxu0 %v8599_v16  ;;  %v2492_v16 = vld [vmem:[#allocation9 + $0xb90] sm:$0xff] }
 0x36b   :  { %5823 = vmatpush1.bf16.msra.mxu1 %v8601_v25  ;;  %5660 = vmatprep.subr.bf16.mxu0 %v8608_v57  ;;  %v2496_v25 = vld [vmem:[#allocation9 + $0xbb0] sm:$0xff]  ;;  %v2493_v57 = vld [vmem:[#allocation9 + $0xb98] sm:$0xff] }
 0x36c   :  { %5824 = vmatprep.subr.bf16.mxu1 %v8610_v24  ;;  %v2497_v24 = vld [vmem:[#allocation9 + $0xbb8] sm:$0xff]  ;;  %v8664_v4 = vcombine.high %v2492_v16, %v2496_v25  ;;  %v8663_v2 = vcombine.low %v2492_v16, %v2496_v25 }
 0x36d   :  { %v8666_v62 = vcombine.high %v2493_v57, %v2497_v24  ;;  %v8665_v9 = vcombine.low %v2493_v57, %v2497_v24  ;;  %v2548_v57 = vld [vmem:[#allocation9 + $0xd50] sm:$0xff] }
 0x36e   :  { %5661 = vmatpush1.bf16.msra.mxu0 %v8607_v41  ;;  %v2500_v41 = vld [vmem:[#allocation9 + $0xbd0] sm:$0xff] }
 0x36f   :  { %5825 = vmatpush1.bf16.msra.mxu1 %v8609_v63  ;;  %5662 = vmatprep.subr.bf16.mxu0 %v8616_v0  ;;  %v2504_v63 = vld [vmem:[#allocation9 + $0xbf0] sm:$0xff]  ;;  %v2501_v0 = vld [vmem:[#allocation9 + $0xbd8] sm:$0xff] }
 0x370   :  { %5826 = vmatprep.subr.bf16.mxu1 %v8618_v1  ;;  %v2505_v1 = vld [vmem:[#allocation9 + $0xbf8] sm:$0xff]  ;;  %v8672_v3 = vcombine.high %v2500_v41, %v2504_v63  ;;  %v8671_v14 = vcombine.low %v2500_v41, %v2504_v63  ;;  %v2552_v24 = vld [vmem:[#allocation9 + $0xd70] sm:$0xff]  ;;  %v10189_v41 = vld [vmem:[#allocation11] sm:$0xff] }
 0x371   :  { %v8674_v6 = vcombine.high %v2501_v0, %v2505_v1  ;;  %v8673_v47 = vcombine.low %v2501_v0, %v2505_v1  ;;  %v8720_v63 = vcombine.high %v2548_v57, %v2552_v24  ;;  %v2556_v1 = vld [vmem:[#allocation9 + $0xd90] sm:$0xff] }
 0x372   :  { %5663 = vmatpush1.bf16.msra.mxu0 %v8615_v5  ;;  %v2508_v5 = vld [vmem:[#allocation9 + $0xc10] sm:$0xff] }
 0x373   :  { %5827 = vmatpush1.bf16.msra.mxu1 %v8617_v7  ;;  %5664 = vmatprep.subr.bf16.mxu0 %v8624_v11  ;;  %v2512_v7 = vld [vmem:[#allocation9 + $0xc30] sm:$0xff]  ;;  %v2509_v11 = vld [vmem:[#allocation9 + $0xc18] sm:$0xff] }
 0x374   :  { %5828 = vmatprep.subr.bf16.mxu1 %v8626_v12  ;;  %v2513_v12 = vld [vmem:[#allocation9 + $0xc38] sm:$0xff]  ;;  %v8680_v15 = vcombine.high %v2508_v5, %v2512_v7 }
 0x375   :  { %v8682_v17 = vcombine.high %v2509_v11, %v2513_v12  ;;  %v8681_v22 = vcombine.low %v2509_v11, %v2513_v12 }
 0x376   :  { %5665 = vmatpush1.bf16.msra.mxu0 %v8623_v18  ;;  %v2516_v18 = vld [vmem:[#allocation9 + $0xc50] sm:$0xff] }
 0x377   :  { %5829 = vmatpush1.bf16.msra.mxu1 %v8625_v19  ;;  %5666 = vmatprep.subr.bf16.mxu0 %v8632_v20  ;;  %v2520_v19 = vld [vmem:[#allocation9 + $0xc70] sm:$0xff]  ;;  %v8679_v20 = vcombine.low %v2508_v5, %v2512_v7  ;;  %v8719_v5 = vcombine.low %v2548_v57, %v2552_v24  ;;  %v2589_v24 = vld [vmem:[#allocation9 + $0xe98] sm:$0xff] }
 0x378   :  { %5830 = vmatprep.subr.bf16.mxu1 %v8634_v21  ;;  %v2517_v21 = vld [vmem:[#allocation9 + $0xc58] sm:$0xff]  ;;  %v8688_v23 = vcombine.high %v2516_v18, %v2520_v19  ;;  %v8687_v40 = vcombine.low %v2516_v18, %v2520_v19  ;;  %v2592_v57 = vld [vmem:[#allocation9 + $0xeb0] sm:$0xff] }
 0x379   :  { %v8689_v42 = vcombine.low %v2517_v21, %v2521_v53 }
 0x37a   :  { %5667 = vmatpush1.bf16.msra.mxu0 %v8631_v28  ;;  %v2528_v28 = vld [vmem:[#allocation9 + $0xcb0] sm:$0xff] }
 0x37b   :  { %5831 = vmatpush1.bf16.msra.mxu1 %v8633_v36  ;;  %5668 = vmatprep.subr.bf16.mxu0 %v8640_v38  ;;  %v8690_v36 = vcombine.high %v2517_v21, %v2521_v53  ;;  %v2525_v38 = vld [vmem:[#allocation9 + $0xc98] sm:$0xff]  ;;  %v8696_v43 = vcombine.high %v2524_v27, %v2528_v28  ;;  %v8695_v49 = vcombine.low %v2524_v27, %v2528_v28 }
 0x37c   :  { %5832 = vmatprep.subr.bf16.mxu1 %v8642_v39  ;;  %v2529_v39 = vld [vmem:[#allocation9 + $0xcb8] sm:$0xff] }
 0x37d   :  { %v8698_v44 = vcombine.high %v2525_v38, %v2529_v39  ;;  %v2569_v21 = vld [vmem:[#allocation9 + $0xdf8] sm:$0xff] }
 0x37e   :  { %5669 = vmatpush1.bf16.msra.mxu0 %v8639_v45  ;;  %v2532_v45 = vld [vmem:[#allocation9 + $0xcd0] sm:$0xff] }
 0x37f   :  { %5833 = vmatpush1.bf16.msra.mxu1 %v8641_v46  ;;  %5670 = vmatprep.subr.bf16.mxu0 %v8648_v48  ;;  %v2536_v46 = vld [vmem:[#allocation9 + $0xcf0] sm:$0xff]  ;;  %v2533_v48 = vld [vmem:[#allocation9 + $0xcd8] sm:$0xff] }
 0x380   :  { %5834 = vmatprep.subr.bf16.mxu1 %v8650_v13  ;;  %v2537_v13 = vld [vmem:[#allocation9 + $0xcf8] sm:$0xff]  ;;  %v8704_v8 = vcombine.high %v2532_v45, %v2536_v46 }
 0x381   :  { %v8706_v51 = vcombine.high %v2533_v48, %v2537_v13 }
 0x382   :  { %5671 = vmatpush1.bf16.msra.mxu0 %v8647_v58  ;;  %v2544_v58 = vld [vmem:[#allocation9 + $0xd30] sm:$0xff] }
 0x383   :  { %5835 = vmatpush1.bf16.msra.mxu1 %v8649_v54  ;;  %5672 = vmatprep.subr.bf16.mxu0 %v8656_v59  ;;  %v2541_v54 = vld [vmem:[#allocation9 + $0xd18] sm:$0xff]  ;;  %v8712_v16 = vcombine.high %v2540_v52, %v2544_v58 }
 0x384   :  { %5836 = vmatprep.subr.bf16.mxu1 %v8658_v56  ;;  %v2545_v59 = vld [vmem:[#allocation9 + $0xd38] sm:$0xff]  ;;  %v8705_v56 = vcombine.low %v2533_v48, %v2537_v13 }
 0x385   :  { %v8714_v25 = vcombine.high %v2541_v54, %v2545_v59 }
 0x386   :  { %5673 = vmatpush1.bf16.msra.mxu0 %v8655_v60  ;;  %v2549_v60 = vld [vmem:[#allocation9 + $0xd58] sm:$0xff] }
 0x387   :  { %5837 = vmatpush1.bf16.msra.mxu1 %v8657_v61  ;;  %5674 = vmatprep.subr.bf16.mxu0 %v8664_v4  ;;  %v2553_v61 = vld [vmem:[#allocation9 + $0xd78] sm:$0xff]  ;;  %v8711_v4 = vcombine.low %v2540_v52, %v2544_v58  ;;  %v2584_v52 = vld [vmem:[#allocation9 + $0xe70] sm:$0xff] }
 0x388   :  { %5838 = vmatprep.subr.bf16.mxu1 %v8666_v62  ;;  %v8713_v62 = vcombine.low %v2541_v54, %v2545_v59  ;;  %v8722_v0 = vcombine.high %v2549_v60, %v2553_v61  ;;  %v8721_v7 = vcombine.low %v2549_v60, %v2553_v61  ;;  %v2581_v58 = vld [vmem:[#allocation9 + $0xe58] sm:$0xff] }
 0x389   :  { %v2585_v54 = vld [vmem:[#allocation9 + $0xe78] sm:$0xff] }
 0x38a   :  { %5675 = vmatpush1.bf16.msra.mxu0 %v8663_v2  ;;  %v2560_v2 = vld [vmem:[#allocation9 + $0xdb0] sm:$0xff]  ;;  %v2593_v60 = vld [vmem:[#allocation9 + $0xeb8] sm:$0xff] }
 0x38b   :  { %5839 = vmatpush1.bf16.msra.mxu1 %v8665_v9  ;;  %5676 = vmatprep.subr.bf16.mxu0 %v8672_v3  ;;  %v2557_v9 = vld [vmem:[#allocation9 + $0xd98] sm:$0xff]  ;;  %v8728_v11 = vcombine.high %v2556_v1, %v2560_v2  ;;  %v8727_v27 = vcombine.low %v2556_v1, %v2560_v2  ;;  %v2600_v1 = vld [vmem:[#allocation9 + $0xef0] sm:$0xff] }
 0x38c   :  { %5840 = vmatprep.subr.bf16.mxu1 %v8674_v6  ;;  %v2561_v3 = vld [vmem:[#allocation9 + $0xdb8] sm:$0xff]  ;;  %v2643_v6 = vrot.slane %v10189_v41, %v10082_v34 }
 0x38d   :  { %v2597_v2 = vld [vmem:[#allocation9 + $0xed8] sm:$0xff] }
 0x38e   :  { %5677 = vmatpush1.bf16.msra.mxu0 %v8671_v14 }
 0x38f   :  { %5841 = vmatpush1.bf16.msra.mxu1 %v8673_v47  ;;  %5687 = vmatprep.subr.bf16.mxu0 %v8680_v15  ;;  %v8730_v47 = vcombine.high %v2557_v9, %v2561_v3  ;;  %v2564_v15 = vld [vmem:[#allocation9 + $0xdd0] sm:$0xff] }
 0x390   :  { %5851 = vmatprep.subr.bf16.mxu1 %v8682_v17  ;;  %v2568_v17 = vld [vmem:[#allocation9 + $0xdf0] sm:$0xff] }
 0x391   :  { %5679 = vmatmul.mubr.bf16.vlgmr.msra.gmra.mrb[12].mxu0 %v10152_v55  ;;  %v8735_v13 = vcombine.low %v2564_v15, %v2568_v17 }
 0x392   :  { %5843 = vmatmul.mubr.bf16.vlgmr.msra.gmra.mrb[12].mxu1 %v10152_v55  ;;  %5688 = vmatpush1.bf16.msra.mxu0 %v8679_v20  ;;  %v8697_v55 = vcombine.low %v2525_v38, %v2529_v39  ;;  %v2565_v20 = vld [vmem:[#allocation9 + $0xdd8] sm:$0xff]  ;;  %v8729_v38 = vcombine.low %v2557_v9, %v2561_v3  ;;  %v8736_v39 = vcombine.high %v2564_v15, %v2568_v17  ;;  %v2608_v15 = vld [vmem:[#allocation9 + $0xf30] sm:$0xff] }
 0x393   :  { %5719 = vmatprep.mubr.bf16.mxu0 %v10157_v33  ;;  %5852 = vmatpush1.bf16.msra.mxu1 %v8681_v22  ;;  %v2601_v9 = vld [vmem:[#allocation9 + $0xef8] sm:$0xff] }
 0x394   :  { %5883 = vmatprep.mubr.bf16.mxu1 %v10157_v33  ;;  %5689 = vmatprep.subr.bf16.mxu0 %v8688_v23  ;;  %v8703_v33 = vcombine.low %v2532_v45, %v2536_v46  ;;  %v2573_v45 = vld [vmem:[#allocation9 + $0xe18] sm:$0xff] }
 0x395   :  { %5853 = vmatprep.subr.bf16.mxu1 %v8690_v36  ;;  %v2577_v46 = vld [vmem:[#allocation9 + $0xe38] sm:$0xff] }
 0x396   :  { %5690 = vmatpush1.bf16.msra.mxu0 %v8687_v40  ;;  %v2605_v17 = vld [vmem:[#allocation9 + $0xf18] sm:$0xff] }
 0x397   :  { %5854 = vmatpush1.bf16.msra.mxu1 %v8689_v42  ;;  %5691 = vmatprep.subr.bf16.mxu0 %v8696_v43  ;;  %v8738_v42 = vcombine.high %v2565_v20, %v2569_v21  ;;  %v2572_v43 = vld [vmem:[#allocation9 + $0xe10] sm:$0xff] }
 0x398   :  { %5855 = vmatprep.subr.bf16.mxu1 %v8698_v44  ;;  %v2576_v44 = vld [vmem:[#allocation9 + $0xe30] sm:$0xff] }
 0x399   :  { %v8743_v59 = vcombine.low %v2572_v43, %v2576_v44 }
 0x39a   :  { %5692 = vmatpush1.bf16.msra.mxu0 %v8695_v49  ;;  %v8737_v49 = vcombine.low %v2565_v20, %v2569_v21 }
 0x39b   :  { %5856 = vmatpush1.bf16.msra.mxu1 %v8697_v55  ;;  %5693 = vmatprep.subr.bf16.mxu0 %v8704_v8  ;;  %v8744_v55 = vcombine.high %v2572_v43, %v2576_v44  ;;  %v8746_v8 = vcombine.high %v2573_v45, %v2577_v46 }
 0x39c   :  { %5857 = vmatprep.subr.bf16.mxu1 %v8706_v51  ;;  %v2580_v51 = vld [vmem:[#allocation9 + $0xe50] sm:$0xff] }
 0x39d   :  { %v8751_v61 = vcombine.low %v2580_v51, %v2584_v52 }
 0x39e   :  { %5694 = vmatpush1.bf16.msra.mxu0 %v8703_v33  ;;  %v8745_v33 = vcombine.low %v2573_v45, %v2577_v46  ;;  %v2620_v45 = vld [vmem:[#allocation9 + $0xf90] sm:$0xff] }
 0x39f   :  { %5858 = vmatpush1.bf16.msra.mxu1 %v8705_v56  ;;  %5695 = vmatprep.subr.bf16.mxu0 %v8712_v16  ;;  %v8752_v56 = vcombine.high %v2580_v51, %v2584_v52  ;;  %v8754_v16 = vcombine.high %v2581_v58, %v2585_v54  ;;  %v2624_v46 = vld [vmem:[#allocation9 + $0xfb0] sm:$0xff] }
 0x3a0   :  { %5859 = vmatprep.subr.bf16.mxu1 %v8714_v25  ;;  %v2588_v25 = vld [vmem:[#allocation9 + $0xe90] sm:$0xff] }
 0x3a1   :  { %v8759_v3 = vcombine.low %v2588_v25, %v2592_v57  ;;  %v2628_v52 = vld [vmem:[#allocation9 + $0xfd0] sm:$0xff] }
 0x3a2   :  { %5696 = vmatpush1.bf16.msra.mxu0 %v8711_v4  ;;  %v8753_v4 = vcombine.low %v2581_v58, %v2585_v54  ;;  %v2632_v58 = vld [vmem:[#allocation9 + $0xff0] sm:$0xff]  ;;  %v2629_v54 = vld [vmem:[#allocation9 + $0xfd8] sm:$0xff] }
 0x3a3   :  { %5860 = vmatpush1.bf16.msra.mxu1 %v8713_v62  ;;  %5697 = vmatprep.subr.bf16.mxu0 %v8720_v63  ;;  %v8760_v62 = vcombine.high %v2588_v25, %v2592_v57  ;;  %v8762_v63 = vcombine.high %v2589_v24, %v2593_v60 }
 0x3a4   :  { %v10193_v12 = vpop.f32.mrb[8].mxu0  ;;  %v10195_v14 = vpop.f32.mrb[8].mxu1  ;;  %5861 = vmatprep.subr.bf16.mxu1 %v8722_v0  ;;  %v2596_v0 = vld [vmem:[#allocation9 + $0xed0] sm:$0xff] }
 0x3a5   :  { %v5395_v18 = vpop.f32.mrb[9].mxu0  ;;  %v10197_v19 = vpop.f32.mrb[9].mxu1  ;;  %v8767_v20 = vcombine.low %v2596_v0, %v2600_v1 }
 0x3a6   :  { %v9081_v53 = vadd.f32 %v5395_v18, %v2643_v6  ;;  %v5397_v22 = vpop.f32.mrb[10].mxu0  ;;  %v5561_v23 = vpop.f32.mrb[10].mxu1  ;;  %5698 = vmatpush1.bf16.msra.mxu0 %v8719_v5  ;;  %v8761_v6 = vcombine.low %v2589_v24, %v2593_v60  ;;  %v8768_v5 = vcombine.high %v2596_v0, %v2600_v1  ;;  %v2609_v18 = vld [vmem:[#allocation9 + $0xf38] sm:$0xff]  ;;  %v8799_v24 = vcombine.low %v2628_v52, %v2632_v58  ;;  %v9201_v0 = vld [vmem:[#allocation12 + $0x8] ss:$16 sps:$4 sm:$0xff]  }
 0x3a7   :  { %5862 = vmatpush1.bf16.msra.mxu1 %v8721_v7  ;;  %v5398_v28 = vpop.f32.mrb[11].mxu0  ;;  %v5562_v36 = vpop.f32.mrb[11].mxu1  ;;  %5699 = vmatprep.subr.bf16.mxu0 %v8728_v11  ;;  %v8770_v11 = vcombine.high %v2597_v2, %v2601_v9  ;;  %v8778_v23 = vcombine.high %v2605_v17, %v2609_v18  ;;  %v9206_v1 = vld [vmem:[#allocation12 + $0x24] ss:$16 sps:$4 sm:$0xff]  }
 0x3a8   :  { %v10199_v40 = vpack.c.bf16 %v9081_v53, %v9081_v53  ;;  %5863 = vmatprep.subr.bf16.mxu1 %v8730_v47  ;;  %v2604_v47 = vld [vmem:[#allocation9 + $0xf10] sm:$0xff]  ;;  %v8769_v53 = vcombine.low %v2597_v2, %v2601_v9  ;;  %v2613_v36 = vld [vmem:[#allocation9 + $0xf58] sm:$0xff] }
 0x3a9   :  { %v8776_v22 = vcombine.high %v2604_v47, %v2608_v15  ;;  %v2616_v28 = vld [vmem:[#allocation9 + $0xf70] sm:$0xff] }
 0x3aa   :  { %v8804_v48 = vmul.bf16 3216621497, %v10199_v40  ;;  %5700 = vmatpush1.bf16.msra.mxu0 %v8727_v27  ;;  %v2612_v27 = vld [vmem:[#allocation9 + $0xf50] sm:$0xff] }
 0x3ab   :  { %5864 = vmatpush1.bf16.msra.mxu1 %v8729_v38  ;;  %5701 = vmatprep.subr.bf16.mxu0 %v8736_v39  ;;  %v2617_v38 = vld [vmem:[#allocation9 + $0xf78] sm:$0xff]  ;;  %v8775_v39 = vcombine.low %v2604_v47, %v2608_v15  ;;  %v8784_v43 = vcombine.high %v2612_v27, %v2616_v28  ;;  %v9209_v9 = vld [vmem:[#allocation12 + $0x2c] ss:$16 sps:$4 sm:$0xff]  }
 0x3ac   :  { %5865 = vmatprep.subr.bf16.mxu1 %v8738_v42  ;;  %9614 = vpow.bf16 %v8804_v48  ;;  %v8777_v42 = vcombine.low %v2605_v17, %v2609_v18  ;;  %v8786_v44 = vcombine.high %v2613_v36, %v2617_v38  ;;  %v2621_v48 = vld [vmem:[#allocation9 + $0xf98] sm:$0xff]  ;;  %v9221_v15 = vld [vmem:[#allocation12 + $0x6c] ss:$16 sps:$4 sm:$0xff]   ;;  %v2639_v17 = vrot.slane %v10189_v41, %v10077_v32  ;;  %v9219_v18 = vld [vmem:[#allocation12 + $0x68] ss:$16 sps:$4 sm:$0xff]  }
 0x3ad   :  { %v9218_v47 = vld [vmem:[#allocation12 + $0x64] ss:$16 sps:$4 sm:$0xff]  }
 0x3ae   :  { %5702 = vmatpush1.bf16.msra.mxu0 %v8735_v13  ;;  %v2625_v13 = vld [vmem:[#allocation9 + $0xfb8] sm:$0xff] }
 0x3af   :  { %5866 = vmatpush1.bf16.msra.mxu1 %v8737_v49  ;;  %5703 = vmatprep.subr.bf16.mxu0 %v8744_v55  ;;  %v8783_v49 = vcombine.low %v2612_v27, %v2616_v28  ;;  %v8785_v55 = vcombine.low %v2613_v36, %v2617_v38  ;;  %v8794_v51 = vcombine.high %v2621_v48, %v2625_v13  ;;  %v9225_v27 = vld [vmem:[#allocation12 + $0x88] ss:$16 sps:$4 sm:$0xff]   ;;  %v9230_v28 = vld [vmem:[#allocation12 + $0xa4] ss:$16 sps:$4 sm:$0xff]   ;;  %v9233_v36 = vld [vmem:[#allocation12 + $0xac] ss:$16 sps:$4 sm:$0xff]  }
 0x3b0   :  { %5867 = vmatprep.subr.bf16.mxu1 %v8746_v8  ;;  %v8792_v8 = vcombine.high %v2620_v45, %v2624_v46 }
 0x3b2   :  { %5704 = vmatpush1.bf16.msra.mxu0 %v8743_v59  ;;  %v2633_v59 = vld [vmem:[#allocation9 + $0xff8] sm:$0xff] }
 0x3b3   :  { %5868 = vmatpush1.bf16.msra.mxu1 %v8745_v33  ;;  %5705 = vmatprep.subr.bf16.mxu0 %v8752_v56  ;;  %v8791_v33 = vcombine.low %v2620_v45, %v2624_v46  ;;  %v8793_v56 = vcombine.low %v2621_v48, %v2625_v13  ;;  %v8802_v25 = vcombine.high %v2629_v54, %v2633_v59  ;;  %v9239_v45 = vld [vmem:[#allocation12 + $0xcc] ss:$16 sps:$4 sm:$0xff]   ;;  %v9237_v13 = vld [vmem:[#allocation12 + $0xc8] ss:$16 sps:$4 sm:$0xff]  }
 0x3b4   :  { %5869 = vmatprep.subr.bf16.mxu1 %v8754_v16  ;;  %v8800_v16 = vcombine.high %v2628_v52, %v2632_v58  ;;  %v8801_v60 = vcombine.low %v2629_v54, %v2633_v59  ;;  %v9248_v52 = vld [vmem:[#allocation12 + $0x104] ss:$16 sps:$4 sm:$0xff]   ;;  %v9251_v58 = vld [vmem:[#allocation12 + $0x10c] ss:$16 sps:$4 sm:$0xff]   ;;  %v9246_v54 = vld [vmem:[#allocation12 + $0x100] ss:$16 sps:$4 sm:$0xff]  }
 0x3b5   :  { %v9249_v59 = vld [vmem:[#allocation12 + $0x108] ss:$16 sps:$4 sm:$0xff]  }
 0x3b6   :  { %5706 = vmatpush1.bf16.msra.mxu0 %v8751_v61  ;;  %v9200_v61 = vld [vmem:[#allocation12 + $0x4] ss:$16 sps:$4 sm:$0xff]  }
 0x3b7   :  { %5870 = vmatpush1.bf16.msra.mxu1 %v8753_v4  ;;  %5707 = vmatprep.subr.bf16.mxu0 %v8760_v62  ;;  %v9615_v7 = vpop.eup %9614  ;;  %v9203_v4 = vld [vmem:[#allocation12 + $0xc] ss:$16 sps:$4 sm:$0xff]  }
 0x3b8   :  { %5871 = vmatprep.subr.bf16.mxu1 %v8762_v63  ;;  %v5933_v21 = vadd.bf16 1065369472, %v9615_v7  ;;  %v9198_v63 = vld [vmem:[#allocation12] ss:$16 sps:$4 sm:$0xff]   ;;  %v9215_v7 = vld [vmem:[#allocation12 + $0x4c] ss:$16 sps:$4 sm:$0xff]  }
 0x3ba   :  { %5708 = vmatpush1.bf16.msra.mxu0 %v8759_v3  ;;  %9616 = vrcp.bf16 %v5933_v21  ;;  %v9204_v3 = vld [vmem:[#allocation12 + $0x20] ss:$16 sps:$4 sm:$0xff]   ;;  %v9227_v21 = vld [vmem:[#allocation12 + $0x8c] ss:$16 sps:$4 sm:$0xff]  }
 0x3bb   :  { %5872 = vmatpush1.bf16.msra.mxu1 %v8761_v6  ;;  %5709 = vmatprep.subr.bf16.mxu0 %v8768_v5  ;;  %v9207_v6 = vld [vmem:[#allocation12 + $0x28] ss:$16 sps:$4 sm:$0xff]   ;;  %v9212_v5 = vld [vmem:[#allocation12 + $0x44] ss:$16 sps:$4 sm:$0xff]  }
 0x3bc   :  { %5873 = vmatprep.subr.bf16.mxu1 %v8770_v11  ;;  %v9210_v11 = vld [vmem:[#allocation12 + $0x40] ss:$16 sps:$4 sm:$0xff]  }
 0x3be   :  { %5710 = vmatpush1.bf16.msra.mxu0 %v8767_v20  ;;  %v9224_v20 = vld [vmem:[#allocation12 + $0x84] ss:$16 sps:$4 sm:$0xff]  }
 0x3bf   :  { %5874 = vmatpush1.bf16.msra.mxu1 %v8769_v53  ;;  %5711 = vmatprep.subr.bf16.mxu0 %v8776_v22  ;;  %v2651_v53 = vrot.slane %v10189_v41, %v10085_v35  ;;  %v9222_v22 = vld [vmem:[#allocation12 + $0x80] ss:$16 sps:$4 sm:$0xff]  }
 0x3c0   :  { %5875 = vmatprep.subr.bf16.mxu1 %v8778_v23  ;;  %v9080_v23 = vadd.f32 %v10193_v12, %v2639_v17  ;;  %v9234_v12 = vld [vmem:[#allocation12 + $0xc0] ss:$16 sps:$4 sm:$0xff]   ;;  %v9284_v17 = vld [vmem:[#allocation12 + $0x1c4] ss:$16 sps:$4 sm:$0xff]  }
 0x3c1   :  { %v9083_v38 = vadd.f32 %v10197_v19, %v2651_v53  ;;  %v9242_v19 = vld [vmem:[#allocation12 + $0xe4] ss:$16 sps:$4 sm:$0xff]  }
 0x3c2   :  { %5712 = vmatpush1.bf16.msra.mxu0 %v8775_v39  ;;  %v9228_v39 = vld [vmem:[#allocation12 + $0xa0] ss:$16 sps:$4 sm:$0xff]   ;;  %v9290_v53 = vld [vmem:[#allocation12 + $0x1e4] ss:$16 sps:$4 sm:$0xff]  }
 0x3c3   :  { %5876 = vmatpush1.bf16.msra.mxu1 %v8777_v42  ;;  %5713 = vmatprep.subr.bf16.mxu0 %v8784_v43  ;;  %v10211_v42 = vpack.c.bf16 %v9080_v23, %v9080_v23  ;;  %v9231_v43 = vld [vmem:[#allocation12 + $0xa8] ss:$16 sps:$4 sm:$0xff]   ;;  %v10213_v46 = vpack.c.bf16 %v9083_v38, %v9083_v38  ;;  %v9293_v23 = vld [vmem:[#allocation12 + $0x1ec] ss:$16 sps:$4 sm:$0xff]  }
 0x3c4   :  { %5877 = vmatprep.subr.bf16.mxu1 %v8786_v44  ;;  %v9236_v44 = vld [vmem:[#allocation12 + $0xc4] ss:$16 sps:$4 sm:$0xff]   ;;  %v9291_v38 = vld [vmem:[#allocation12 + $0x1e8] ss:$16 sps:$4 sm:$0xff]  }
 0x3c5   :  { %v9617_v57 = vpop.eup %9616  ;;  %v8803_v48 = vmul.bf16 3216621497, %v10211_v42 }
 0x3c6   :  { %5714 = vmatpush1.bf16.msra.mxu0 %v8783_v49  ;;  %v5943_v62 = vmul.bf16 1065369472, %v9617_v57  ;;  %v9245_v49 = vld [vmem:[#allocation12 + $0xec] ss:$16 sps:$4 sm:$0xff]   ;;  %v9260_v57 = vld [vmem:[#allocation12 + $0x144] ss:$16 sps:$4 sm:$0xff]  }
 0x3c7   :  { %5878 = vmatpush1.bf16.msra.mxu1 %v8785_v55  ;;  %5715 = vmatprep.subr.bf16.mxu0 %v8792_v8  ;;  %v8806_v55 = vmul.bf16 3216621497, %v10213_v46  ;;  %v9240_v8 = vld [vmem:[#allocation12 + $0xe0] ss:$16 sps:$4 sm:$0xff]   ;;  %9618 = vpow.bf16 %v8803_v48  ;;  %v9297_v48 = vld [vmem:[#allocation12 + $0x208] ss:$16 sps:$4 sm:$0xff]  }
 0x3c8   :  { %5879 = vmatprep.subr.bf16.mxu1 %v8794_v51  ;;  %v5957_v2 = vmul.bf16 %v5943_v62, %v10199_v40  ;;  %v9213_v40 = vld [vmem:[#allocation12 + $0x48] ss:$16 sps:$4 sm:$0xff]   ;;  %v9266_v62 = vld [vmem:[#allocation12 + $0x164] ss:$16 sps:$4 sm:$0xff]  }
 0x3c9   :  { %v9243_v51 = vld [vmem:[#allocation12 + $0xe8] ss:$16 sps:$4 sm:$0xff]   ;;  %9620 = vpow.bf16 %v8806_v55  ;;  %v9300_v55 = vld [vmem:[#allocation12 + $0x220] ss:$16 sps:$4 sm:$0xff]  }
 0x3ca   :  { %5716 = vmatpush1.bf16.msra.mxu0 %v8791_v33  ;;  %v9254_v33 = vld [vmem:[#allocation12 + $0x124] ss:$16 sps:$4 sm:$0xff]  }
 0x3cb   :  { %5880 = vmatpush1.bf16.msra.mxu1 %v8793_v56  ;;  %5717 = vmatprep.subr.bf16.mxu0 %v8800_v16  ;;  %v9257_v56 = vld [vmem:[#allocation12 + $0x12c] ss:$16 sps:$4 sm:$0xff]   ;;  %v9252_v16 = vld [vmem:[#allocation12 + $0x120] ss:$16 sps:$4 sm:$0xff]  }
 0x3cc   :  { %5881 = vmatprep.subr.bf16.mxu1 %v8802_v25  ;;  %v9255_v25 = vld [vmem:[#allocation12 + $0x128] ss:$16 sps:$4 sm:$0xff]  }
 0x3ce   :  { %5718 = vmatpush1.bf16.msra.mxu0 %v8799_v24  ;;  %v9263_v24 = vld [vmem:[#allocation12 + $0x14c] ss:$16 sps:$4 sm:$0xff]  }
 0x3cf   :  { %5882 = vmatpush1.bf16.msra.mxu1 %v8801_v60  ;;  %7522 = vmatprep.subr.bf16.mxu0 %v9200_v61  ;;  %v9258_v61 = vld [vmem:[#allocation12 + $0x140] ss:$16 sps:$4 sm:$0xff]  }
 0x3d0   :  { %7686 = vmatprep.subr.bf16.mxu1 %v9203_v4  ;;  %v9261_v4 = vld [vmem:[#allocation12 + $0x148] ss:$16 sps:$4 sm:$0xff]  }
 0x3d1   :  { %5720 = vmatmul.mubr.bf16.vlgmr.msra.gmra.mrb[12].mxu0 %v10171_v50 }
 0x3d2   :  { %5884 = vmatmul.mubr.bf16.vlgmr.msra.gmra.mrb[12].mxu1 %v10171_v50  ;;  %7523 = vmatpush1.bf16.msra.mxu0 %v9198_v63  ;;  %v9216_v50 = vld [vmem:[#allocation12 + $0x60] ss:$16 sps:$4 sm:$0xff]   ;;  %v9619_v60 = vpop.eup %9618 }
 0x3d3   :  { %7554 = vmatprep.mubr.bf16.mxu0 %v5957_v2  ;;  %7687 = vmatpush1.bf16.msra.mxu1 %v9201_v0  ;;  %v9269_v0 = vld [vmem:[#allocation12 + $0x16c] ss:$16 sps:$4 sm:$0xff]  }
 0x3d4   :  { %7718 = vmatprep.mubr.bf16.mxu1 %v5957_v2  ;;  %7524 = vmatprep.subr.bf16.mxu0 %v9206_v1  ;;  %v9621_v63 = vpop.eup %9620  ;;  %v5932_v1 = vadd.bf16 1065369472, %v9619_v60  ;;  %v9264_v2 = vld [vmem:[#allocation12 + $0x160] ss:$16 sps:$4 sm:$0xff]   ;;  %v9321_v60 = vld [vmem:[#allocation12 + $0x288] ss:$16 sps:$4 sm:$0xff]  }
 0x3d5   :  { %7688 = vmatprep.subr.bf16.mxu1 %v9209_v9  ;;  %v5935_v9 = vadd.bf16 1065369472, %v9621_v63 }
 0x3d6   :  { %7525 = vmatpush1.bf16.msra.mxu0 %v9204_v3  ;;  %v9267_v3 = vld [vmem:[#allocation12 + $0x168] ss:$16 sps:$4 sm:$0xff]   ;;  %9622 = vrcp.bf16 %v5932_v1  ;;  %v9335_v1 = vld [vmem:[#allocation12 + $0x2cc] ss:$16 sps:$4 sm:$0xff]  }
 0x3d7   :  { %7689 = vmatpush1.bf16.msra.mxu1 %v9207_v6  ;;  %7526 = vmatprep.subr.bf16.mxu0 %v9212_v5  ;;  %v9272_v6 = vld [vmem:[#allocation12 + $0x184] ss:$16 sps:$4 sm:$0xff]   ;;  %v9275_v5 = vld [vmem:[#allocation12 + $0x18c] ss:$16 sps:$4 sm:$0xff]   ;;  %9624 = vrcp.bf16 %v5935_v9  ;;  %v9333_v9 = vld [vmem:[#allocation12 + $0x2c8] ss:$16 sps:$4 sm:$0xff]  }
 0x3d8   :  { %7690 = vmatprep.subr.bf16.mxu1 %v9215_v7  ;;  %v9270_v7 = vld [vmem:[#allocation12 + $0x180] ss:$16 sps:$4 sm:$0xff]  }
 0x3da   :  { %7527 = vmatpush1.bf16.msra.mxu0 %v9210_v11  ;;  %v9273_v11 = vld [vmem:[#allocation12 + $0x188] ss:$16 sps:$4 sm:$0xff]  }
 0x3db   :  { %7691 = vmatpush1.bf16.msra.mxu1 %v9213_v40  ;;  %7528 = vmatprep.subr.bf16.mxu0 %v9218_v47  ;;  %v9278_v40 = vld [vmem:[#allocation12 + $0x1a4] ss:$16 sps:$4 sm:$0xff]   ;;  %v9281_v47 = vld [vmem:[#allocation12 + $0x1ac] ss:$16 sps:$4 sm:$0xff]  }
 0x3dc   :  { %7692 = vmatprep.subr.bf16.mxu1 %v9221_v15  ;;  %v9276_v15 = vld [vmem:[#allocation12 + $0x1a0] ss:$16 sps:$4 sm:$0xff]  }
 0x3de   :  { %7529 = vmatpush1.bf16.msra.mxu0 %v9216_v50  ;;  %v9279_v50 = vld [vmem:[#allocation12 + $0x1a8] ss:$16 sps:$4 sm:$0xff]  }
 0x3df   :  { %7693 = vmatpush1.bf16.msra.mxu1 %v9219_v18  ;;  %7530 = vmatprep.subr.bf16.mxu0 %v9224_v20  ;;  %v9287_v18 = vld [vmem:[#allocation12 + $0x1cc] ss:$16 sps:$4 sm:$0xff]   ;;  %v9282_v20 = vld [vmem:[#allocation12 + $0x1c0] ss:$16 sps:$4 sm:$0xff]  }
 0x3e0   :  { %7694 = vmatprep.subr.bf16.mxu1 %v9227_v21  ;;  %v9285_v21 = vld [vmem:[#allocation12 + $0x1c8] ss:$16 sps:$4 sm:$0xff]  }
 0x3e2   :  { %7531 = vmatpush1.bf16.msra.mxu0 %v9222_v22  ;;  %v9623_v22 = vpop.eup %9622 }
 0x3e3   :  { %7695 = vmatpush1.bf16.msra.mxu1 %v9225_v27  ;;  %7532 = vmatprep.subr.bf16.mxu0 %v9230_v28  ;;  %v9625_v27 = vpop.eup %9624  ;;  %v9288_v28 = vld [vmem:[#allocation12 + $0x1e0] ss:$16 sps:$4 sm:$0xff]  }
 0x3e4   :  { %7696 = vmatprep.subr.bf16.mxu1 %v9233_v36  ;;  %v5941_v36 = vmul.bf16 1065369472, %v9623_v22 }
 0x3e6   :  { %7533 = vmatpush1.bf16.msra.mxu0 %v9228_v39  ;;  %v9296_v39 = vld [vmem:[#allocation12 + $0x204] ss:$16 sps:$4 sm:$0xff]  }
 0x3e7   :  { %7697 = vmatpush1.bf16.msra.mxu1 %v9231_v43  ;;  %7534 = vmatprep.subr.bf16.mxu0 %v9236_v44  ;;  %v9299_v43 = vld [vmem:[#allocation12 + $0x20c] ss:$16 sps:$4 sm:$0xff]   ;;  %v5947_v44 = vmul.bf16 1065369472, %v9625_v27  ;;  %v9357_v27 = vld [vmem:[#allocation12 + $0x348] ss:$16 sps:$4 sm:$0xff]  }
 0x3e8   :  { %7698 = vmatprep.subr.bf16.mxu1 %v9239_v45  ;;  %v9294_v45 = vld [vmem:[#allocation12 + $0x200] ss:$16 sps:$4 sm:$0xff]  }
 0x3ea   :  { %7535 = vmatpush1.bf16.msra.mxu0 %v9234_v12  ;;  %v5956_v12 = vmul.bf16 %v5941_v36, %v10211_v42  ;;  %v9306_v42 = vld [vmem:[#allocation12 + $0x240] ss:$16 sps:$4 sm:$0xff]   ;;  %v9365_v36 = vld [vmem:[#allocation12 + $0x36c] ss:$16 sps:$4 sm:$0xff]  }
 0x3eb   :  { %7699 = vmatpush1.bf16.msra.mxu1 %v9237_v13  ;;  %7536 = vmatprep.subr.bf16.mxu0 %v9242_v19  ;;  %v9302_v13 = vld [vmem:[#allocation12 + $0x224] ss:$16 sps:$4 sm:$0xff]   ;;  %v5959_v19 = vmul.bf16 %v5947_v44, %v10213_v46  ;;  %v9317_v46 = vld [vmem:[#allocation12 + $0x26c] ss:$16 sps:$4 sm:$0xff]  }
 0x3ec   :  { %7700 = vmatprep.subr.bf16.mxu1 %v9245_v49  ;;  %v9305_v49 = vld [vmem:[#allocation12 + $0x22c] ss:$16 sps:$4 sm:$0xff]   ;;  %v9368_v44 = vld [vmem:[#allocation12 + $0x384] ss:$16 sps:$4 sm:$0xff]  }
 0x3ee   :  { %7537 = vmatpush1.bf16.msra.mxu0 %v9240_v8  ;;  %v9303_v8 = vld [vmem:[#allocation12 + $0x228] ss:$16 sps:$4 sm:$0xff]  }
 0x3ef   :  { %7701 = vmatpush1.bf16.msra.mxu1 %v9243_v51  ;;  %7538 = vmatprep.subr.bf16.mxu0 %v9248_v52  ;;  %v9308_v51 = vld [vmem:[#allocation12 + $0x244] ss:$16 sps:$4 sm:$0xff]   ;;  %v9311_v52 = vld [vmem:[#allocation12 + $0x24c] ss:$16 sps:$4 sm:$0xff]  }
 0x3f0   :  { %7702 = vmatprep.subr.bf16.mxu1 %v9251_v58  ;;  %v9309_v58 = vld [vmem:[#allocation12 + $0x248] ss:$16 sps:$4 sm:$0xff]  }
 0x3f2   :  { %7539 = vmatpush1.bf16.msra.mxu0 %v9246_v54  ;;  %v9314_v54 = vld [vmem:[#allocation12 + $0x264] ss:$16 sps:$4 sm:$0xff]  }
 0x3f3   :  { %7703 = vmatpush1.bf16.msra.mxu1 %v9249_v59  ;;  %7540 = vmatprep.subr.bf16.mxu0 %v9254_v33  ;;  %v9312_v59 = vld [vmem:[#allocation12 + $0x260] ss:$16 sps:$4 sm:$0xff]   ;;  %v2647_v33 = vrot.slane %v10189_v41, %v10112_v29  ;;  %v9327_v41 = vld [vmem:[#allocation12 + $0x2a8] ss:$16 sps:$4 sm:$0xff]  }
 0x3f4   :  { %7704 = vmatprep.subr.bf16.mxu1 %v9257_v56  ;;  %v9315_v56 = vld [vmem:[#allocation12 + $0x268] ss:$16 sps:$4 sm:$0xff]  }
 0x3f6   :  { %7541 = vmatpush1.bf16.msra.mxu0 %v9252_v16  ;;  %v9320_v16 = vld [vmem:[#allocation12 + $0x284] ss:$16 sps:$4 sm:$0xff]  }
 0x3f7   :  { %7705 = vmatpush1.bf16.msra.mxu1 %v9255_v25  ;;  %7542 = vmatprep.subr.bf16.mxu0 %v9260_v57  ;;  %v9323_v25 = vld [vmem:[#allocation12 + $0x28c] ss:$16 sps:$4 sm:$0xff]   ;;  %v9318_v57 = vld [vmem:[#allocation12 + $0x280] ss:$16 sps:$4 sm:$0xff]  }
 0x3f8   :  { %7706 = vmatprep.subr.bf16.mxu1 %v9263_v24  ;;  %v9082_v24 = vadd.f32 %v10195_v14, %v2647_v33 }
 0x3fa   :  { %7543 = vmatpush1.bf16.msra.mxu0 %v9258_v61  ;;  %v9326_v61 = vld [vmem:[#allocation12 + $0x2a4] ss:$16 sps:$4 sm:$0xff]   ;;  %v10222_v63 = vpack.c.bf16 %v9082_v24, %v9082_v24 }
 0x3fb   :  { %7707 = vmatpush1.bf16.msra.mxu1 %v9261_v4  ;;  %7544 = vmatprep.subr.bf16.mxu0 %v9266_v62  ;;  %v9329_v4 = vld [vmem:[#allocation12 + $0x2ac] ss:$16 sps:$4 sm:$0xff]   ;;  %v9324_v62 = vld [vmem:[#allocation12 + $0x2a0] ss:$16 sps:$4 sm:$0xff]  }
 0x3fc   :  { %7708 = vmatprep.subr.bf16.mxu1 %v9269_v0  ;;  %v9332_v0 = vld [vmem:[#allocation12 + $0x2c4] ss:$16 sps:$4 sm:$0xff]   ;;  %v8805_v14 = vmul.bf16 3216621497, %v10222_v63 }
 0x3fe   :  { %7545 = vmatpush1.bf16.msra.mxu0 %v9264_v2  ;;  %v9330_v2 = vld [vmem:[#allocation12 + $0x2c0] ss:$16 sps:$4 sm:$0xff]   ;;  %9626 = vpow.bf16 %v8805_v14  ;;  %v9410_v14 = vld [vmem:[#allocation12 + $0x464] ss:$16 sps:$4 sm:$0xff]  }
 0x3ff   :  { %7709 = vmatpush1.bf16.msra.mxu1 %v9267_v3  ;;  %7546 = vmatprep.subr.bf16.mxu0 %v9272_v6  ;;  %v9338_v3 = vld [vmem:[#allocation12 + $0x2e4] ss:$16 sps:$4 sm:$0xff]   ;;  %v9341_v6 = vld [vmem:[#allocation12 + $0x2ec] ss:$16 sps:$4 sm:$0xff]  }
 0x400   :  { %7710 = vmatprep.subr.bf16.mxu1 %v9275_v5  ;;  %v9336_v5 = vld [vmem:[#allocation12 + $0x2e0] ss:$16 sps:$4 sm:$0xff]  }
 0x402   :  { %7547 = vmatpush1.bf16.msra.mxu0 %v9270_v7  ;;  %v9339_v7 = vld [vmem:[#allocation12 + $0x2e8] ss:$16 sps:$4 sm:$0xff]  }
 0x403   :  { %7711 = vmatpush1.bf16.msra.mxu1 %v9273_v11  ;;  %7548 = vmatprep.subr.bf16.mxu0 %v9278_v40  ;;  %v9344_v11 = vld [vmem:[#allocation12 + $0x304] ss:$16 sps:$4 sm:$0xff]   ;;  %v9347_v40 = vld [vmem:[#allocation12 + $0x30c] ss:$16 sps:$4 sm:$0xff]  }
 0x404   :  { %7712 = vmatprep.subr.bf16.mxu1 %v9281_v47  ;;  %v9342_v47 = vld [vmem:[#allocation12 + $0x300] ss:$16 sps:$4 sm:$0xff]  }
 0x406   :  { %7549 = vmatpush1.bf16.msra.mxu0 %v9276_v15  ;;  %v9345_v15 = vld [vmem:[#allocation12 + $0x308] ss:$16 sps:$4 sm:$0xff]  }
 0x407   :  { %7713 = vmatpush1.bf16.msra.mxu1 %v9279_v50  ;;  %7550 = vmatprep.subr.bf16.mxu0 %v9284_v17  ;;  %v9350_v50 = vld [vmem:[#allocation12 + $0x324] ss:$16 sps:$4 sm:$0xff]   ;;  %v9353_v17 = vld [vmem:[#allocation12 + $0x32c] ss:$16 sps:$4 sm:$0xff]  }
 0x408   :  { %7714 = vmatprep.subr.bf16.mxu1 %v9287_v18  ;;  %v9348_v18 = vld [vmem:[#allocation12 + $0x320] ss:$16 sps:$4 sm:$0xff]  }
 0x409   :  { %v9627_v22 = vpop.eup %9626 }
 0x40a   :  { %7551 = vmatpush1.bf16.msra.mxu0 %v9282_v20  ;;  %v9351_v20 = vld [vmem:[#allocation12 + $0x328] ss:$16 sps:$4 sm:$0xff]  }
 0x40b   :  { %7715 = vmatpush1.bf16.msra.mxu1 %v9285_v21  ;;  %7552 = vmatprep.subr.bf16.mxu0 %v9290_v53  ;;  %v9356_v21 = vld [vmem:[#allocation12 + $0x344] ss:$16 sps:$4 sm:$0xff]   ;;  %v9359_v53 = vld [vmem:[#allocation12 + $0x34c] ss:$16 sps:$4 sm:$0xff]  }
 0x40c   :  { %7716 = vmatprep.subr.bf16.mxu1 %v9293_v23  ;;  %v9354_v23 = vld [vmem:[#allocation12 + $0x340] ss:$16 sps:$4 sm:$0xff]  }
 0x40e   :  { %7553 = vmatpush1.bf16.msra.mxu0 %v9288_v28  ;;  %v9362_v28 = vld [vmem:[#allocation12 + $0x364] ss:$16 sps:$4 sm:$0xff]  }
 0x40f   :  { %7717 = vmatpush1.bf16.msra.mxu1 %v9291_v38  ;;  %7563 = vmatprep.subr.bf16.mxu0 %v9296_v39  ;;  %v5934_v38 = vadd.bf16 1065369472, %v9627_v22  ;;  %v9360_v39 = vld [vmem:[#allocation12 + $0x360] ss:$16 sps:$4 sm:$0xff]   ;;  %v9434_v22 = vld [vmem:[#allocation12 + $0x4e4] ss:$16 sps:$4 sm:$0xff]  }
 0x410   :  { %7727 = vmatprep.subr.bf16.mxu1 %v9299_v43  ;;  %v9363_v43 = vld [vmem:[#allocation12 + $0x368] ss:$16 sps:$4 sm:$0xff]  }
 0x411   :  { %7555 = vmatmul.mubr.bf16.vlgmr.msra.gmra.mrb[16].mxu0 %v5956_v12  ;;  %9628 = vrcp.bf16 %v5934_v38  ;;  %v9443_v38 = vld [vmem:[#allocation12 + $0x50c] ss:$16 sps:$4 sm:$0xff]  }
 0x412   :  { %7719 = vmatmul.mubr.bf16.vlgmr.msra.gmra.mrb[16].mxu1 %v5956_v12  ;;  %7564 = vmatpush1.bf16.msra.mxu0 %v9294_v45  ;;  %v9371_v45 = vld [vmem:[#allocation12 + $0x38c] ss:$16 sps:$4 sm:$0xff]   ;;  %v9366_v12 = vld [vmem:[#allocation12 + $0x380] ss:$16 sps:$4 sm:$0xff]  }
 0x413   :  { %7595 = vmatprep.mubr.bf16.mxu0 %v5959_v19  ;;  %7728 = vmatpush1.bf16.msra.mxu1 %v9297_v48  ;;  %v9369_v48 = vld [vmem:[#allocation12 + $0x388] ss:$16 sps:$4 sm:$0xff]  }
 0x414   :  { %7759 = vmatprep.mubr.bf16.mxu1 %v5959_v19  ;;  %7565 = vmatprep.subr.bf16.mxu0 %v9302_v13  ;;  %v9374_v13 = vld [vmem:[#allocation12 + $0x3a4] ss:$16 sps:$4 sm:$0xff]   ;;  %v9377_v19 = vld [vmem:[#allocation12 + $0x3ac] ss:$16 sps:$4 sm:$0xff]  }
 0x415   :  { %7729 = vmatprep.subr.bf16.mxu1 %v9305_v49  ;;  %v9372_v49 = vld [vmem:[#allocation12 + $0x3a0] ss:$16 sps:$4 sm:$0xff]  }
 0x416   :  { %7566 = vmatpush1.bf16.msra.mxu0 %v9300_v55  ;;  %v9375_v55 = vld [vmem:[#allocation12 + $0x3a8] ss:$16 sps:$4 sm:$0xff]  }
 0x417   :  { %7730 = vmatpush1.bf16.msra.mxu1 %v9303_v8  ;;  %7567 = vmatprep.subr.bf16.mxu0 %v9308_v51  ;;  %v9380_v8 = vld [vmem:[#allocation12 + $0x3c4] ss:$16 sps:$4 sm:$0xff]   ;;  %v9383_v51 = vld [vmem:[#allocation12 + $0x3cc] ss:$16 sps:$4 sm:$0xff]  }
 0x418   :  { %7731 = vmatprep.subr.bf16.mxu1 %v9311_v52  ;;  %v9378_v52 = vld [vmem:[#allocation12 + $0x3c0] ss:$16 sps:$4 sm:$0xff]  }
 0x41a   :  { %7568 = vmatpush1.bf16.msra.mxu0 %v9306_v42  ;;  %v9381_v42 = vld [vmem:[#allocation12 + $0x3c8] ss:$16 sps:$4 sm:$0xff]  }
 0x41b   :  { %7732 = vmatpush1.bf16.msra.mxu1 %v9309_v58  ;;  %7569 = vmatprep.subr.bf16.mxu0 %v9314_v54  ;;  %v9386_v58 = vld [vmem:[#allocation12 + $0x3e4] ss:$16 sps:$4 sm:$0xff]  }
 0x41c   :  { %7733 = vmatprep.subr.bf16.mxu1 %v9317_v46  ;;  %v9629_v54 = vpop.eup %9628  ;;  %v9389_v46 = vld [vmem:[#allocation12 + $0x3ec] ss:$16 sps:$4 sm:$0xff]  }
 0x41d   :  { %v5945_v33 = vmul.bf16 1065369472, %v9629_v54  ;;  %v9467_v54 = vld [vmem:[#allocation12 + $0x58c] ss:$16 sps:$4 sm:$0xff]  }
 0x41e   :  { %7570 = vmatpush1.bf16.msra.mxu0 %v9312_v59  ;;  %v9384_v59 = vld [vmem:[#allocation12 + $0x3e0] ss:$16 sps:$4 sm:$0xff]  }
 0x41f   :  { %7734 = vmatpush1.bf16.msra.mxu1 %v9315_v56  ;;  %7571 = vmatprep.subr.bf16.mxu0 %v9320_v16  ;;  %v9387_v56 = vld [vmem:[#allocation12 + $0x3e8] ss:$16 sps:$4 sm:$0xff]   ;;  %v9392_v16 = vld [vmem:[#allocation12 + $0x404] ss:$16 sps:$4 sm:$0xff]   ;;  %v5958_v24 = vmul.bf16 %v5945_v33, %v10222_v63 }
 0x420   :  { %7735 = vmatprep.subr.bf16.mxu1 %v9323_v25  ;;  %v9395_v25 = vld [vmem:[#allocation12 + $0x40c] ss:$16 sps:$4 sm:$0xff]   ;;  %v9405_v63 = vld [vmem:[#allocation12 + $0x448] ss:$16 sps:$4 sm:$0xff]   ;;  %v9470_v33 = vld [vmem:[#allocation12 + $0x5a4] ss:$16 sps:$4 sm:$0xff]  }
 0x422   :  { %7572 = vmatpush1.bf16.msra.mxu0 %v9318_v57  ;;  %v9390_v57 = vld [vmem:[#allocation12 + $0x400] ss:$16 sps:$4 sm:$0xff]  }
 0x423   :  { %7736 = vmatpush1.bf16.msra.mxu1 %v9321_v60  ;;  %7573 = vmatprep.subr.bf16.mxu0 %v9326_v61  ;;  %v9393_v60 = vld [vmem:[#allocation12 + $0x408] ss:$16 sps:$4 sm:$0xff]   ;;  %v9398_v61 = vld [vmem:[#allocation12 + $0x424] ss:$16 sps:$4 sm:$0xff]  }
 0x424   :  { %7737 = vmatprep.subr.bf16.mxu1 %v9329_v4  ;;  %v9401_v4 = vld [vmem:[#allocation12 + $0x42c] ss:$16 sps:$4 sm:$0xff]  }
 0x426   :  { %7574 = vmatpush1.bf16.msra.mxu0 %v9324_v62  ;;  %v9396_v62 = vld [vmem:[#allocation12 + $0x420] ss:$16 sps:$4 sm:$0xff]  }
 0x427   :  { %7738 = vmatpush1.bf16.msra.mxu1 %v9327_v41  ;;  %7575 = vmatprep.subr.bf16.mxu0 %v9332_v0  ;;  %v9399_v41 = vld [vmem:[#allocation12 + $0x428] ss:$16 sps:$4 sm:$0xff]   ;;  %v9404_v0 = vld [vmem:[#allocation12 + $0x444] ss:$16 sps:$4 sm:$0xff]  }
 0x428   :  { %7739 = vmatprep.subr.bf16.mxu1 %v9335_v1  ;;  %v9407_v1 = vld [vmem:[#allocation12 + $0x44c] ss:$16 sps:$4 sm:$0xff]  }
 0x42a   :  { %7576 = vmatpush1.bf16.msra.mxu0 %v9330_v2  ;;  %v9402_v2 = vld [vmem:[#allocation12 + $0x440] ss:$16 sps:$4 sm:$0xff]  }
 0x42b   :  { %7740 = vmatpush1.bf16.msra.mxu1 %v9333_v9  ;;  %7577 = vmatprep.subr.bf16.mxu0 %v9338_v3  ;;  %v9413_v9 = vld [vmem:[#allocation12 + $0x46c] ss:$16 sps:$4 sm:$0xff]   ;;  %v9408_v3 = vld [vmem:[#allocation12 + $0x460] ss:$16 sps:$4 sm:$0xff]  }
 0x42c   :  { %7741 = vmatprep.subr.bf16.mxu1 %v9341_v6  ;;  %v9411_v6 = vld [vmem:[#allocation12 + $0x468] ss:$16 sps:$4 sm:$0xff]  }
 0x42e   :  { %7578 = vmatpush1.bf16.msra.mxu0 %v9336_v5  ;;  %v9416_v5 = vld [vmem:[#allocation12 + $0x484] ss:$16 sps:$4 sm:$0xff]  }
 0x42f   :  { %7742 = vmatpush1.bf16.msra.mxu1 %v9339_v7  ;;  %7579 = vmatprep.subr.bf16.mxu0 %v9344_v11  ;;  %v9419_v7 = vld [vmem:[#allocation12 + $0x48c] ss:$16 sps:$4 sm:$0xff]   ;;  %v9414_v11 = vld [vmem:[#allocation12 + $0x480] ss:$16 sps:$4 sm:$0xff]  }
 0x430   :  { %7743 = vmatprep.subr.bf16.mxu1 %v9347_v40  ;;  %v9417_v40 = vld [vmem:[#allocation12 + $0x488] ss:$16 sps:$4 sm:$0xff]  }
 0x432   :  { %7580 = vmatpush1.bf16.msra.mxu0 %v9342_v47  ;;  %v9422_v47 = vld [vmem:[#allocation12 + $0x4a4] ss:$16 sps:$4 sm:$0xff]  }
 0x433   :  { %7744 = vmatpush1.bf16.msra.mxu1 %v9345_v15  ;;  %7581 = vmatprep.subr.bf16.mxu0 %v9350_v50  ;;  %v9425_v15 = vld [vmem:[#allocation12 + $0x4ac] ss:$16 sps:$4 sm:$0xff]   ;;  %v9420_v50 = vld [vmem:[#allocation12 + $0x4a0] ss:$16 sps:$4 sm:$0xff]  }
 0x434   :  { %7745 = vmatprep.subr.bf16.mxu1 %v9353_v17  ;;  %v9423_v17 = vld [vmem:[#allocation12 + $0x4a8] ss:$16 sps:$4 sm:$0xff]  }
 0x436   :  { %7582 = vmatpush1.bf16.msra.mxu0 %v9348_v18  ;;  %v9428_v18 = vld [vmem:[#allocation12 + $0x4c4] ss:$16 sps:$4 sm:$0xff]  }
 0x437   :  { %7746 = vmatpush1.bf16.msra.mxu1 %v9351_v20  ;;  %7583 = vmatprep.subr.bf16.mxu0 %v9356_v21  ;;  %v9431_v20 = vld [vmem:[#allocation12 + $0x4cc] ss:$16 sps:$4 sm:$0xff]   ;;  %v9426_v21 = vld [vmem:[#allocation12 + $0x4c0] ss:$16 sps:$4 sm:$0xff]  }
 0x438   :  { %7747 = vmatprep.subr.bf16.mxu1 %v9359_v53  ;;  %v9429_v53 = vld [vmem:[#allocation12 + $0x4c8] ss:$16 sps:$4 sm:$0xff]  }
 0x43a   :  { %7584 = vmatpush1.bf16.msra.mxu0 %v9354_v23  ;;  %v9437_v23 = vld [vmem:[#allocation12 + $0x4ec] ss:$16 sps:$4 sm:$0xff]  }
 0x43b   :  { %7748 = vmatpush1.bf16.msra.mxu1 %v9357_v27  ;;  %7585 = vmatprep.subr.bf16.mxu0 %v9362_v28  ;;  %v9432_v27 = vld [vmem:[#allocation12 + $0x4e0] ss:$16 sps:$4 sm:$0xff]   ;;  %v9435_v28 = vld [vmem:[#allocation12 + $0x4e8] ss:$16 sps:$4 sm:$0xff]  }
 0x43c   :  { %7749 = vmatprep.subr.bf16.mxu1 %v9365_v36  ;;  %v9440_v36 = vld [vmem:[#allocation12 + $0x504] ss:$16 sps:$4 sm:$0xff]  }
 0x43e   :  { %7586 = vmatpush1.bf16.msra.mxu0 %v9360_v39  ;;  %v9438_v39 = vld [vmem:[#allocation12 + $0x500] ss:$16 sps:$4 sm:$0xff]  }
 0x43f   :  { %7750 = vmatpush1.bf16.msra.mxu1 %v9363_v43  ;;  %7587 = vmatprep.subr.bf16.mxu0 %v9368_v44  ;;  %v9441_v43 = vld [vmem:[#allocation12 + $0x508] ss:$16 sps:$4 sm:$0xff]   ;;  %v9446_v44 = vld [vmem:[#allocation12 + $0x524] ss:$16 sps:$4 sm:$0xff]  }
 0x440   :  { %7751 = vmatprep.subr.bf16.mxu1 %v9371_v45  ;;  %v9449_v45 = vld [vmem:[#allocation12 + $0x52c] ss:$16 sps:$4 sm:$0xff]  }
 0x442   :  { %7588 = vmatpush1.bf16.msra.mxu0 %v9366_v12  ;;  %v9444_v12 = vld [vmem:[#allocation12 + $0x520] ss:$16 sps:$4 sm:$0xff]  }
 0x443   :  { %7752 = vmatpush1.bf16.msra.mxu1 %v9369_v48  ;;  %7589 = vmatprep.subr.bf16.mxu0 %v9374_v13  ;;  %v9447_v48 = vld [vmem:[#allocation12 + $0x528] ss:$16 sps:$4 sm:$0xff]   ;;  %v9452_v13 = vld [vmem:[#allocation12 + $0x544] ss:$16 sps:$4 sm:$0xff]  }
 0x444   :  { %7753 = vmatprep.subr.bf16.mxu1 %v9377_v19  ;;  %v9455_v19 = vld [vmem:[#allocation12 + $0x54c] ss:$16 sps:$4 sm:$0xff]  }
 0x446   :  { %7590 = vmatpush1.bf16.msra.mxu0 %v9372_v49  ;;  %v9450_v49 = vld [vmem:[#allocation12 + $0x540] ss:$16 sps:$4 sm:$0xff]  }
 0x447   :  { %7754 = vmatpush1.bf16.msra.mxu1 %v9375_v55  ;;  %7591 = vmatprep.subr.bf16.mxu0 %v9380_v8  ;;  %v9453_v55 = vld [vmem:[#allocation12 + $0x548] ss:$16 sps:$4 sm:$0xff]   ;;  %v9458_v8 = vld [vmem:[#allocation12 + $0x564] ss:$16 sps:$4 sm:$0xff]  }
 0x448   :  { %7755 = vmatprep.subr.bf16.mxu1 %v9383_v51  ;;  %v9461_v51 = vld [vmem:[#allocation12 + $0x56c] ss:$16 sps:$4 sm:$0xff]  }
 0x44a   :  { %7592 = vmatpush1.bf16.msra.mxu0 %v9378_v52  ;;  %v9456_v52 = vld [vmem:[#allocation12 + $0x560] ss:$16 sps:$4 sm:$0xff]  }
 0x44b   :  { %7756 = vmatpush1.bf16.msra.mxu1 %v9381_v42  ;;  %7593 = vmatprep.subr.bf16.mxu0 %v9386_v58  ;;  %v9459_v42 = vld [vmem:[#allocation12 + $0x568] ss:$16 sps:$4 sm:$0xff]   ;;  %v9464_v58 = vld [vmem:[#allocation12 + $0x584] ss:$16 sps:$4 sm:$0xff]  }
 0x44c   :  { %7757 = vmatprep.subr.bf16.mxu1 %v9389_v46  ;;  %v9462_v46 = vld [vmem:[#allocation12 + $0x580] ss:$16 sps:$4 sm:$0xff]  }
 0x44e   :  { %7594 = vmatpush1.bf16.msra.mxu0 %v9384_v59  ;;  %v9465_v59 = vld [vmem:[#allocation12 + $0x588] ss:$16 sps:$4 sm:$0xff]  }
 0x44f   :  { %7758 = vmatpush1.bf16.msra.mxu1 %v9387_v56  ;;  %7604 = vmatprep.subr.bf16.mxu0 %v9392_v16  ;;  %v9473_v56 = vld [vmem:[#allocation12 + $0x5ac] ss:$16 sps:$4 sm:$0xff]   ;;  %v9468_v16 = vld [vmem:[#allocation12 + $0x5a0] ss:$16 sps:$4 sm:$0xff]  }
 0x450   :  { %7768 = vmatprep.subr.bf16.mxu1 %v9395_v25  ;;  %v9471_v25 = vld [vmem:[#allocation12 + $0x5a8] ss:$16 sps:$4 sm:$0xff]  }
 0x451   :  { %7596 = vmatmul.mubr.bf16.vlgmr.msra.gmra.mrb[16].mxu0 %v5958_v24 }
 0x452   :  { %7760 = vmatmul.mubr.bf16.vlgmr.msra.gmra.mrb[16].mxu1 %v5958_v24  ;;  %7605 = vmatpush1.bf16.msra.mxu0 %v9390_v57  ;;  %v9476_v57 = vld [vmem:[#allocation12 + $0x5c4] ss:$16 sps:$4 sm:$0xff]   ;;  %v9479_v24 = vld [vmem:[#allocation12 + $0x5cc] ss:$16 sps:$4 sm:$0xff]  }
 0x453   :  { %7769 = vmatpush1.bf16.msra.mxu1 %v9393_v60  ;;  %7606 = vmatprep.subr.bf16.mxu0 %v9398_v61  ;;  %v9474_v60 = vld [vmem:[#allocation12 + $0x5c0] ss:$16 sps:$4 sm:$0xff]   ;;  %v9477_v61 = vld [vmem:[#allocation12 + $0x5c8] ss:$16 sps:$4 sm:$0xff]  }
 0x454   :  { %7770 = vmatprep.subr.bf16.mxu1 %v9401_v4  ;;  %v9482_v4 = vld [vmem:[#allocation12 + $0x5e4] ss:$16 sps:$4 sm:$0xff]  }
 0x456   :  { %7607 = vmatpush1.bf16.msra.mxu0 %v9396_v62  ;;  %v9485_v62 = vld [vmem:[#allocation12 + $0x5ec] ss:$16 sps:$4 sm:$0xff]  }
 0x457   :  { %7771 = vmatpush1.bf16.msra.mxu1 %v9399_v41  ;;  %7608 = vmatprep.subr.bf16.mxu0 %v9404_v0  ;;  %v9480_v41 = vld [vmem:[#allocation12 + $0x5e0] ss:$16 sps:$4 sm:$0xff]   ;;  %v9483_v0 = vld [vmem:[#allocation12 + $0x5e8] ss:$16 sps:$4 sm:$0xff]  }
 0x458   :  { %7772 = vmatprep.subr.bf16.mxu1 %v9407_v1  ;;  %v9488_v1 = vld [vmem:[#allocation12 + $0x604] ss:$16 sps:$4 sm:$0xff]  }
 0x45a   :  { %7609 = vmatpush1.bf16.msra.mxu0 %v9402_v2  ;;  %v9491_v2 = vld [vmem:[#allocation12 + $0x60c] ss:$16 sps:$4 sm:$0xff]  }
 0x45b   :  { %7773 = vmatpush1.bf16.msra.mxu1 %v9405_v63  ;;  %7610 = vmatprep.subr.bf16.mxu0 %v9410_v14  ;;  %v10226_v63 = vld [vmem:[#allocation11] sm:$0xff] }
 0x45c   :  { %7774 = vmatprep.subr.bf16.mxu1 %v9413_v9  ;;  %v2655_v14 = vrot.slane %v10226_v63, %v420_v26  ;;  %v2659_v9 = vrot.slane %v10226_v63, %v424_v30 }
 0x45e   :  { %7611 = vmatpush1.bf16.msra.mxu0 %v9408_v3  ;;  %v2667_v3 = vrot.slane %v10226_v63, %v432_v37 }
 0x45f   :  { %7775 = vmatpush1.bf16.msra.mxu1 %v9411_v6  ;;  %7612 = vmatprep.subr.bf16.mxu0 %v9416_v5 }
 0x460   :  { %7776 = vmatprep.subr.bf16.mxu1 %v9419_v7 }
 0x462   :  { %7613 = vmatpush1.bf16.msra.mxu0 %v9414_v11 }
 0x463   :  { %7777 = vmatpush1.bf16.msra.mxu1 %v9417_v40  ;;  %7614 = vmatprep.subr.bf16.mxu0 %v9422_v47 }
 0x464   :  { %7778 = vmatprep.subr.bf16.mxu1 %v9425_v15 }
 0x466   :  { %7615 = vmatpush1.bf16.msra.mxu0 %v9420_v50 }
 0x467   :  { %7779 = vmatpush1.bf16.msra.mxu1 %v9423_v17  ;;  %7616 = vmatprep.subr.bf16.mxu0 %v9428_v18 }
 0x468   :  { %7780 = vmatprep.subr.bf16.mxu1 %v9431_v20 }
 0x46a   :  { %7617 = vmatpush1.bf16.msra.mxu0 %v9426_v21 }
 0x46b   :  { %7781 = vmatpush1.bf16.msra.mxu1 %v9429_v53  ;;  %7618 = vmatprep.subr.bf16.mxu0 %v9434_v22 }
 0x46c   :  { %7782 = vmatprep.subr.bf16.mxu1 %v9437_v23 }
 0x46e   :  { %7619 = vmatpush1.bf16.msra.mxu0 %v9432_v27 }
 0x46f   :  { %7783 = vmatpush1.bf16.msra.mxu1 %v9435_v28  ;;  %7620 = vmatprep.subr.bf16.mxu0 %v9440_v36 }
 0x470   :  { %7784 = vmatprep.subr.bf16.mxu1 %v9443_v38 }
 0x472   :  { %7621 = vmatpush1.bf16.msra.mxu0 %v9438_v39 }
 0x473   :  { %7785 = vmatpush1.bf16.msra.mxu1 %v9441_v43  ;;  %7622 = vmatprep.subr.bf16.mxu0 %v9446_v44 }
 0x474   :  { %7786 = vmatprep.subr.bf16.mxu1 %v9449_v45 }
 0x476   :  { %7623 = vmatpush1.bf16.msra.mxu0 %v9444_v12 }
 0x477   :  { %7787 = vmatpush1.bf16.msra.mxu1 %v9447_v48  ;;  %7624 = vmatprep.subr.bf16.mxu0 %v9452_v13 }
 0x478   :  { %7788 = vmatprep.subr.bf16.mxu1 %v9455_v19 }
 0x47a   :  { %7625 = vmatpush1.bf16.msra.mxu0 %v9450_v49  ;;  %v9486_v49 = vld [vmem:[#allocation12 + $0x600] ss:$16 sps:$4 sm:$0xff]  }
 0x47b   :  { %7789 = vmatpush1.bf16.msra.mxu1 %v9453_v55  ;;  %7626 = vmatprep.subr.bf16.mxu0 %v9458_v8  ;;  %v9489_v55 = vld [vmem:[#allocation12 + $0x608] ss:$16 sps:$4 sm:$0xff]  }
 0x47c   :  { %7790 = vmatprep.subr.bf16.mxu1 %v9461_v51  ;;  %v9494_v51 = vld [vmem:[#allocation12 + $0x624] ss:$16 sps:$4 sm:$0xff]  }
 0x47e   :  { %7627 = vmatpush1.bf16.msra.mxu0 %v9456_v52  ;;  %v9497_v52 = vld [vmem:[#allocation12 + $0x62c] ss:$16 sps:$4 sm:$0xff]  }
 0x47f   :  { %7791 = vmatpush1.bf16.msra.mxu1 %v9459_v42  ;;  %7628 = vmatprep.subr.bf16.mxu0 %v9464_v58  ;;  %v9492_v58 = vld [vmem:[#allocation12 + $0x620] ss:$16 sps:$4 sm:$0xff]  }
 0x480   :  { %7792 = vmatprep.subr.bf16.mxu1 %v9467_v54  ;;  %v9495_v54 = vld [vmem:[#allocation12 + $0x628] ss:$16 sps:$4 sm:$0xff]  }
 0x482   :  { %7629 = vmatpush1.bf16.msra.mxu0 %v9462_v46  ;;  %v9500_v46 = vld [vmem:[#allocation12 + $0x644] ss:$16 sps:$4 sm:$0xff]  }
 0x483   :  { %7793 = vmatpush1.bf16.msra.mxu1 %v9465_v59  ;;  %7630 = vmatprep.subr.bf16.mxu0 %v9470_v33  ;;  %v9503_v59 = vld [vmem:[#allocation12 + $0x64c] ss:$16 sps:$4 sm:$0xff]   ;;  %v9498_v33 = vld [vmem:[#allocation12 + $0x640] ss:$16 sps:$4 sm:$0xff]  }
 0x484   :  { %7794 = vmatprep.subr.bf16.mxu1 %v9473_v56  ;;  %v9501_v56 = vld [vmem:[#allocation12 + $0x648] ss:$16 sps:$4 sm:$0xff]  }
 0x486   :  { %7631 = vmatpush1.bf16.msra.mxu0 %v9468_v16  ;;  %v9506_v16 = vld [vmem:[#allocation12 + $0x664] ss:$16 sps:$4 sm:$0xff]  }
 0x487   :  { %7795 = vmatpush1.bf16.msra.mxu1 %v9471_v25  ;;  %7632 = vmatprep.subr.bf16.mxu0 %v9476_v57  ;;  %v9509_v25 = vld [vmem:[#allocation12 + $0x66c] ss:$16 sps:$4 sm:$0xff]   ;;  %v9504_v57 = vld [vmem:[#allocation12 + $0x660] ss:$16 sps:$4 sm:$0xff]  }
 0x488   :  { %7796 = vmatprep.subr.bf16.mxu1 %v9479_v24  ;;  %v9507_v24 = vld [vmem:[#allocation12 + $0x668] ss:$16 sps:$4 sm:$0xff]  }
 0x48a   :  { %7633 = vmatpush1.bf16.msra.mxu0 %v9474_v60  ;;  %v2663_v60 = vrot.slane %v10226_v63, %v428_v10  ;;  %v9524_v10 = vld [vmem:[#allocation12 + $0x6c4] ss:$16 sps:$4 sm:$0xff]   ;;  %v9527_v63 = vld [vmem:[#allocation12 + $0x6cc] ss:$16 sps:$4 sm:$0xff]  }
 0x48b   :  { %7797 = vmatpush1.bf16.msra.mxu1 %v9477_v61  ;;  %7634 = vmatprep.subr.bf16.mxu0 %v9482_v4  ;;  %v9512_v61 = vld [vmem:[#allocation12 + $0x684] ss:$16 sps:$4 sm:$0xff]   ;;  %v9515_v4 = vld [vmem:[#allocation12 + $0x68c] ss:$16 sps:$4 sm:$0xff]  }
 0x48c   :  { %7798 = vmatprep.subr.bf16.mxu1 %v9485_v62  ;;  %v9510_v62 = vld [vmem:[#allocation12 + $0x680] ss:$16 sps:$4 sm:$0xff]  }
 0x48e   :  { %7635 = vmatpush1.bf16.msra.mxu0 %v9480_v41  ;;  %v9513_v41 = vld [vmem:[#allocation12 + $0x688] ss:$16 sps:$4 sm:$0xff]  }
 0x48f   :  { %7799 = vmatpush1.bf16.msra.mxu1 %v9483_v0  ;;  %7645 = vmatprep.subr.bf16.mxu0 %v9488_v1  ;;  %v9518_v1 = vld [vmem:[#allocation12 + $0x6a4] ss:$16 sps:$4 sm:$0xff]  }
 0x490   :  { %7809 = vmatprep.subr.bf16.mxu1 %v9491_v2  ;;  %v9521_v2 = vld [vmem:[#allocation12 + $0x6ac] ss:$16 sps:$4 sm:$0xff]  }
 0x4a4   :  { %v5721_v6 = vpop.f32.mrb[12].mxu0 }
 0x4a5   :  { %v9084_v5 = vadd.f32 %v5721_v6, %v2655_v14  ;;  %v10237_v7 = vpop.f32.mrb[12].mxu1  ;;  %v5723_v11 = vpop.f32.mrb[13].mxu0  ;;  %v9516_v14 = vld [vmem:[#allocation12 + $0x6a0] ss:$16 sps:$4 sm:$0xff]  }
 0x4a6   :  { %v9085_v40 = vadd.f32 %v5723_v11, %v2659_v9  ;;  %v5887_v47 = vpop.f32.mrb[13].mxu1  ;;  %v5725_v15 = vpop.f32.mrb[14].mxu0  ;;  %v9086_v0 = vadd.f32 %v10237_v7, %v2663_v60  ;;  %v9519_v9 = vld [vmem:[#allocation12 + $0x6a8] ss:$16 sps:$4 sm:$0xff]   ;;  %v9522_v6 = vld [vmem:[#allocation12 + $0x6c0] ss:$16 sps:$4 sm:$0xff]  }
 0x4a7   :  { %v5896_v50 = vpack.c.bf16 %v9084_v5, %v9084_v5  ;;  %v9087_v17 = vadd.f32 %v5887_v47, %v2667_v3  ;;  %v5889_v18 = vpop.f32.mrb[14].mxu1  ;;  %v5726_v26 = vpop.f32.mrb[15].mxu0  ;;  %v9525_v5 = vld [vmem:[#allocation12 + $0x6c8] ss:$16 sps:$4 sm:$0xff]   ;;  %v9530_v11 = vld [vmem:[#allocation12 + $0x6e4] ss:$16 sps:$4 sm:$0xff]  }
 0x4a8   :  { %v5897_v20 = vpack.c.bf16 %v9085_v40, %v9085_v40  ;;  %v5890_v21 = vpop.f32.mrb[15].mxu1  ;;  %v10243_v3 = vpack.c.bf16 %v9086_v0, %v9086_v0  ;;  %v9533_v40 = vld [vmem:[#allocation12 + $0x6ec] ss:$16 sps:$4 sm:$0xff]   ;;  %v9528_v47 = vld [vmem:[#allocation12 + $0x6e0] ss:$16 sps:$4 sm:$0xff]  }
 0x4a9   :  { %v8807_v53 = vmul.bf16 3216621497, %v5896_v50  ;;  %v5899_v30 = vpack.c.bf16 %v9087_v17, %v9087_v17  ;;  %v9531_v15 = vld [vmem:[#allocation12 + $0x6e8] ss:$16 sps:$4 sm:$0xff]   ;;  %v9539_v17 = vld [vmem:[#allocation12 + $0x70c] ss:$16 sps:$4 sm:$0xff]  }
 0x4aa   :  { %v8808_v22 = vmul.bf16 3216621497, %v5897_v20  ;;  %v8809_v7 = vmul.bf16 3216621497, %v10243_v3  ;;  %v9534_v18 = vld [vmem:[#allocation12 + $0x700] ss:$16 sps:$4 sm:$0xff]  }
 0x4ab   :  { %9630 = vpow.bf16 %v8807_v53  ;;  %v8810_v23 = vmul.bf16 3216621497, %v5899_v30  ;;  %v9537_v26 = vld [vmem:[#allocation12 + $0x708] ss:$16 sps:$4 sm:$0xff]   ;;  %v9545_v21 = vld [vmem:[#allocation12 + $0x72c] ss:$16 sps:$4 sm:$0xff]  }
 0x4ac   :  { %9632 = vpow.bf16 %v8808_v22  ;;  %v9540_v53 = vld [vmem:[#allocation12 + $0x720] ss:$16 sps:$4 sm:$0xff]   ;;  %v9548_v22 = vld [vmem:[#allocation12 + $0x744] ss:$16 sps:$4 sm:$0xff]  }
 0x4ad   :  { %9634 = vpow.bf16 %v8810_v23  ;;  %v9551_v23 = vld [vmem:[#allocation12 + $0x74c] ss:$16 sps:$4 sm:$0xff]  }
 0x4b6   :  { %v9631_v37 = vpop.eup %9630 }
 0x4b7   :  { %v5936_v27 = vadd.bf16 1065369472, %v9631_v37  ;;  %v9633_v28 = vpop.eup %9632 }
 0x4b8   :  { %v9635_v36 = vpop.eup %9634  ;;  %v5937_v38 = vadd.bf16 1065369472, %v9633_v28  ;;  %v9549_v28 = vld [vmem:[#allocation12 + $0x748] ss:$16 sps:$4 sm:$0xff]  }
 0x4b9   :  { %9636 = vrcp.bf16 %v5936_v27  ;;  %v5939_v39 = vadd.bf16 1065369472, %v9635_v36  ;;  %v9546_v27 = vld [vmem:[#allocation12 + $0x740] ss:$16 sps:$4 sm:$0xff]   ;;  %v9554_v36 = vld [vmem:[#allocation12 + $0x764] ss:$16 sps:$4 sm:$0xff]  }
 0x4ba   :  { %9638 = vrcp.bf16 %v5937_v38  ;;  %v9557_v38 = vld [vmem:[#allocation12 + $0x76c] ss:$16 sps:$4 sm:$0xff]  }
 0x4bb   :  { %9640 = vrcp.bf16 %v5939_v39 }
 0x4bc   :  { %9642 = vpow.bf16 %v8809_v7 }
 0x4c4   :  { %v9637_v43 = vpop.eup %9636 }
 0x4c5   :  { %v9639_v44 = vpop.eup %9638  ;;  %v5949_v45 = vmul.bf16 1065369472, %v9637_v43  ;;  %v9552_v43 = vld [vmem:[#allocation12 + $0x760] ss:$16 sps:$4 sm:$0xff]  }
 0x4c6   :  { %v9641_v12 = vpop.eup %9640  ;;  %v5951_v48 = vmul.bf16 1065369472, %v9639_v44  ;;  %v9555_v44 = vld [vmem:[#allocation12 + $0x768] ss:$16 sps:$4 sm:$0xff]  }
 0x4c7   :  { %v5955_v13 = vmul.bf16 1065369472, %v9641_v12  ;;  %v5960_v8 = vmul.bf16 %v5949_v45, %v5896_v50  ;;  %v9536_v50 = vld [vmem:[#allocation12 + $0x704] ss:$16 sps:$4 sm:$0xff]   ;;  %v9643_v37 = vpop.eup %9642  ;;  %v9563_v12 = vld [vmem:[#allocation12 + $0x78c] ss:$16 sps:$4 sm:$0xff]  }
 0x4c8   :  { %v5961_v19 = vmul.bf16 %v5951_v48, %v5897_v20  ;;  %v9542_v20 = vld [vmem:[#allocation12 + $0x724] ss:$16 sps:$4 sm:$0xff]   ;;  %v5938_v39 = vadd.bf16 1065369472, %v9643_v37  ;;  %v9558_v48 = vld [vmem:[#allocation12 + $0x780] ss:$16 sps:$4 sm:$0xff]  }
 0x4c9   :  { %v5963_v42 = vmul.bf16 %v5955_v13, %v5899_v30  ;;  %v9543_v30 = vld [vmem:[#allocation12 + $0x728] ss:$16 sps:$4 sm:$0xff]   ;;  %v9560_v45 = vld [vmem:[#allocation12 + $0x784] ss:$16 sps:$4 sm:$0xff]  }
 0x4ca   :  { %7636 = vmatprep.mubr.bf16.mxu0 %v5961_v19  ;;  %7800 = vmatprep.mubr.bf16.mxu1 %v5961_v19  ;;  %9644 = vrcp.bf16 %v5938_v39  ;;  %v9561_v13 = vld [vmem:[#allocation12 + $0x788] ss:$16 sps:$4 sm:$0xff]   ;;  %v9566_v19 = vld [vmem:[#allocation12 + $0x7a4] ss:$16 sps:$4 sm:$0xff]  }
 0x4cb   :  { %7637 = vmatmul.mubr.bf16.vlgmr.msra.gmra.mrb[16].mxu0 %v5960_v8  ;;  %7801 = vmatmul.mubr.bf16.vlgmr.msra.gmra.mrb[16].mxu1 %v5960_v8  ;;  %v9567_v8 = vld [vmem:[#allocation12 + $0x7a8] ss:$16 sps:$4 sm:$0xff]  }
 0x4cc   :  { %7646 = vmatpush1.bf16.msra.mxu0 %v9486_v49  ;;  %7810 = vmatpush1.bf16.msra.mxu1 %v9489_v55  ;;  %v9569_v49 = vld [vmem:[#allocation12 + $0x7ac] ss:$16 sps:$4 sm:$0xff]   ;;  %v9564_v55 = vld [vmem:[#allocation12 + $0x7a0] ss:$16 sps:$4 sm:$0xff]  }
 0x4cd   :  { %7677 = vmatprep.mubr.bf16.mxu0 %v5963_v42  ;;  %7841 = vmatprep.mubr.bf16.mxu1 %v5963_v42  ;;  %v9570_v42 = vld [vmem:[#allocation12 + $0x7c0] ss:$16 sps:$4 sm:$0xff]  }
 0x4ce   :  { %7647 = vmatprep.subr.bf16.mxu0 %v9494_v51  ;;  %7811 = vmatprep.subr.bf16.mxu1 %v9497_v52  ;;  %v9572_v51 = vld [vmem:[#allocation12 + $0x7c4] ss:$16 sps:$4 sm:$0xff]   ;;  %v9575_v52 = vld [vmem:[#allocation12 + $0x7cc] ss:$16 sps:$4 sm:$0xff]  }
 0x4d0   :  { %7648 = vmatpush1.bf16.msra.mxu0 %v9492_v58  ;;  %7812 = vmatpush1.bf16.msra.mxu1 %v9495_v54  ;;  %v9573_v58 = vld [vmem:[#allocation12 + $0x7c8] ss:$16 sps:$4 sm:$0xff]   ;;  %v9578_v54 = vld [vmem:[#allocation12 + $0x7e4] ss:$16 sps:$4 sm:$0xff]  }
 0x4d1   :  { %7649 = vmatprep.subr.bf16.mxu0 %v9500_v46  ;;  %7813 = vmatprep.subr.bf16.mxu1 %v9503_v59  ;;  %v9581_v46 = vld [vmem:[#allocation12 + $0x7ec] ss:$16 sps:$4 sm:$0xff]  }
 0x4d4   :  { %7650 = vmatpush1.bf16.msra.mxu0 %v9498_v33  ;;  %7814 = vmatpush1.bf16.msra.mxu1 %v9501_v56  ;;  %v9576_v33 = vld [vmem:[#allocation12 + $0x7e0] ss:$16 sps:$4 sm:$0xff]   ;;  %v9579_v56 = vld [vmem:[#allocation12 + $0x7e8] ss:$16 sps:$4 sm:$0xff]  }
 0x4d5   :  { %7651 = vmatprep.subr.bf16.mxu0 %v9506_v16  ;;  %7815 = vmatprep.subr.bf16.mxu1 %v9509_v25  ;;  %v9645_v59 = vpop.eup %9644 }
 0x4d6   :  { %v5953_v16 = vmul.bf16 1065369472, %v9645_v59 }
 0x4d8   :  { %7652 = vmatpush1.bf16.msra.mxu0 %v9504_v57  ;;  %7816 = vmatpush1.bf16.msra.mxu1 %v9507_v24  ;;  %v5962_v25 = vmul.bf16 %v5953_v16, %v10243_v3  ;;  %v9886_v57 = vmov 1966171168  }
 0x4d9   :  { %7653 = vmatprep.subr.bf16.mxu0 %v9512_v61  ;;  %7817 = vmatprep.subr.bf16.mxu1 %v9515_v4  ;;  %v7907_v24 = vunpack.c.l.s4 %v9886_v57  ;;  %v9071_v61 = vld.sshfl [vmem:[#allocation15] sm:$0x33 pattern:$0x75316420] }
 0x4da   :  { %v7905_v4 = vcombine.high %v9071_v61, %v9071_v61 }
 0x4db   :  { %v7908_v60 = vunpack.c.0.s8 %v7907_v24 }
 0x4dc   :  { %7654 = vmatpush1.bf16.msra.mxu0 %v9510_v62  ;;  %7818 = vmatpush1.bf16.msra.mxu1 %v9513_v41 }
 0x4dd   :  { %7655 = vmatprep.subr.bf16.mxu0 %v9518_v1  ;;  %7819 = vmatprep.subr.bf16.mxu1 %v9521_v2  ;;  %v7911_v62 = vsub.s32 %v7908_v60, %v10074_v31  ;;  %v7887_v2 = vld [vmem:[#allocation2] sm:$0x1] }
 0x4df   :  { %v7919_v41 = vrot.slane %v7905_v4, %v7911_v62  ;;  %v10248_v0 = vrot.slane %v9071_v61, %v7911_v62 }
 0x4e0   :  { %7656 = vmatpush1.bf16.msra.mxu0 %v9516_v14  ;;  %7820 = vmatpush1.bf16.msra.mxu1 %v9519_v9  ;;  %v9887_v14 = vmov 0   ;;  %v6220_v9 = vld [vmem:[#allocation14] sm:$0xf] }
 0x4e1   :  { %7657 = vmatprep.subr.bf16.mxu0 %v9524_v10  ;;  %7821 = vmatprep.subr.bf16.mxu1 %v9527_v63  ;;  %v7921_v1 = vcombine.high %v7919_v41, %v7919_v41  ;;  %v6225_v3 = vrot.slane %v6220_v9, %v10077_v32  ;;  %v6233_v10 = vrot.slane %v6220_v9, %v10112_v29 }
 0x4e2   :  { %9197 = vset.pattern.permute.xlu0 %v9887_v14  ;;  %v6229_v63 = vrot.slane %v6220_v9, %v10082_v34 }
 0x4e3   :  { %7890 = vperm.xlu0 %9197, %v7887_v2  }
 0x4e4   :  { %7658 = vmatpush1.bf16.msra.mxu0 %v9522_v6  ;;  %7822 = vmatpush1.bf16.msra.mxu1 %v9525_v5  ;;  %v6237_v6 = vrot.slane %v6220_v9, %v10085_v35 }
 0x4e5   :  { %7659 = vmatprep.subr.bf16.mxu0 %v9530_v11  ;;  %7823 = vmatprep.subr.bf16.mxu1 %v9533_v40 }
 0x4e8   :  { %7660 = vmatpush1.bf16.msra.mxu0 %v9528_v47  ;;  %7824 = vmatpush1.bf16.msra.mxu1 %v9531_v15 }
 0x4e9   :  { %7661 = vmatprep.subr.bf16.mxu0 %v9536_v50  ;;  %7825 = vmatprep.subr.bf16.mxu1 %v9539_v17 }
 0x4ec   :  { %7662 = vmatpush1.bf16.msra.mxu0 %v9534_v18  ;;  %7826 = vmatpush1.bf16.msra.mxu1 %v9537_v26 }
 0x4ed   :  { %7663 = vmatprep.subr.bf16.mxu0 %v9542_v20  ;;  %7827 = vmatprep.subr.bf16.mxu1 %v9545_v21 }
 0x4f0   :  { %7664 = vmatpush1.bf16.msra.mxu0 %v9540_v53  ;;  %7828 = vmatpush1.bf16.msra.mxu1 %v9543_v30 }
 0x4f1   :  { %7665 = vmatprep.subr.bf16.mxu0 %v9548_v22  ;;  %7829 = vmatprep.subr.bf16.mxu1 %v9551_v23 }
 0x4f4   :  { %7666 = vmatpush1.bf16.msra.mxu0 %v9546_v27  ;;  %7830 = vmatpush1.bf16.msra.mxu1 %v9549_v28 }
 0x4f5   :  { %7667 = vmatprep.subr.bf16.mxu0 %v9554_v36  ;;  %7831 = vmatprep.subr.bf16.mxu1 %v9557_v38 }
 0x4f8   :  { %7668 = vmatpush1.bf16.msra.mxu0 %v9552_v43  ;;  %7832 = vmatpush1.bf16.msra.mxu1 %v9555_v44 }
 0x4f9   :  { %7669 = vmatprep.subr.bf16.mxu0 %v9560_v45  ;;  %7833 = vmatprep.subr.bf16.mxu1 %v9563_v12 }
 0x4fc   :  { %7670 = vmatpush1.bf16.msra.mxu0 %v9558_v48  ;;  %7834 = vmatpush1.bf16.msra.mxu1 %v9561_v13 }
 0x4fd   :  { %7671 = vmatprep.subr.bf16.mxu0 %v9566_v19  ;;  %7835 = vmatprep.subr.bf16.mxu1 %v9569_v49 }
 0x500   :  { %7672 = vmatpush1.bf16.msra.mxu0 %v9564_v55  ;;  %7836 = vmatpush1.bf16.msra.mxu1 %v9567_v8 }
 0x501   :  { %7673 = vmatprep.subr.bf16.mxu0 %v9572_v51  ;;  %7837 = vmatprep.subr.bf16.mxu1 %v9575_v52 }
 0x504   :  { %7674 = vmatpush1.bf16.msra.mxu0 %v9570_v42  ;;  %7838 = vmatpush1.bf16.msra.mxu1 %v9573_v58 }
 0x505   :  { %7675 = vmatprep.subr.bf16.mxu0 %v9578_v54  ;;  %7839 = vmatprep.subr.bf16.mxu1 %v9581_v46  ;;  %v7920_v54 = vcombine.high %v10248_v0, %v10248_v0 }
 0x508   :  { %7676 = vmatpush1.bf16.msra.mxu0 %v9576_v33  ;;  %7840 = vmatpush1.bf16.msra.mxu1 %v9579_v56 }
 0x50b   :  { %7678 = vmatmul.mubr.bf16.vlgmr.msra.gmra.mrb[16].mxu0 %v5962_v25  ;;  %7842 = vmatmul.mubr.bf16.vlgmr.msra.gmra.mrb[16].mxu1 %v5962_v25 }
 0x50c   :  { %7958 = vmatprep.mubr.bf16.mxu1 %v7919_v41  ;;  %7998 = vmatprep.mubr.bf16.mxu0 %v7921_v1 }
 0x562   :  { %v7891_v46 = vpop.permute.xlu0 %7890 }
 0x563   :  { %v7896_v59 = vrot.slane %v7891_v46, %v10077_v32 }
 0x5de   :  { %v7679_v31 = vpop.f32.mrb[16].mxu0  ;;  %v7843_v5 = vpop.f32.mrb[16].mxu1 }
 0x5df   :  { %v9088_v7 = vadd.f32 %v7679_v31, %v6225_v3  ;;  %v9090_v11 = vadd.f32 %v7843_v5, %v6233_v10  ;;  %v7681_v40 = vpop.f32.mrb[17].mxu0  ;;  %v7845_v47 = vpop.f32.mrb[17].mxu1 }
 0x5e0   :  { %v9089_v15 = vadd.f32 %v7681_v40, %v6229_v63  ;;  %v9091_v50 = vadd.f32 %v7845_v47, %v6237_v6  ;;  %v7683_v17 = vpop.f32.mrb[18].mxu0  ;;  %v7847_v18 = vpop.f32.mrb[18].mxu1 }
 0x5e1   :  { %v7850_v26 = vpack.c.bf16 %v9088_v7, %v9088_v7  ;;  %v7852_v20 = vpack.c.bf16 %v9090_v11, %v9090_v11  ;;  %v7684_v21 = vpop.f32.mrb[19].mxu0  ;;  %v7848_v53 = vpop.f32.mrb[19].mxu1 }
 0x5e2   :  { %v7851_v30 = vpack.c.bf16 %v9089_v15, %v9089_v15  ;;  %v7853_v29 = vpack.c.bf16 %v9091_v50, %v9091_v50 }
 0x5e3   :  { %v9067_v22 = vmul.bf16 3216621497, %v7850_v26  ;;  %v9069_v34 = vmul.bf16 3216621497, %v7852_v20 }
 0x5e4   :  { %v9068_v23 = vmul.bf16 3216621497, %v7851_v30  ;;  %v9070_v35 = vmul.bf16 3216621497, %v7853_v29 }
 0x5e5   :  { %9646 = vpow.bf16 %v9067_v22 }
 0x5e6   :  { %9648 = vpow.bf16 %v9069_v34 }
 0x5e7   :  { %9650 = vpow.bf16 %v9068_v23 }
 0x5e8   :  { %9652 = vpow.bf16 %v9070_v35 }
 0x5f0   :  { %v9647_v37 = vpop.eup %9646 }
 0x5f1   :  { %v9649_v27 = vpop.eup %9648  ;;  %v7870_v28 = vadd.bf16 1065369472, %v9647_v37 }
 0x5f2   :  { %v9651_v36 = vpop.eup %9650  ;;  %v7872_v38 = vadd.bf16 1065369472, %v9649_v27 }
 0x5f3   :  { %v9653_v39 = vpop.eup %9652  ;;  %9654 = vrcp.bf16 %v7870_v28  ;;  %v7871_v43 = vadd.bf16 1065369472, %v9651_v36 }
 0x5f4   :  { %9656 = vrcp.bf16 %v7872_v38  ;;  %v7873_v44 = vadd.bf16 1065369472, %v9653_v39 }
 0x5f5   :  { %9658 = vrcp.bf16 %v7871_v43 }
 0x5f6   :  { %9660 = vrcp.bf16 %v7873_v44 }
 0x5fe   :  { %v9655_v45 = vpop.eup %9654 }
 0x5ff   :  { %v9657_v12 = vpop.eup %9656  ;;  %v7875_v13 = vmul.bf16 1065369472, %v9655_v45 }
 0x600   :  { %v9659_v48 = vpop.eup %9658  ;;  %v7879_v49 = vmul.bf16 1065369472, %v9657_v12 }
 0x601   :  { %v9661_v19 = vpop.eup %9660  ;;  %v7877_v55 = vmul.bf16 1065369472, %v9659_v48  ;;  %v7882_v52 = vmul.bf16 %v7875_v13, %v7850_v26 }
 0x602   :  { %v7881_v8 = vmul.bf16 1065369472, %v9661_v19  ;;  %v7884_v58 = vmul.bf16 %v7879_v49, %v7852_v20 }
 0x603   :  { %v7883_v51 = vmul.bf16 %v7877_v55, %v7851_v30 }
 0x604   :  { %v7885_v42 = vmul.bf16 %v7881_v8, %v7853_v29 }
 0x605   :  { %7926 = vmatprep.subr.bf16.mxu1 %v7883_v51 }
 0x606   :  { %7966 = vmatprep.subr.bf16.mxu0 %v7885_v42  ;;  %7927 = vmatpush1.bf16.xpose.msra.mxu1 %v7882_v52 }
 0x607   :  { %7967 = vmatpush1.bf16.xpose.msra.mxu0 %v7884_v58 }
 0x60d   :  { %7959 = vmatmul.mubr.bf16.vlgmr.msra.gmra.mrb[20].mxu1 %v10248_v0 }
 0x60e   :  { %7999 = vmatmul.mubr.bf16.vlgmr.msra.gmra.mrb[20].mxu0 %v7920_v54 }
 0x6e0   :  { %v7960_v33 = vpop.f32.mrb[20].mxu1 }
 0x6e1   :  { %v7961_v56 = vadd.f32 %v7960_v33, %v7896_v59  ;;  %v8000_v16 = vpop.f32.mrb[20].mxu0  ;;  %v7962_v25 = vpop.f32.mrb[21].mxu1 }
 0x6e2   :  { %v8002_v57 = vpop.f32.mrb[21].mxu0  ;;  %v7963_v24 = vpop.f32.mrb[22].mxu1 }
 0x6e3   :  { %v8001_v60 = vadd.f32 %v8000_v16, %v7961_v56  ;;  %v8003_v61 = vpop.f32.mrb[22].mxu0  ;;  %v7964_v4 = vpop.f32.mrb[23].mxu1 }
 0x6e4   :  { %v8004_v62 = vpop.f32.mrb[23].mxu0 }
 0x6e5   :  { %8007 = vst.msk [vmem:[#allocation17] sm:$0x1] %vm8006_vm0, %v8001_v60 }
 0x6e6   :  { %9851 = shalt.err (!%p9848_p12)
}
 0x6e7   :  { %s9852_s30 = scalar_lea.hbm %s10279_s9, 16 }
 0x6e8   :  { %p9853_p13 = scmp.ne.s32.totalorder %s10279_s9, %s9852_s30  ;;  %p9856_p0 = scmp.lt.u32.totalorder %s9852_s30, %s10279_s9 }
 0x6ea   :  { %p9858_p1 = pnand %p9856_p0, %p9853_p13 }
 0x6ec   :  { %9861 = shalt.err (!%p9858_p1)
}
 0x6ed   :  { %8017 = dma.vmem_to_hbm [thread:$0]  %s8015_s13, 16, %s10279_s9, [#allocation5]  }
 0x6ee   :  { %9872 = dma.done.wait [#allocation5], 16  }
 0x6ef   :  { %9873 = vsyncadd [#allocation5], 4294967280 }
 0x6f0   :  { %8021 = vsyncpa [#allocation4], 1 }
 0x6f1   :  { %8022 = vsyncpa [#allocation7], 1 }
 0x6f2   :  { %8023 = vsyncpa [#allocation10], 1 }
 0x6f3   :  { %8024 = vsyncpa [#allocation13], 1 }
 0x6f4   :  { %8025 = vsyncpa [#allocation16], 1 }
 0x6f5   :  { %8026 = vsyncpa [#allocation5], 1 }

</bundles_post_ra>
